<compile_context>
chip_gen: v7x
topology: tpu7x:2x2x1
jax: 0.10.0
libtpu: 0.0.40
codegen_flags: <defaults>
</compile_context>

<pallas_src>
import jax
import jax.numpy as jnp
from jax.experimental import pallas as pl
from jax.experimental.pallas import tpu as pltpu


# ----------------------------- matmul helpers ------------------------------

def _split(a):
    """Split an f32 array into (hi, lo) bf16 parts: a ~= hi + lo."""
    hi = a.astype(jnp.bfloat16)
    lo = (a - hi.astype(jnp.float32)).astype(jnp.bfloat16)
    return hi, lo


def _split_cplx(ar, ai):
    """Splits of real part, imag part and their sum (for the Gauss trick)."""
    return _split(ar), _split(ai), _split(ar + ai)


def _dot3(a, b):
    """~f32-accurate matmul from bf16 splits: 3 native bf16 MXU passes."""
    mm = lambda x, y: jnp.dot(x, y, preferred_element_type=jnp.float32)
    return mm(a[0], b[0]) + mm(a[1], b[0]) + mm(a[0], b[1])


def _cplx_mm(a_r, a_i, a_s, b_r, b_i, b_s):
    """(Ar + i Ai) @ (Br + i Bi); a_s/b_s are splits of (re + im).  Gauss 3-mult."""
    p1 = _dot3(a_r, b_r)
    p2 = _dot3(a_i, b_i)
    p3 = _dot3(a_s, b_s)
    return p1 - p2, p3 - p1 - p2


def _cplx_mm_conj_l(a_r, a_i, a_d, b_r, b_i, b_s):
    """conj(Ar + i Ai) @ (Br + i Bi); a_d = split of (Ar - Ai)."""
    p1 = _dot3(a_r, b_r)
    p2 = _dot3(a_i, b_i)
    p3 = _dot3(a_d, b_s)
    return p1 + p2, p3 - p1 + p2


def _cplx_mm_conj_r(a_r, a_i, a_s, b_r, b_i, b_d):
    """(Ar + i Ai) @ conj(Br + i Bi); b_d = split of (Br - Bi)."""
    p1 = _dot3(a_r, b_r)
    p2 = _dot3(a_i, b_i)
    p3 = _dot3(a_s, b_d)
    return p1 + p2, p3 - p1 + p2


# --------------------------------- kernel ----------------------------------

def gd_kernel(lmbda_ref,
              x_re_ref, x_im_ref,
              atb_re_ref, atb_im_ref,
              mask_ref,
              csm_re_ref, csm_im_ref,
              fh_re_ref, fh_im_ref,
              fw_re_ref, fw_im_ref,
              r_re_ref, r_im_ref):
    xr = x_re_ref[0]                       # (H, W)
    xi = x_im_ref[0]
    keep = mask_ref[0] != 0.0              # (H, W) bool
    zeros_hw = jnp.zeros_like(xr)

    # Loop-invariant DFT operands: combos + bf16 splits, built once per batch.
    fhr = fh_re_ref[...]
    fhi = fh_im_ref[...]
    fwr = fw_re_ref[...]                   # already transposed (right-multiply)
    fwi = fw_im_ref[...]
    fh_r, fh_i = _split(fhr), _split(fhi)
    fh_s, fh_d = _split(fhr + fhi), _split(fhr - fhi)
    fw_r, fw_i = _split(fwr), _split(fwi)
    fw_s, fw_d = _split(fwr + fwi), _split(fwr - fwi)

    num_coils = csm_re_ref.shape[1]
    acc_r = jnp.zeros_like(xr)             # coil-sum accumulator (in vregs)
    acc_i = jnp.zeros_like(xi)

    for c in range(num_coils):             # static unroll over coils
        sr = csm_re_ref[0, c]              # (H, W)
        si = csm_im_ref[0, c]

        # expand_operator: E = csm * x (complex elementwise)
        er = sr * xr - si * xi
        ei = sr * xi + si * xr

        # fft2_2c (centered, ortho): K = F_H @ E @ F_W^T
        e_r, e_i, e_s = _split_cplx(er, ei)
        tr, ti = _cplx_mm(fh_r, fh_i, fh_s, e_r, e_i, e_s)
        t_r, t_i, t_s = _split_cplx(tr, ti)
        kr, ki = _cplx_mm(t_r, t_i, t_s, fw_r, fw_i, fw_s)

        # Fused forward/backward masking of the k-space residual:
        # where(mask==0, 0, Ax - atb) with Ax = where(mask==0, 0, K)
        dr = jnp.where(keep, kr - atb_re_ref[0, c], zeros_hw)
        di = jnp.where(keep, ki - atb_im_ref[0, c], zeros_hw)

        # ifft2_2c: conj(F_H) @ D @ conj(F_W^T)  (unitary centered transform)
        d_r, d_i, d_s = _split_cplx(dr, di)
        ur, ui = _cplx_mm_conj_l(fh_r, fh_i, fh_d, d_r, d_i, d_s)
        u_r, u_i, u_s = _split_cplx(ur, ui)
        br_, bi_ = _cplx_mm_conj_r(u_r, u_i, u_s, fw_r, fw_i, fw_d)

        # reduce_operator: conj(csm) * image, summed over coils
        acc_r = acc_r + (sr * br_ + si * bi_)
        acc_i = acc_i + (sr * bi_ - si * br_)

    lam = lmbda_ref[0]
    r_re_ref[0] = (xr - lam * acc_r).astype(r_re_ref.dtype)
    r_im_ref[0] = (xi - lam * acc_i).astype(r_im_ref.dtype)


# -------------------------------- wrapper -----------------------------------

def centered_dft_matrix(n):
    """Matrix M with M @ v == fftshift(fft(ifftshift(v), norm='ortho'))."""
    eye = jnp.eye(n, dtype=jnp.complex64)
    m = jnp.fft.fftshift(
        jnp.fft.fft(jnp.fft.ifftshift(eye, axes=0), axis=0, norm="ortho"),
        axes=0)
    return jnp.real(m).astype(jnp.float32), jnp.imag(m).astype(jnp.float32)


def gd_forward(x, atb_k, mask, csm, lam):
    B, C, H, W, _ = atb_k.shape
    x_re, x_im = x[..., 0], x[..., 1]
    atb_re, atb_im = atb_k[..., 0], atb_k[..., 1]
    csm_re, csm_im = csm[..., 0], csm[..., 1]
    m2d = mask[:, 0, :, :, 0].astype(jnp.float32)            # (B, H, W)

    fh_re, fh_im = centered_dft_matrix(H)                     # left-multiply
    fw_re, fw_im = centered_dft_matrix(W)
    fw_re, fw_im = fw_re.T, fw_im.T                           # right-multiply (F_W^T)

    bxy = lambda b: (b, 0, 0)
    bcxy = lambda b: (b, 0, 0, 0)
    full = lambda b: (0, 0)

    # Advisory cost estimate: 4 complex stages * 3 Gauss dots * 3 bf16 passes.
    flops = 36 * B * C * H * W * (H + W)
    elems = (2 * B * H * W            # x
             + 4 * B * C * H * W      # atb + csm
             + B * H * W              # mask
             + 2 * (H * H + W * W)    # DFT matrices
             + 2 * B * H * W)         # outputs
    cost = pl.CostEstimate(flops=flops, transcendentals=0,
                           bytes_accessed=4 * elems)

    r_re, r_im = pl.pallas_call(
        gd_kernel,
        grid=(B,),
        in_specs=[
            pl.BlockSpec(memory_space=pltpu.MemorySpace.SMEM),   # lambda
            pl.BlockSpec((1, H, W), bxy),                        # x_re
            pl.BlockSpec((1, H, W), bxy),                        # x_im
            pl.BlockSpec((1, C, H, W), bcxy),                    # atb_re
            pl.BlockSpec((1, C, H, W), bcxy),                    # atb_im
            pl.BlockSpec((1, H, W), bxy),                        # mask
            pl.BlockSpec((1, C, H, W), bcxy),                    # csm_re
            pl.BlockSpec((1, C, H, W), bcxy),                    # csm_im
            pl.BlockSpec((H, H), full),                          # F_H real
            pl.BlockSpec((H, H), full),                          # F_H imag
            pl.BlockSpec((W, W), full),                          # F_W^T real
            pl.BlockSpec((W, W), full),                          # F_W^T imag
        ],
        out_specs=[
            pl.BlockSpec((1, H, W), bxy),
            pl.BlockSpec((1, H, W), bxy),
        ],
        out_shape=(
            jax.ShapeDtypeStruct((B, H, W), jnp.float32),
            jax.ShapeDtypeStruct((B, H, W), jnp.float32),
        ),
        compiler_params=pltpu.CompilerParams(
            dimension_semantics=("parallel",)),
        cost_estimate=cost,
    )(lam, x_re, x_im, atb_re, atb_im, m2d, csm_re, csm_im,
      fh_re, fh_im, fw_re, fw_im)

    return jnp.stack([r_re, r_im], axis=-1)


# ------------------------------- reference ----------------------------------

def reference(x, atb_k, mask, csm, lam):
    """Pure-JAX reference of the gd module forward (centered ortho FFT)."""
    xc = x[..., 0] + 1j * x[..., 1]                # (B, H, W)
    sc = csm[..., 0] + 1j * csm[..., 1]            # (B, C, H, W)
    kc = atb_k[..., 0] + 1j * atb_k[..., 1]        # (B, C, H, W)
    m = mask[:, :, :, :, 0]                        # (B, 1, H, W)
    ax = (-2, -1)

    e = sc * xc[:, None]
    k = jnp.fft.fftshift(jnp.fft.fft2(jnp.fft.ifftshift(e, axes=ax),
                                      axes=ax, norm="ortho"), axes=ax)
    Ax = jnp.where(m == 0, 0, k)
    d = jnp.where(m == 0, 0, Ax - kc)
    img = jnp.fft.fftshift(jnp.fft.ifft2(jnp.fft.ifftshift(d, axes=ax),
                                         axes=ax, norm="ortho"), axes=ax)
    g = jnp.sum(jnp.conj(sc) * img, axis=1)
    r = xc - lam * g
    return jnp.stack([jnp.real(r), jnp.imag(r)], axis=-1)


if __name__ == "__main__":
    B, C, H, W = 2, 4, 16, 16
    key = jax.random.PRNGKey(0)
    k1, k2, k3, k4 = jax.random.split(key, 4)
    x = jax.random.normal(k1, (B, H, W, 2), dtype=jnp.float32)
    atb_k = jax.random.normal(k2, (B, C, H, W, 2), dtype=jnp.float32)
    csm = jax.random.normal(k3, (B, C, H, W, 2), dtype=jnp.float32)
    mask = (jax.random.uniform(k4, (B, 1, H, W, 1)) > 0.5).astype(jnp.float32)
    # nn.Parameter(torch.Tensor([0.5])) — deterministic init
    lam = jnp.array([0.5], dtype=jnp.float32)

    r = gd_forward(x, atb_k, mask, csm, lam)
    r = jax.block_until_ready(r)

    r_ref = reference(x, atb_k, mask, csm, 0.5)
    assert r.shape == (B, H, W, 2)
    # bf16_3x matmuls: slightly looser than pure-f32 but far tighter than bf16.
    assert jnp.allclose(r, r_ref, atol=5e-3, rtol=5e-3), "mismatch vs reference"
    print("KERNEL_OK")
</pallas_src>

<mosaic_0001>
module attributes {stable_mosaic.version = 11 : i64} {
  func.func @gd_kernel(%arg0: i32, %arg1: memref<1xf32, #tpu.memory_space<smem>>, %arg2: memref<1x16x16xf32, #tpu.memory_space<vmem>>, %arg3: memref<1x16x16xf32, #tpu.memory_space<vmem>>, %arg4: memref<1x4x16x16xf32, #tpu.memory_space<vmem>>, %arg5: memref<1x4x16x16xf32, #tpu.memory_space<vmem>>, %arg6: memref<1x16x16xf32, #tpu.memory_space<vmem>>, %arg7: memref<1x4x16x16xf32, #tpu.memory_space<vmem>>, %arg8: memref<1x4x16x16xf32, #tpu.memory_space<vmem>>, %arg9: memref<16x16xf32, #tpu.memory_space<vmem>>, %arg10: memref<16x16xf32, #tpu.memory_space<vmem>>, %arg11: memref<16x16xf32, #tpu.memory_space<vmem>>, %arg12: memref<16x16xf32, #tpu.memory_space<vmem>>, %arg13: memref<1x16x16xf32, #tpu.memory_space<vmem>>, %arg14: memref<1x16x16xf32, #tpu.memory_space<vmem>>) attributes {dimension_semantics = [#tpu.dimension_semantics<parallel>], iteration_bounds = array<i64: 2>, scalar_prefetch = 0 : i64, scratch_operands = 0 : i64, tpu.core_type = #tpu.core_type<tc>, window_params = [{transform_indices = @transform_0, window_bounds = array<i64: 1>}, {transform_indices = @transform_1, window_bounds = array<i64: 1, 16, 16>}, {transform_indices = @transform_2, window_bounds = array<i64: 1, 16, 16>}, {transform_indices = @transform_3, window_bounds = array<i64: 1, 4, 16, 16>}, {transform_indices = @transform_4, window_bounds = array<i64: 1, 4, 16, 16>}, {transform_indices = @transform_5, window_bounds = array<i64: 1, 16, 16>}, {transform_indices = @transform_6, window_bounds = array<i64: 1, 4, 16, 16>}, {transform_indices = @transform_7, window_bounds = array<i64: 1, 4, 16, 16>}, {pipeline_mode = #tpu.pipeline_mode<synchronous>, transform_indices = @transform_8, window_bounds = array<i64: 16, 16>}, {pipeline_mode = #tpu.pipeline_mode<synchronous>, transform_indices = @transform_9, window_bounds = array<i64: 16, 16>}, {pipeline_mode = #tpu.pipeline_mode<synchronous>, transform_indices = @transform_10, window_bounds = array<i64: 16, 16>}, {pipeline_mode = #tpu.pipeline_mode<synchronous>, transform_indices = @transform_11, window_bounds = array<i64: 16, 16>}, {transform_indices = @transform_12, window_bounds = array<i64: 1, 16, 16>}, {transform_indices = @transform_13, window_bounds = array<i64: 1, 16, 16>}]} {
    %c0 = arith.constant 0 : index
    %c0_0 = arith.constant 0 : index
    %c0_1 = arith.constant 0 : index
    %0 = vector.load %arg2[%c0, %c0_0, %c0_1] : memref<1x16x16xf32, #tpu.memory_space<vmem>>, vector<1x16x16xf32>
    %1 = vector.shape_cast %0 : vector<1x16x16xf32> to vector<16x16xf32>
    %c0_2 = arith.constant 0 : index
    %c0_3 = arith.constant 0 : index
    %c0_4 = arith.constant 0 : index
    %2 = vector.load %arg3[%c0_2, %c0_3, %c0_4] : memref<1x16x16xf32, #tpu.memory_space<vmem>>, vector<1x16x16xf32>
    %3 = vector.shape_cast %2 : vector<1x16x16xf32> to vector<16x16xf32>
    %c0_5 = arith.constant 0 : index
    %c0_6 = arith.constant 0 : index
    %c0_7 = arith.constant 0 : index
    %4 = vector.load %arg6[%c0_5, %c0_6, %c0_7] : memref<1x16x16xf32, #tpu.memory_space<vmem>>, vector<1x16x16xf32>
    %5 = vector.shape_cast %4 : vector<1x16x16xf32> to vector<16x16xf32>
    %cst = arith.constant 0.000000e+00 : f32
    %6 = vector.broadcast %cst : f32 to vector<16x16xf32>
    %7 = arith.cmpf one, %5, %6 : vector<16x16xf32>
    %cst_8 = arith.constant 0.000000e+00 : f32
    %8 = vector.broadcast %cst_8 : f32 to vector<16x16xf32>
    %c0_9 = arith.constant 0 : index
    %c0_10 = arith.constant 0 : index
    %9 = vector.load %arg9[%c0_9, %c0_10] : memref<16x16xf32, #tpu.memory_space<vmem>>, vector<16x16xf32>
    %c0_11 = arith.constant 0 : index
    %c0_12 = arith.constant 0 : index
    %10 = vector.load %arg10[%c0_11, %c0_12] : memref<16x16xf32, #tpu.memory_space<vmem>>, vector<16x16xf32>
    %c0_13 = arith.constant 0 : index
    %c0_14 = arith.constant 0 : index
    %11 = vector.load %arg11[%c0_13, %c0_14] : memref<16x16xf32, #tpu.memory_space<vmem>>, vector<16x16xf32>
    %c0_15 = arith.constant 0 : index
    %c0_16 = arith.constant 0 : index
    %12 = vector.load %arg12[%c0_15, %c0_16] : memref<16x16xf32, #tpu.memory_space<vmem>>, vector<16x16xf32>
    %13 = arith.truncf %9 : vector<16x16xf32> to vector<16x16xbf16>
    %14 = arith.extf %13 : vector<16x16xbf16> to vector<16x16xf32>
    %15 = arith.subf %9, %14 : vector<16x16xf32>
    %16 = arith.truncf %15 : vector<16x16xf32> to vector<16x16xbf16>
    %17 = arith.truncf %10 : vector<16x16xf32> to vector<16x16xbf16>
    %18 = arith.extf %17 : vector<16x16xbf16> to vector<16x16xf32>
    %19 = arith.subf %10, %18 : vector<16x16xf32>
    %20 = arith.truncf %19 : vector<16x16xf32> to vector<16x16xbf16>
    %21 = arith.addf %9, %10 : vector<16x16xf32>
    %22 = arith.truncf %21 : vector<16x16xf32> to vector<16x16xbf16>
    %23 = arith.extf %22 : vector<16x16xbf16> to vector<16x16xf32>
    %24 = arith.subf %21, %23 : vector<16x16xf32>
    %25 = arith.truncf %24 : vector<16x16xf32> to vector<16x16xbf16>
    %26 = arith.subf %9, %10 : vector<16x16xf32>
    %27 = arith.truncf %26 : vector<16x16xf32> to vector<16x16xbf16>
    %28 = arith.extf %27 : vector<16x16xbf16> to vector<16x16xf32>
    %29 = arith.subf %26, %28 : vector<16x16xf32>
    %30 = arith.truncf %29 : vector<16x16xf32> to vector<16x16xbf16>
    %31 = arith.truncf %11 : vector<16x16xf32> to vector<16x16xbf16>
    %32 = arith.extf %31 : vector<16x16xbf16> to vector<16x16xf32>
    %33 = arith.subf %11, %32 : vector<16x16xf32>
    %34 = arith.truncf %33 : vector<16x16xf32> to vector<16x16xbf16>
    %35 = arith.truncf %12 : vector<16x16xf32> to vector<16x16xbf16>
    %36 = arith.extf %35 : vector<16x16xbf16> to vector<16x16xf32>
    %37 = arith.subf %12, %36 : vector<16x16xf32>
    %38 = arith.truncf %37 : vector<16x16xf32> to vector<16x16xbf16>
    %39 = arith.addf %11, %12 : vector<16x16xf32>
    %40 = arith.truncf %39 : vector<16x16xf32> to vector<16x16xbf16>
    %41 = arith.extf %40 : vector<16x16xbf16> to vector<16x16xf32>
    %42 = arith.subf %39, %41 : vector<16x16xf32>
    %43 = arith.truncf %42 : vector<16x16xf32> to vector<16x16xbf16>
    %44 = arith.subf %11, %12 : vector<16x16xf32>
    %45 = arith.truncf %44 : vector<16x16xf32> to vector<16x16xbf16>
    %46 = arith.extf %45 : vector<16x16xbf16> to vector<16x16xf32>
    %47 = arith.subf %44, %46 : vector<16x16xf32>
    %48 = arith.truncf %47 : vector<16x16xf32> to vector<16x16xbf16>
    %cst_17 = arith.constant 0.000000e+00 : f32
    %49 = vector.broadcast %cst_17 : f32 to vector<16x16xf32>
    %cst_18 = arith.constant 0.000000e+00 : f32
    %50 = vector.broadcast %cst_18 : f32 to vector<16x16xf32>
    %c0_19 = arith.constant 0 : index
    %c0_20 = arith.constant 0 : index
    %c0_21 = arith.constant 0 : index
    %c0_22 = arith.constant 0 : index
    %51 = vector.load %arg7[%c0_19, %c0_20, %c0_21, %c0_22] : memref<1x4x16x16xf32, #tpu.memory_space<vmem>>, vector<1x1x16x16xf32>
    %52 = vector.shape_cast %51 : vector<1x1x16x16xf32> to vector<16x16xf32>
    %c0_23 = arith.constant 0 : index
    %c0_24 = arith.constant 0 : index
    %c0_25 = arith.constant 0 : index
    %c0_26 = arith.constant 0 : index
    %53 = vector.load %arg8[%c0_23, %c0_24, %c0_25, %c0_26] : memref<1x4x16x16xf32, #tpu.memory_space<vmem>>, vector<1x1x16x16xf32>
    %54 = vector.shape_cast %53 : vector<1x1x16x16xf32> to vector<16x16xf32>
    %55 = arith.mulf %52, %1 : vector<16x16xf32>
    %56 = arith.mulf %54, %3 : vector<16x16xf32>
    %57 = arith.subf %55, %56 : vector<16x16xf32>
    %58 = arith.mulf %52, %3 : vector<16x16xf32>
    %59 = arith.mulf %54, %1 : vector<16x16xf32>
    %60 = arith.addf %58, %59 : vector<16x16xf32>
    %61 = arith.truncf %57 : vector<16x16xf32> to vector<16x16xbf16>
    %62 = arith.extf %61 : vector<16x16xbf16> to vector<16x16xf32>
    %63 = arith.subf %57, %62 : vector<16x16xf32>
    %64 = arith.truncf %63 : vector<16x16xf32> to vector<16x16xbf16>
    %65 = arith.truncf %60 : vector<16x16xf32> to vector<16x16xbf16>
    %66 = arith.extf %65 : vector<16x16xbf16> to vector<16x16xf32>
    %67 = arith.subf %60, %66 : vector<16x16xf32>
    %68 = arith.truncf %67 : vector<16x16xf32> to vector<16x16xbf16>
    %69 = arith.addf %57, %60 : vector<16x16xf32>
    %70 = arith.truncf %69 : vector<16x16xf32> to vector<16x16xbf16>
    %71 = arith.extf %70 : vector<16x16xbf16> to vector<16x16xf32>
    %72 = arith.subf %69, %71 : vector<16x16xf32>
    %73 = arith.truncf %72 : vector<16x16xf32> to vector<16x16xbf16>
    %cst_27 = arith.constant dense<0.000000e+00> : vector<16x16xf32>
    %74 = tpu.matmul %13, %61, %cst_27 {dimension_numbers = #tpu.dot_dimension_numbers<[1], [0], [0], [1], [0, 0, 1, 1], [], []>} : vector<16x16xbf16>, vector<16x16xbf16>, vector<16x16xf32> -> vector<16x16xf32>
    %cst_28 = arith.constant dense<0.000000e+00> : vector<16x16xf32>
    %75 = tpu.matmul %16, %61, %cst_28 {dimension_numbers = #tpu.dot_dimension_numbers<[1], [0], [0], [1], [0, 0, 1, 1], [], []>} : vector<16x16xbf16>, vector<16x16xbf16>, vector<16x16xf32> -> vector<16x16xf32>
    %76 = arith.addf %74, %75 : vector<16x16xf32>
    %cst_29 = arith.constant dense<0.000000e+00> : vector<16x16xf32>
    %77 = tpu.matmul %13, %64, %cst_29 {dimension_numbers = #tpu.dot_dimension_numbers<[1], [0], [0], [1], [0, 0, 1, 1], [], []>} : vector<16x16xbf16>, vector<16x16xbf16>, vector<16x16xf32> -> vector<16x16xf32>
    %78 = arith.addf %76, %77 : vector<16x16xf32>
    %cst_30 = arith.constant dense<0.000000e+00> : vector<16x16xf32>
    %79 = tpu.matmul %17, %65, %cst_30 {dimension_numbers = #tpu.dot_dimension_numbers<[1], [0], [0], [1], [0, 0, 1, 1], [], []>} : vector<16x16xbf16>, vector<16x16xbf16>, vector<16x16xf32> -> vector<16x16xf32>
    %cst_31 = arith.constant dense<0.000000e+00> : vector<16x16xf32>
    %80 = tpu.matmul %20, %65, %cst_31 {dimension_numbers = #tpu.dot_dimension_numbers<[1], [0], [0], [1], [0, 0, 1, 1], [], []>} : vector<16x16xbf16>, vector<16x16xbf16>, vector<16x16xf32> -> vector<16x16xf32>
    %81 = arith.addf %79, %80 : vector<16x16xf32>
    %cst_32 = arith.constant dense<0.000000e+00> : vector<16x16xf32>
    %82 = tpu.matmul %17, %68, %cst_32 {dimension_numbers = #tpu.dot_dimension_numbers<[1], [0], [0], [1], [0, 0, 1, 1], [], []>} : vector<16x16xbf16>, vector<16x16xbf16>, vector<16x16xf32> -> vector<16x16xf32>
    %83 = arith.addf %81, %82 : vector<16x16xf32>
    %cst_33 = arith.constant dense<0.000000e+00> : vector<16x16xf32>
    %84 = tpu.matmul %22, %70, %cst_33 {dimension_numbers = #tpu.dot_dimension_numbers<[1], [0], [0], [1], [0, 0, 1, 1], [], []>} : vector<16x16xbf16>, vector<16x16xbf16>, vector<16x16xf32> -> vector<16x16xf32>
    %cst_34 = arith.constant dense<0.000000e+00> : vector<16x16xf32>
    %85 = tpu.matmul %25, %70, %cst_34 {dimension_numbers = #tpu.dot_dimension_numbers<[1], [0], [0], [1], [0, 0, 1, 1], [], []>} : vector<16x16xbf16>, vector<16x16xbf16>, vector<16x16xf32> -> vector<16x16xf32>
    %86 = arith.addf %84, %85 : vector<16x16xf32>
    %cst_35 = arith.constant dense<0.000000e+00> : vector<16x16xf32>
    %87 = tpu.matmul %22, %73, %cst_35 {dimension_numbers = #tpu.dot_dimension_numbers<[1], [0], [0], [1], [0, 0, 1, 1], [], []>} : vector<16x16xbf16>, vector<16x16xbf16>, vector<16x16xf32> -> vector<16x16xf32>
    %88 = arith.addf %86, %87 : vector<16x16xf32>
    %89 = arith.subf %78, %83 : vector<16x16xf32>
    %90 = arith.subf %88, %78 : vector<16x16xf32>
    %91 = arith.subf %90, %83 : vector<16x16xf32>
    %92 = arith.truncf %89 : vector<16x16xf32> to vector<16x16xbf16>
    %93 = arith.extf %92 : vector<16x16xbf16> to vector<16x16xf32>
    %94 = arith.subf %89, %93 : vector<16x16xf32>
    %95 = arith.truncf %94 : vector<16x16xf32> to vector<16x16xbf16>
    %96 = arith.truncf %91 : vector<16x16xf32> to vector<16x16xbf16>
    %97 = arith.extf %96 : vector<16x16xbf16> to vector<16x16xf32>
    %98 = arith.subf %91, %97 : vector<16x16xf32>
    %99 = arith.truncf %98 : vector<16x16xf32> to vector<16x16xbf16>
    %100 = arith.addf %89, %91 : vector<16x16xf32>
    %101 = arith.truncf %100 : vector<16x16xf32> to vector<16x16xbf16>
    %102 = arith.extf %101 : vector<16x16xbf16> to vector<16x16xf32>
    %103 = arith.subf %100, %102 : vector<16x16xf32>
    %104 = arith.truncf %103 : vector<16x16xf32> to vector<16x16xbf16>
    %cst_36 = arith.constant dense<0.000000e+00> : vector<16x16xf32>
    %105 = tpu.matmul %92, %31, %cst_36 {dimension_numbers = #tpu.dot_dimension_numbers<[1], [0], [0], [1], [0, 0, 1, 1], [], []>} : vector<16x16xbf16>, vector<16x16xbf16>, vector<16x16xf32> -> vector<16x16xf32>
    %cst_37 = arith.constant dense<0.000000e+00> : vector<16x16xf32>
    %106 = tpu.matmul %95, %31, %cst_37 {dimension_numbers = #tpu.dot_dimension_numbers<[1], [0], [0], [1], [0, 0, 1, 1], [], []>} : vector<16x16xbf16>, vector<16x16xbf16>, vector<16x16xf32> -> vector<16x16xf32>
    %107 = arith.addf %105, %106 : vector<16x16xf32>
    %cst_38 = arith.constant dense<0.000000e+00> : vector<16x16xf32>
    %108 = tpu.matmul %92, %34, %cst_38 {dimension_numbers = #tpu.dot_dimension_numbers<[1], [0], [0], [1], [0, 0, 1, 1], [], []>} : vector<16x16xbf16>, vector<16x16xbf16>, vector<16x16xf32> -> vector<16x16xf32>
    %109 = arith.addf %107, %108 : vector<16x16xf32>
    %cst_39 = arith.constant dense<0.000000e+00> : vector<16x16xf32>
    %110 = tpu.matmul %96, %35, %cst_39 {dimension_numbers = #tpu.dot_dimension_numbers<[1], [0], [0], [1], [0, 0, 1, 1], [], []>} : vector<16x16xbf16>, vector<16x16xbf16>, vector<16x16xf32> -> vector<16x16xf32>
    %cst_40 = arith.constant dense<0.000000e+00> : vector<16x16xf32>
    %111 = tpu.matmul %99, %35, %cst_40 {dimension_numbers = #tpu.dot_dimension_numbers<[1], [0], [0], [1], [0, 0, 1, 1], [], []>} : vector<16x16xbf16>, vector<16x16xbf16>, vector<16x16xf32> -> vector<16x16xf32>
    %112 = arith.addf %110, %111 : vector<16x16xf32>
    %cst_41 = arith.constant dense<0.000000e+00> : vector<16x16xf32>
    %113 = tpu.matmul %96, %38, %cst_41 {dimension_numbers = #tpu.dot_dimension_numbers<[1], [0], [0], [1], [0, 0, 1, 1], [], []>} : vector<16x16xbf16>, vector<16x16xbf16>, vector<16x16xf32> -> vector<16x16xf32>
    %114 = arith.addf %112, %113 : vector<16x16xf32>
    %cst_42 = arith.constant dense<0.000000e+00> : vector<16x16xf32>
    %115 = tpu.matmul %101, %40, %cst_42 {dimension_numbers = #tpu.dot_dimension_numbers<[1], [0], [0], [1], [0, 0, 1, 1], [], []>} : vector<16x16xbf16>, vector<16x16xbf16>, vector<16x16xf32> -> vector<16x16xf32>
    %cst_43 = arith.constant dense<0.000000e+00> : vector<16x16xf32>
    %116 = tpu.matmul %104, %40, %cst_43 {dimension_numbers = #tpu.dot_dimension_numbers<[1], [0], [0], [1], [0, 0, 1, 1], [], []>} : vector<16x16xbf16>, vector<16x16xbf16>, vector<16x16xf32> -> vector<16x16xf32>
    %117 = arith.addf %115, %116 : vector<16x16xf32>
    %cst_44 = arith.constant dense<0.000000e+00> : vector<16x16xf32>
    %118 = tpu.matmul %101, %43, %cst_44 {dimension_numbers = #tpu.dot_dimension_numbers<[1], [0], [0], [1], [0, 0, 1, 1], [], []>} : vector<16x16xbf16>, vector<16x16xbf16>, vector<16x16xf32> -> vector<16x16xf32>
    %119 = arith.addf %117, %118 : vector<16x16xf32>
    %120 = arith.subf %109, %114 : vector<16x16xf32>
    %121 = arith.subf %119, %109 : vector<16x16xf32>
    %122 = arith.subf %121, %114 : vector<16x16xf32>
    %c0_45 = arith.constant 0 : index
    %c0_46 = arith.constant 0 : index
    %c0_47 = arith.constant 0 : index
    %c0_48 = arith.constant 0 : index
    %123 = vector.load %arg4[%c0_45, %c0_46, %c0_47, %c0_48] : memref<1x4x16x16xf32, #tpu.memory_space<vmem>>, vector<1x1x16x16xf32>
    %124 = vector.shape_cast %123 : vector<1x1x16x16xf32> to vector<16x16xf32>
    %125 = arith.subf %120, %124 : vector<16x16xf32>
    %126 = arith.select %7, %125, %8 : vector<16x16xi1>, vector<16x16xf32>
    %c0_49 = arith.constant 0 : index
    %c0_50 = arith.constant 0 : index
    %c0_51 = arith.constant 0 : index
    %c0_52 = arith.constant 0 : index
    %127 = vector.load %arg5[%c0_49, %c0_50, %c0_51, %c0_52] : memref<1x4x16x16xf32, #tpu.memory_space<vmem>>, vector<1x1x16x16xf32>
    %128 = vector.shape_cast %127 : vector<1x1x16x16xf32> to vector<16x16xf32>
    %129 = arith.subf %122, %128 : vector<16x16xf32>
    %130 = arith.select %7, %129, %8 : vector<16x16xi1>, vector<16x16xf32>
    %131 = arith.truncf %126 : vector<16x16xf32> to vector<16x16xbf16>
    %132 = arith.extf %131 : vector<16x16xbf16> to vector<16x16xf32>
    %133 = arith.subf %126, %132 : vector<16x16xf32>
    %134 = arith.truncf %133 : vector<16x16xf32> to vector<16x16xbf16>
    %135 = arith.truncf %130 : vector<16x16xf32> to vector<16x16xbf16>
    %136 = arith.extf %135 : vector<16x16xbf16> to vector<16x16xf32>
    %137 = arith.subf %130, %136 : vector<16x16xf32>
    %138 = arith.truncf %137 : vector<16x16xf32> to vector<16x16xbf16>
    %139 = arith.addf %126, %130 : vector<16x16xf32>
    %140 = arith.truncf %139 : vector<16x16xf32> to vector<16x16xbf16>
    %141 = arith.extf %140 : vector<16x16xbf16> to vector<16x16xf32>
    %142 = arith.subf %139, %141 : vector<16x16xf32>
    %143 = arith.truncf %142 : vector<16x16xf32> to vector<16x16xbf16>
    %cst_53 = arith.constant dense<0.000000e+00> : vector<16x16xf32>
    %144 = tpu.matmul %13, %131, %cst_53 {dimension_numbers = #tpu.dot_dimension_numbers<[1], [0], [0], [1], [0, 0, 1, 1], [], []>} : vector<16x16xbf16>, vector<16x16xbf16>, vector<16x16xf32> -> vector<16x16xf32>
    %cst_54 = arith.constant dense<0.000000e+00> : vector<16x16xf32>
    %145 = tpu.matmul %16, %131, %cst_54 {dimension_numbers = #tpu.dot_dimension_numbers<[1], [0], [0], [1], [0, 0, 1, 1], [], []>} : vector<16x16xbf16>, vector<16x16xbf16>, vector<16x16xf32> -> vector<16x16xf32>
    %146 = arith.addf %144, %145 : vector<16x16xf32>
    %cst_55 = arith.constant dense<0.000000e+00> : vector<16x16xf32>
    %147 = tpu.matmul %13, %134, %cst_55 {dimension_numbers = #tpu.dot_dimension_numbers<[1], [0], [0], [1], [0, 0, 1, 1], [], []>} : vector<16x16xbf16>, vector<16x16xbf16>, vector<16x16xf32> -> vector<16x16xf32>
    %148 = arith.addf %146, %147 : vector<16x16xf32>
    %cst_56 = arith.constant dense<0.000000e+00> : vector<16x16xf32>
    %149 = tpu.matmul %17, %135, %cst_56 {dimension_numbers = #tpu.dot_dimension_numbers<[1], [0], [0], [1], [0, 0, 1, 1], [], []>} : vector<16x16xbf16>, vector<16x16xbf16>, vector<16x16xf32> -> vector<16x16xf32>
    %cst_57 = arith.constant dense<0.000000e+00> : vector<16x16xf32>
    %150 = tpu.matmul %20, %135, %cst_57 {dimension_numbers = #tpu.dot_dimension_numbers<[1], [0], [0], [1], [0, 0, 1, 1], [], []>} : vector<16x16xbf16>, vector<16x16xbf16>, vector<16x16xf32> -> vector<16x16xf32>
    %151 = arith.addf %149, %150 : vector<16x16xf32>
    %cst_58 = arith.constant dense<0.000000e+00> : vector<16x16xf32>
    %152 = tpu.matmul %17, %138, %cst_58 {dimension_numbers = #tpu.dot_dimension_numbers<[1], [0], [0], [1], [0, 0, 1, 1], [], []>} : vector<16x16xbf16>, vector<16x16xbf16>, vector<16x16xf32> -> vector<16x16xf32>
    %153 = arith.addf %151, %152 : vector<16x16xf32>
    %cst_59 = arith.constant dense<0.000000e+00> : vector<16x16xf32>
    %154 = tpu.matmul %27, %140, %cst_59 {dimension_numbers = #tpu.dot_dimension_numbers<[1], [0], [0], [1], [0, 0, 1, 1], [], []>} : vector<16x16xbf16>, vector<16x16xbf16>, vector<16x16xf32> -> vector<16x16xf32>
    %cst_60 = arith.constant dense<0.000000e+00> : vector<16x16xf32>
    %155 = tpu.matmul %30, %140, %cst_60 {dimension_numbers = #tpu.dot_dimension_numbers<[1], [0], [0], [1], [0, 0, 1, 1], [], []>} : vector<16x16xbf16>, vector<16x16xbf16>, vector<16x16xf32> -> vector<16x16xf32>
    %156 = arith.addf %154, %155 : vector<16x16xf32>
    %cst_61 = arith.constant dense<0.000000e+00> : vector<16x16xf32>
    %157 = tpu.matmul %27, %143, %cst_61 {dimension_numbers = #tpu.dot_dimension_numbers<[1], [0], [0], [1], [0, 0, 1, 1], [], []>} : vector<16x16xbf16>, vector<16x16xbf16>, vector<16x16xf32> -> vector<16x16xf32>
    %158 = arith.addf %156, %157 : vector<16x16xf32>
    %159 = arith.addf %148, %153 : vector<16x16xf32>
    %160 = arith.subf %158, %148 : vector<16x16xf32>
    %161 = arith.addf %160, %153 : vector<16x16xf32>
    %162 = arith.truncf %159 : vector<16x16xf32> to vector<16x16xbf16>
    %163 = arith.extf %162 : vector<16x16xbf16> to vector<16x16xf32>
    %164 = arith.subf %159, %163 : vector<16x16xf32>
    %165 = arith.truncf %164 : vector<16x16xf32> to vector<16x16xbf16>
    %166 = arith.truncf %161 : vector<16x16xf32> to vector<16x16xbf16>
    %167 = arith.extf %166 : vector<16x16xbf16> to vector<16x16xf32>
    %168 = arith.subf %161, %167 : vector<16x16xf32>
    %169 = arith.truncf %168 : vector<16x16xf32> to vector<16x16xbf16>
    %170 = arith.addf %159, %161 : vector<16x16xf32>
    %171 = arith.truncf %170 : vector<16x16xf32> to vector<16x16xbf16>
    %172 = arith.extf %171 : vector<16x16xbf16> to vector<16x16xf32>
    %173 = arith.subf %170, %172 : vector<16x16xf32>
    %174 = arith.truncf %173 : vector<16x16xf32> to vector<16x16xbf16>
    %cst_62 = arith.constant dense<0.000000e+00> : vector<16x16xf32>
    %175 = tpu.matmul %162, %31, %cst_62 {dimension_numbers = #tpu.dot_dimension_numbers<[1], [0], [0], [1], [0, 0, 1, 1], [], []>} : vector<16x16xbf16>, vector<16x16xbf16>, vector<16x16xf32> -> vector<16x16xf32>
    %cst_63 = arith.constant dense<0.000000e+00> : vector<16x16xf32>
    %176 = tpu.matmul %165, %31, %cst_63 {dimension_numbers = #tpu.dot_dimension_numbers<[1], [0], [0], [1], [0, 0, 1, 1], [], []>} : vector<16x16xbf16>, vector<16x16xbf16>, vector<16x16xf32> -> vector<16x16xf32>
    %177 = arith.addf %175, %176 : vector<16x16xf32>
    %cst_64 = arith.constant dense<0.000000e+00> : vector<16x16xf32>
    %178 = tpu.matmul %162, %34, %cst_64 {dimension_numbers = #tpu.dot_dimension_numbers<[1], [0], [0], [1], [0, 0, 1, 1], [], []>} : vector<16x16xbf16>, vector<16x16xbf16>, vector<16x16xf32> -> vector<16x16xf32>
    %179 = arith.addf %177, %178 : vector<16x16xf32>
    %cst_65 = arith.constant dense<0.000000e+00> : vector<16x16xf32>
    %180 = tpu.matmul %166, %35, %cst_65 {dimension_numbers = #tpu.dot_dimension_numbers<[1], [0], [0], [1], [0, 0, 1, 1], [], []>} : vector<16x16xbf16>, vector<16x16xbf16>, vector<16x16xf32> -> vector<16x16xf32>
    %cst_66 = arith.constant dense<0.000000e+00> : vector<16x16xf32>
    %181 = tpu.matmul %169, %35, %cst_66 {dimension_numbers = #tpu.dot_dimension_numbers<[1], [0], [0], [1], [0, 0, 1, 1], [], []>} : vector<16x16xbf16>, vector<16x16xbf16>, vector<16x16xf32> -> vector<16x16xf32>
    %182 = arith.addf %180, %181 : vector<16x16xf32>
    %cst_67 = arith.constant dense<0.000000e+00> : vector<16x16xf32>
    %183 = tpu.matmul %166, %38, %cst_67 {dimension_numbers = #tpu.dot_dimension_numbers<[1], [0], [0], [1], [0, 0, 1, 1], [], []>} : vector<16x16xbf16>, vector<16x16xbf16>, vector<16x16xf32> -> vector<16x16xf32>
    %184 = arith.addf %182, %183 : vector<16x16xf32>
    %cst_68 = arith.constant dense<0.000000e+00> : vector<16x16xf32>
    %185 = tpu.matmul %171, %45, %cst_68 {dimension_numbers = #tpu.dot_dimension_numbers<[1], [0], [0], [1], [0, 0, 1, 1], [], []>} : vector<16x16xbf16>, vector<16x16xbf16>, vector<16x16xf32> -> vector<16x16xf32>
    %cst_69 = arith.constant dense<0.000000e+00> : vector<16x16xf32>
    %186 = tpu.matmul %174, %45, %cst_69 {dimension_numbers = #tpu.dot_dimension_numbers<[1], [0], [0], [1], [0, 0, 1, 1], [], []>} : vector<16x16xbf16>, vector<16x16xbf16>, vector<16x16xf32> -> vector<16x16xf32>
    %187 = arith.addf %185, %186 : vector<16x16xf32>
    %cst_70 = arith.constant dense<0.000000e+00> : vector<16x16xf32>
    %188 = tpu.matmul %171, %48, %cst_70 {dimension_numbers = #tpu.dot_dimension_numbers<[1], [0], [0], [1], [0, 0, 1, 1], [], []>} : vector<16x16xbf16>, vector<16x16xbf16>, vector<16x16xf32> -> vector<16x16xf32>
    %189 = arith.addf %187, %188 : vector<16x16xf32>
    %190 = arith.addf %179, %184 : vector<16x16xf32>
    %191 = arith.subf %189, %179 : vector<16x16xf32>
    %192 = arith.addf %191, %184 : vector<16x16xf32>
    %193 = arith.mulf %52, %190 : vector<16x16xf32>
    %194 = arith.mulf %54, %192 : vector<16x16xf32>
    %195 = arith.addf %193, %194 : vector<16x16xf32>
    %196 = arith.addf %49, %195 : vector<16x16xf32>
    %197 = arith.mulf %52, %192 : vector<16x16xf32>
    %198 = arith.mulf %54, %190 : vector<16x16xf32>
    %199 = arith.subf %197, %198 : vector<16x16xf32>
    %200 = arith.addf %50, %199 : vector<16x16xf32>
    %c0_71 = arith.constant 0 : index
    %c1 = arith.constant 1 : index
    %c0_72 = arith.constant 0 : index
    %c0_73 = arith.constant 0 : index
    %201 = vector.load %arg7[%c0_71, %c1, %c0_72, %c0_73] : memref<1x4x16x16xf32, #tpu.memory_space<vmem>>, vector<1x1x16x16xf32>
    %202 = vector.shape_cast %201 : vector<1x1x16x16xf32> to vector<16x16xf32>
    %c0_74 = arith.constant 0 : index
    %c1_75 = arith.constant 1 : index
    %c0_76 = arith.constant 0 : index
    %c0_77 = arith.constant 0 : index
    %203 = vector.load %arg8[%c0_74, %c1_75, %c0_76, %c0_77] : memref<1x4x16x16xf32, #tpu.memory_space<vmem>>, vector<1x1x16x16xf32>
    %204 = vector.shape_cast %203 : vector<1x1x16x16xf32> to vector<16x16xf32>
    %205 = arith.mulf %202, %1 : vector<16x16xf32>
    %206 = arith.mulf %204, %3 : vector<16x16xf32>
    %207 = arith.subf %205, %206 : vector<16x16xf32>
    %208 = arith.mulf %202, %3 : vector<16x16xf32>
    %209 = arith.mulf %204, %1 : vector<16x16xf32>
    %210 = arith.addf %208, %209 : vector<16x16xf32>
    %211 = arith.truncf %207 : vector<16x16xf32> to vector<16x16xbf16>
    %212 = arith.extf %211 : vector<16x16xbf16> to vector<16x16xf32>
    %213 = arith.subf %207, %212 : vector<16x16xf32>
    %214 = arith.truncf %213 : vector<16x16xf32> to vector<16x16xbf16>
    %215 = arith.truncf %210 : vector<16x16xf32> to vector<16x16xbf16>
    %216 = arith.extf %215 : vector<16x16xbf16> to vector<16x16xf32>
    %217 = arith.subf %210, %216 : vector<16x16xf32>
    %218 = arith.truncf %217 : vector<16x16xf32> to vector<16x16xbf16>
    %219 = arith.addf %207, %210 : vector<16x16xf32>
    %220 = arith.truncf %219 : vector<16x16xf32> to vector<16x16xbf16>
    %221 = arith.extf %220 : vector<16x16xbf16> to vector<16x16xf32>
    %222 = arith.subf %219, %221 : vector<16x16xf32>
    %223 = arith.truncf %222 : vector<16x16xf32> to vector<16x16xbf16>
    %cst_78 = arith.constant dense<0.000000e+00> : vector<16x16xf32>
    %224 = tpu.matmul %13, %211, %cst_78 {dimension_numbers = #tpu.dot_dimension_numbers<[1], [0], [0], [1], [0, 0, 1, 1], [], []>} : vector<16x16xbf16>, vector<16x16xbf16>, vector<16x16xf32> -> vector<16x16xf32>
    %cst_79 = arith.constant dense<0.000000e+00> : vector<16x16xf32>
    %225 = tpu.matmul %16, %211, %cst_79 {dimension_numbers = #tpu.dot_dimension_numbers<[1], [0], [0], [1], [0, 0, 1, 1], [], []>} : vector<16x16xbf16>, vector<16x16xbf16>, vector<16x16xf32> -> vector<16x16xf32>
    %226 = arith.addf %224, %225 : vector<16x16xf32>
    %cst_80 = arith.constant dense<0.000000e+00> : vector<16x16xf32>
    %227 = tpu.matmul %13, %214, %cst_80 {dimension_numbers = #tpu.dot_dimension_numbers<[1], [0], [0], [1], [0, 0, 1, 1], [], []>} : vector<16x16xbf16>, vector<16x16xbf16>, vector<16x16xf32> -> vector<16x16xf32>
    %228 = arith.addf %226, %227 : vector<16x16xf32>
    %cst_81 = arith.constant dense<0.000000e+00> : vector<16x16xf32>
    %229 = tpu.matmul %17, %215, %cst_81 {dimension_numbers = #tpu.dot_dimension_numbers<[1], [0], [0], [1], [0, 0, 1, 1], [], []>} : vector<16x16xbf16>, vector<16x16xbf16>, vector<16x16xf32> -> vector<16x16xf32>
    %cst_82 = arith.constant dense<0.000000e+00> : vector<16x16xf32>
    %230 = tpu.matmul %20, %215, %cst_82 {dimension_numbers = #tpu.dot_dimension_numbers<[1], [0], [0], [1], [0, 0, 1, 1], [], []>} : vector<16x16xbf16>, vector<16x16xbf16>, vector<16x16xf32> -> vector<16x16xf32>
    %231 = arith.addf %229, %230 : vector<16x16xf32>
    %cst_83 = arith.constant dense<0.000000e+00> : vector<16x16xf32>
    %232 = tpu.matmul %17, %218, %cst_83 {dimension_numbers = #tpu.dot_dimension_numbers<[1], [0], [0], [1], [0, 0, 1, 1], [], []>} : vector<16x16xbf16>, vector<16x16xbf16>, vector<16x16xf32> -> vector<16x16xf32>
    %233 = arith.addf %231, %232 : vector<16x16xf32>
    %cst_84 = arith.constant dense<0.000000e+00> : vector<16x16xf32>
    %234 = tpu.matmul %22, %220, %cst_84 {dimension_numbers = #tpu.dot_dimension_numbers<[1], [0], [0], [1], [0, 0, 1, 1], [], []>} : vector<16x16xbf16>, vector<16x16xbf16>, vector<16x16xf32> -> vector<16x16xf32>
    %cst_85 = arith.constant dense<0.000000e+00> : vector<16x16xf32>
    %235 = tpu.matmul %25, %220, %cst_85 {dimension_numbers = #tpu.dot_dimension_numbers<[1], [0], [0], [1], [0, 0, 1, 1], [], []>} : vector<16x16xbf16>, vector<16x16xbf16>, vector<16x16xf32> -> vector<16x16xf32>
    %236 = arith.addf %234, %235 : vector<16x16xf32>
    %cst_86 = arith.constant dense<0.000000e+00> : vector<16x16xf32>
    %237 = tpu.matmul %22, %223, %cst_86 {dimension_numbers = #tpu.dot_dimension_numbers<[1], [0], [0], [1], [0, 0, 1, 1], [], []>} : vector<16x16xbf16>, vector<16x16xbf16>, vector<16x16xf32> -> vector<16x16xf32>
    %238 = arith.addf %236, %237 : vector<16x16xf32>
    %239 = arith.subf %228, %233 : vector<16x16xf32>
    %240 = arith.subf %238, %228 : vector<16x16xf32>
    %241 = arith.subf %240, %233 : vector<16x16xf32>
    %242 = arith.truncf %239 : vector<16x16xf32> to vector<16x16xbf16>
    %243 = arith.extf %242 : vector<16x16xbf16> to vector<16x16xf32>
    %244 = arith.subf %239, %243 : vector<16x16xf32>
    %245 = arith.truncf %244 : vector<16x16xf32> to vector<16x16xbf16>
    %246 = arith.truncf %241 : vector<16x16xf32> to vector<16x16xbf16>
    %247 = arith.extf %246 : vector<16x16xbf16> to vector<16x16xf32>
    %248 = arith.subf %241, %247 : vector<16x16xf32>
    %249 = arith.truncf %248 : vector<16x16xf32> to vector<16x16xbf16>
    %250 = arith.addf %239, %241 : vector<16x16xf32>
    %251 = arith.truncf %250 : vector<16x16xf32> to vector<16x16xbf16>
    %252 = arith.extf %251 : vector<16x16xbf16> to vector<16x16xf32>
    %253 = arith.subf %250, %252 : vector<16x16xf32>
    %254 = arith.truncf %253 : vector<16x16xf32> to vector<16x16xbf16>
    %cst_87 = arith.constant dense<0.000000e+00> : vector<16x16xf32>
    %255 = tpu.matmul %242, %31, %cst_87 {dimension_numbers = #tpu.dot_dimension_numbers<[1], [0], [0], [1], [0, 0, 1, 1], [], []>} : vector<16x16xbf16>, vector<16x16xbf16>, vector<16x16xf32> -> vector<16x16xf32>
    %cst_88 = arith.constant dense<0.000000e+00> : vector<16x16xf32>
    %256 = tpu.matmul %245, %31, %cst_88 {dimension_numbers = #tpu.dot_dimension_numbers<[1], [0], [0], [1], [0, 0, 1, 1], [], []>} : vector<16x16xbf16>, vector<16x16xbf16>, vector<16x16xf32> -> vector<16x16xf32>
    %257 = arith.addf %255, %256 : vector<16x16xf32>
    %cst_89 = arith.constant dense<0.000000e+00> : vector<16x16xf32>
    %258 = tpu.matmul %242, %34, %cst_89 {dimension_numbers = #tpu.dot_dimension_numbers<[1], [0], [0], [1], [0, 0, 1, 1], [], []>} : vector<16x16xbf16>, vector<16x16xbf16>, vector<16x16xf32> -> vector<16x16xf32>
    %259 = arith.addf %257, %258 : vector<16x16xf32>
    %cst_90 = arith.constant dense<0.000000e+00> : vector<16x16xf32>
    %260 = tpu.matmul %246, %35, %cst_90 {dimension_numbers = #tpu.dot_dimension_numbers<[1], [0], [0], [1], [0, 0, 1, 1], [], []>} : vector<16x16xbf16>, vector<16x16xbf16>, vector<16x16xf32> -> vector<16x16xf32>
    %cst_91 = arith.constant dense<0.000000e+00> : vector<16x16xf32>
    %261 = tpu.matmul %249, %35, %cst_91 {dimension_numbers = #tpu.dot_dimension_numbers<[1], [0], [0], [1], [0, 0, 1, 1], [], []>} : vector<16x16xbf16>, vector<16x16xbf16>, vector<16x16xf32> -> vector<16x16xf32>
    %262 = arith.addf %260, %261 : vector<16x16xf32>
    %cst_92 = arith.constant dense<0.000000e+00> : vector<16x16xf32>
    %263 = tpu.matmul %246, %38, %cst_92 {dimension_numbers = #tpu.dot_dimension_numbers<[1], [0], [0], [1], [0, 0, 1, 1], [], []>} : vector<16x16xbf16>, vector<16x16xbf16>, vector<16x16xf32> -> vector<16x16xf32>
    %264 = arith.addf %262, %263 : vector<16x16xf32>
    %cst_93 = arith.constant dense<0.000000e+00> : vector<16x16xf32>
    %265 = tpu.matmul %251, %40, %cst_93 {dimension_numbers = #tpu.dot_dimension_numbers<[1], [0], [0], [1], [0, 0, 1, 1], [], []>} : vector<16x16xbf16>, vector<16x16xbf16>, vector<16x16xf32> -> vector<16x16xf32>
    %cst_94 = arith.constant dense<0.000000e+00> : vector<16x16xf32>
    %266 = tpu.matmul %254, %40, %cst_94 {dimension_numbers = #tpu.dot_dimension_numbers<[1], [0], [0], [1], [0, 0, 1, 1], [], []>} : vector<16x16xbf16>, vector<16x16xbf16>, vector<16x16xf32> -> vector<16x16xf32>
    %267 = arith.addf %265, %266 : vector<16x16xf32>
    %cst_95 = arith.constant dense<0.000000e+00> : vector<16x16xf32>
    %268 = tpu.matmul %251, %43, %cst_95 {dimension_numbers = #tpu.dot_dimension_numbers<[1], [0], [0], [1], [0, 0, 1, 1], [], []>} : vector<16x16xbf16>, vector<16x16xbf16>, vector<16x16xf32> -> vector<16x16xf32>
    %269 = arith.addf %267, %268 : vector<16x16xf32>
    %270 = arith.subf %259, %264 : vector<16x16xf32>
    %271 = arith.subf %269, %259 : vector<16x16xf32>
    %272 = arith.subf %271, %264 : vector<16x16xf32>
    %c0_96 = arith.constant 0 : index
    %c1_97 = arith.constant 1 : index
    %c0_98 = arith.constant 0 : index
    %c0_99 = arith.constant 0 : index
    %273 = vector.load %arg4[%c0_96, %c1_97, %c0_98, %c0_99] : memref<1x4x16x16xf32, #tpu.memory_space<vmem>>, vector<1x1x16x16xf32>
    %274 = vector.shape_cast %273 : vector<1x1x16x16xf32> to vector<16x16xf32>
    %275 = arith.subf %270, %274 : vector<16x16xf32>
    %276 = arith.select %7, %275, %8 : vector<16x16xi1>, vector<16x16xf32>
    %c0_100 = arith.constant 0 : index
    %c1_101 = arith.constant 1 : index
    %c0_102 = arith.constant 0 : index
    %c0_103 = arith.constant 0 : index
    %277 = vector.load %arg5[%c0_100, %c1_101, %c0_102, %c0_103] : memref<1x4x16x16xf32, #tpu.memory_space<vmem>>, vector<1x1x16x16xf32>
    %278 = vector.shape_cast %277 : vector<1x1x16x16xf32> to vector<16x16xf32>
    %279 = arith.subf %272, %278 : vector<16x16xf32>
    %280 = arith.select %7, %279, %8 : vector<16x16xi1>, vector<16x16xf32>
    %281 = arith.truncf %276 : vector<16x16xf32> to vector<16x16xbf16>
    %282 = arith.extf %281 : vector<16x16xbf16> to vector<16x16xf32>
    %283 = arith.subf %276, %282 : vector<16x16xf32>
    %284 = arith.truncf %283 : vector<16x16xf32> to vector<16x16xbf16>
    %285 = arith.truncf %280 : vector<16x16xf32> to vector<16x16xbf16>
    %286 = arith.extf %285 : vector<16x16xbf16> to vector<16x16xf32>
    %287 = arith.subf %280, %286 : vector<16x16xf32>
    %288 = arith.truncf %287 : vector<16x16xf32> to vector<16x16xbf16>
    %289 = arith.addf %276, %280 : vector<16x16xf32>
    %290 = arith.truncf %289 : vector<16x16xf32> to vector<16x16xbf16>
    %291 = arith.extf %290 : vector<16x16xbf16> to vector<16x16xf32>
    %292 = arith.subf %289, %291 : vector<16x16xf32>
    %293 = arith.truncf %292 : vector<16x16xf32> to vector<16x16xbf16>
    %cst_104 = arith.constant dense<0.000000e+00> : vector<16x16xf32>
    %294 = tpu.matmul %13, %281, %cst_104 {dimension_numbers = #tpu.dot_dimension_numbers<[1], [0], [0], [1], [0, 0, 1, 1], [], []>} : vector<16x16xbf16>, vector<16x16xbf16>, vector<16x16xf32> -> vector<16x16xf32>
    %cst_105 = arith.constant dense<0.000000e+00> : vector<16x16xf32>
    %295 = tpu.matmul %16, %281, %cst_105 {dimension_numbers = #tpu.dot_dimension_numbers<[1], [0], [0], [1], [0, 0, 1, 1], [], []>} : vector<16x16xbf16>, vector<16x16xbf16>, vector<16x16xf32> -> vector<16x16xf32>
    %296 = arith.addf %294, %295 : vector<16x16xf32>
    %cst_106 = arith.constant dense<0.000000e+00> : vector<16x16xf32>
    %297 = tpu.matmul %13, %284, %cst_106 {dimension_numbers = #tpu.dot_dimension_numbers<[1], [0], [0], [1], [0, 0, 1, 1], [], []>} : vector<16x16xbf16>, vector<16x16xbf16>, vector<16x16xf32> -> vector<16x16xf32>
    %298 = arith.addf %296, %297 : vector<16x16xf32>
    %cst_107 = arith.constant dense<0.000000e+00> : vector<16x16xf32>
    %299 = tpu.matmul %17, %285, %cst_107 {dimension_numbers = #tpu.dot_dimension_numbers<[1], [0], [0], [1], [0, 0, 1, 1], [], []>} : vector<16x16xbf16>, vector<16x16xbf16>, vector<16x16xf32> -> vector<16x16xf32>
    %cst_108 = arith.constant dense<0.000000e+00> : vector<16x16xf32>
    %300 = tpu.matmul %20, %285, %cst_108 {dimension_numbers = #tpu.dot_dimension_numbers<[1], [0], [0], [1], [0, 0, 1, 1], [], []>} : vector<16x16xbf16>, vector<16x16xbf16>, vector<16x16xf32> -> vector<16x16xf32>
    %301 = arith.addf %299, %300 : vector<16x16xf32>
    %cst_109 = arith.constant dense<0.000000e+00> : vector<16x16xf32>
    %302 = tpu.matmul %17, %288, %cst_109 {dimension_numbers = #tpu.dot_dimension_numbers<[1], [0], [0], [1], [0, 0, 1, 1], [], []>} : vector<16x16xbf16>, vector<16x16xbf16>, vector<16x16xf32> -> vector<16x16xf32>
    %303 = arith.addf %301, %302 : vector<16x16xf32>
    %cst_110 = arith.constant dense<0.000000e+00> : vector<16x16xf32>
    %304 = tpu.matmul %27, %290, %cst_110 {dimension_numbers = #tpu.dot_dimension_numbers<[1], [0], [0], [1], [0, 0, 1, 1], [], []>} : vector<16x16xbf16>, vector<16x16xbf16>, vector<16x16xf32> -> vector<16x16xf32>
    %cst_111 = arith.constant dense<0.000000e+00> : vector<16x16xf32>
    %305 = tpu.matmul %30, %290, %cst_111 {dimension_numbers = #tpu.dot_dimension_numbers<[1], [0], [0], [1], [0, 0, 1, 1], [], []>} : vector<16x16xbf16>, vector<16x16xbf16>, vector<16x16xf32> -> vector<16x16xf32>
    %306 = arith.addf %304, %305 : vector<16x16xf32>
    %cst_112 = arith.constant dense<0.000000e+00> : vector<16x16xf32>
    %307 = tpu.matmul %27, %293, %cst_112 {dimension_numbers = #tpu.dot_dimension_numbers<[1], [0], [0], [1], [0, 0, 1, 1], [], []>} : vector<16x16xbf16>, vector<16x16xbf16>, vector<16x16xf32> -> vector<16x16xf32>
    %308 = arith.addf %306, %307 : vector<16x16xf32>
    %309 = arith.addf %298, %303 : vector<16x16xf32>
    %310 = arith.subf %308, %298 : vector<16x16xf32>
    %311 = arith.addf %310, %303 : vector<16x16xf32>
    %312 = arith.truncf %309 : vector<16x16xf32> to vector<16x16xbf16>
    %313 = arith.extf %312 : vector<16x16xbf16> to vector<16x16xf32>
    %314 = arith.subf %309, %313 : vector<16x16xf32>
    %315 = arith.truncf %314 : vector<16x16xf32> to vector<16x16xbf16>
    %316 = arith.truncf %311 : vector<16x16xf32> to vector<16x16xbf16>
    %317 = arith.extf %316 : vector<16x16xbf16> to vector<16x16xf32>
    %318 = arith.subf %311, %317 : vector<16x16xf32>
    %319 = arith.truncf %318 : vector<16x16xf32> to vector<16x16xbf16>
    %320 = arith.addf %309, %311 : vector<16x16xf32>
    %321 = arith.truncf %320 : vector<16x16xf32> to vector<16x16xbf16>
    %322 = arith.extf %321 : vector<16x16xbf16> to vector<16x16xf32>
    %323 = arith.subf %320, %322 : vector<16x16xf32>
    %324 = arith.truncf %323 : vector<16x16xf32> to vector<16x16xbf16>
    %cst_113 = arith.constant dense<0.000000e+00> : vector<16x16xf32>
    %325 = tpu.matmul %312, %31, %cst_113 {dimension_numbers = #tpu.dot_dimension_numbers<[1], [0], [0], [1], [0, 0, 1, 1], [], []>} : vector<16x16xbf16>, vector<16x16xbf16>, vector<16x16xf32> -> vector<16x16xf32>
    %cst_114 = arith.constant dense<0.000000e+00> : vector<16x16xf32>
    %326 = tpu.matmul %315, %31, %cst_114 {dimension_numbers = #tpu.dot_dimension_numbers<[1], [0], [0], [1], [0, 0, 1, 1], [], []>} : vector<16x16xbf16>, vector<16x16xbf16>, vector<16x16xf32> -> vector<16x16xf32>
    %327 = arith.addf %325, %326 : vector<16x16xf32>
    %cst_115 = arith.constant dense<0.000000e+00> : vector<16x16xf32>
    %328 = tpu.matmul %312, %34, %cst_115 {dimension_numbers = #tpu.dot_dimension_numbers<[1], [0], [0], [1], [0, 0, 1, 1], [], []>} : vector<16x16xbf16>, vector<16x16xbf16>, vector<16x16xf32> -> vector<16x16xf32>
    %329 = arith.addf %327, %328 : vector<16x16xf32>
    %cst_116 = arith.constant dense<0.000000e+00> : vector<16x16xf32>
    %330 = tpu.matmul %316, %35, %cst_116 {dimension_numbers = #tpu.dot_dimension_numbers<[1], [0], [0], [1], [0, 0, 1, 1], [], []>} : vector<16x16xbf16>, vector<16x16xbf16>, vector<16x16xf32> -> vector<16x16xf32>
    %cst_117 = arith.constant dense<0.000000e+00> : vector<16x16xf32>
    %331 = tpu.matmul %319, %35, %cst_117 {dimension_numbers = #tpu.dot_dimension_numbers<[1], [0], [0], [1], [0, 0, 1, 1], [], []>} : vector<16x16xbf16>, vector<16x16xbf16>, vector<16x16xf32> -> vector<16x16xf32>
    %332 = arith.addf %330, %331 : vector<16x16xf32>
    %cst_118 = arith.constant dense<0.000000e+00> : vector<16x16xf32>
    %333 = tpu.matmul %316, %38, %cst_118 {dimension_numbers = #tpu.dot_dimension_numbers<[1], [0], [0], [1], [0, 0, 1, 1], [], []>} : vector<16x16xbf16>, vector<16x16xbf16>, vector<16x16xf32> -> vector<16x16xf32>
    %334 = arith.addf %332, %333 : vector<16x16xf32>
    %cst_119 = arith.constant dense<0.000000e+00> : vector<16x16xf32>
    %335 = tpu.matmul %321, %45, %cst_119 {dimension_numbers = #tpu.dot_dimension_numbers<[1], [0], [0], [1], [0, 0, 1, 1], [], []>} : vector<16x16xbf16>, vector<16x16xbf16>, vector<16x16xf32> -> vector<16x16xf32>
    %cst_120 = arith.constant dense<0.000000e+00> : vector<16x16xf32>
    %336 = tpu.matmul %324, %45, %cst_120 {dimension_numbers = #tpu.dot_dimension_numbers<[1], [0], [0], [1], [0, 0, 1, 1], [], []>} : vector<16x16xbf16>, vector<16x16xbf16>, vector<16x16xf32> -> vector<16x16xf32>
    %337 = arith.addf %335, %336 : vector<16x16xf32>
    %cst_121 = arith.constant dense<0.000000e+00> : vector<16x16xf32>
    %338 = tpu.matmul %321, %48, %cst_121 {dimension_numbers = #tpu.dot_dimension_numbers<[1], [0], [0], [1], [0, 0, 1, 1], [], []>} : vector<16x16xbf16>, vector<16x16xbf16>, vector<16x16xf32> -> vector<16x16xf32>
    %339 = arith.addf %337, %338 : vector<16x16xf32>
    %340 = arith.addf %329, %334 : vector<16x16xf32>
    %341 = arith.subf %339, %329 : vector<16x16xf32>
    %342 = arith.addf %341, %334 : vector<16x16xf32>
    %343 = arith.mulf %202, %340 : vector<16x16xf32>
    %344 = arith.mulf %204, %342 : vector<16x16xf32>
    %345 = arith.addf %343, %344 : vector<16x16xf32>
    %346 = arith.addf %196, %345 : vector<16x16xf32>
    %347 = arith.mulf %202, %342 : vector<16x16xf32>
    %348 = arith.mulf %204, %340 : vector<16x16xf32>
    %349 = arith.subf %347, %348 : vector<16x16xf32>
    %350 = arith.addf %200, %349 : vector<16x16xf32>
    %c0_122 = arith.constant 0 : index
    %c2 = arith.constant 2 : index
    %c0_123 = arith.constant 0 : index
    %c0_124 = arith.constant 0 : index
    %351 = vector.load %arg7[%c0_122, %c2, %c0_123, %c0_124] : memref<1x4x16x16xf32, #tpu.memory_space<vmem>>, vector<1x1x16x16xf32>
    %352 = vector.shape_cast %351 : vector<1x1x16x16xf32> to vector<16x16xf32>
    %c0_125 = arith.constant 0 : index
    %c2_126 = arith.constant 2 : index
    %c0_127 = arith.constant 0 : index
    %c0_128 = arith.constant 0 : index
    %353 = vector.load %arg8[%c0_125, %c2_126, %c0_127, %c0_128] : memref<1x4x16x16xf32, #tpu.memory_space<vmem>>, vector<1x1x16x16xf32>
    %354 = vector.shape_cast %353 : vector<1x1x16x16xf32> to vector<16x16xf32>
    %355 = arith.mulf %352, %1 : vector<16x16xf32>
    %356 = arith.mulf %354, %3 : vector<16x16xf32>
    %357 = arith.subf %355, %356 : vector<16x16xf32>
    %358 = arith.mulf %352, %3 : vector<16x16xf32>
    %359 = arith.mulf %354, %1 : vector<16x16xf32>
    %360 = arith.addf %358, %359 : vector<16x16xf32>
    %361 = arith.truncf %357 : vector<16x16xf32> to vector<16x16xbf16>
    %362 = arith.extf %361 : vector<16x16xbf16> to vector<16x16xf32>
    %363 = arith.subf %357, %362 : vector<16x16xf32>
    %364 = arith.truncf %363 : vector<16x16xf32> to vector<16x16xbf16>
    %365 = arith.truncf %360 : vector<16x16xf32> to vector<16x16xbf16>
    %366 = arith.extf %365 : vector<16x16xbf16> to vector<16x16xf32>
    %367 = arith.subf %360, %366 : vector<16x16xf32>
    %368 = arith.truncf %367 : vector<16x16xf32> to vector<16x16xbf16>
    %369 = arith.addf %357, %360 : vector<16x16xf32>
    %370 = arith.truncf %369 : vector<16x16xf32> to vector<16x16xbf16>
    %371 = arith.extf %370 : vector<16x16xbf16> to vector<16x16xf32>
    %372 = arith.subf %369, %371 : vector<16x16xf32>
    %373 = arith.truncf %372 : vector<16x16xf32> to vector<16x16xbf16>
    %cst_129 = arith.constant dense<0.000000e+00> : vector<16x16xf32>
    %374 = tpu.matmul %13, %361, %cst_129 {dimension_numbers = #tpu.dot_dimension_numbers<[1], [0], [0], [1], [0, 0, 1, 1], [], []>} : vector<16x16xbf16>, vector<16x16xbf16>, vector<16x16xf32> -> vector<16x16xf32>
    %cst_130 = arith.constant dense<0.000000e+00> : vector<16x16xf32>
    %375 = tpu.matmul %16, %361, %cst_130 {dimension_numbers = #tpu.dot_dimension_numbers<[1], [0], [0], [1], [0, 0, 1, 1], [], []>} : vector<16x16xbf16>, vector<16x16xbf16>, vector<16x16xf32> -> vector<16x16xf32>
    %376 = arith.addf %374, %375 : vector<16x16xf32>
    %cst_131 = arith.constant dense<0.000000e+00> : vector<16x16xf32>
    %377 = tpu.matmul %13, %364, %cst_131 {dimension_numbers = #tpu.dot_dimension_numbers<[1], [0], [0], [1], [0, 0, 1, 1], [], []>} : vector<16x16xbf16>, vector<16x16xbf16>, vector<16x16xf32> -> vector<16x16xf32>
    %378 = arith.addf %376, %377 : vector<16x16xf32>
    %cst_132 = arith.constant dense<0.000000e+00> : vector<16x16xf32>
    %379 = tpu.matmul %17, %365, %cst_132 {dimension_numbers = #tpu.dot_dimension_numbers<[1], [0], [0], [1], [0, 0, 1, 1], [], []>} : vector<16x16xbf16>, vector<16x16xbf16>, vector<16x16xf32> -> vector<16x16xf32>
    %cst_133 = arith.constant dense<0.000000e+00> : vector<16x16xf32>
    %380 = tpu.matmul %20, %365, %cst_133 {dimension_numbers = #tpu.dot_dimension_numbers<[1], [0], [0], [1], [0, 0, 1, 1], [], []>} : vector<16x16xbf16>, vector<16x16xbf16>, vector<16x16xf32> -> vector<16x16xf32>
    %381 = arith.addf %379, %380 : vector<16x16xf32>
    %cst_134 = arith.constant dense<0.000000e+00> : vector<16x16xf32>
    %382 = tpu.matmul %17, %368, %cst_134 {dimension_numbers = #tpu.dot_dimension_numbers<[1], [0], [0], [1], [0, 0, 1, 1], [], []>} : vector<16x16xbf16>, vector<16x16xbf16>, vector<16x16xf32> -> vector<16x16xf32>
    %383 = arith.addf %381, %382 : vector<16x16xf32>
    %cst_135 = arith.constant dense<0.000000e+00> : vector<16x16xf32>
    %384 = tpu.matmul %22, %370, %cst_135 {dimension_numbers = #tpu.dot_dimension_numbers<[1], [0], [0], [1], [0, 0, 1, 1], [], []>} : vector<16x16xbf16>, vector<16x16xbf16>, vector<16x16xf32> -> vector<16x16xf32>
    %cst_136 = arith.constant dense<0.000000e+00> : vector<16x16xf32>
    %385 = tpu.matmul %25, %370, %cst_136 {dimension_numbers = #tpu.dot_dimension_numbers<[1], [0], [0], [1], [0, 0, 1, 1], [], []>} : vector<16x16xbf16>, vector<16x16xbf16>, vector<16x16xf32> -> vector<16x16xf32>
    %386 = arith.addf %384, %385 : vector<16x16xf32>
    %cst_137 = arith.constant dense<0.000000e+00> : vector<16x16xf32>
    %387 = tpu.matmul %22, %373, %cst_137 {dimension_numbers = #tpu.dot_dimension_numbers<[1], [0], [0], [1], [0, 0, 1, 1], [], []>} : vector<16x16xbf16>, vector<16x16xbf16>, vector<16x16xf32> -> vector<16x16xf32>
    %388 = arith.addf %386, %387 : vector<16x16xf32>
    %389 = arith.subf %378, %383 : vector<16x16xf32>
    %390 = arith.subf %388, %378 : vector<16x16xf32>
    %391 = arith.subf %390, %383 : vector<16x16xf32>
    %392 = arith.truncf %389 : vector<16x16xf32> to vector<16x16xbf16>
    %393 = arith.extf %392 : vector<16x16xbf16> to vector<16x16xf32>
    %394 = arith.subf %389, %393 : vector<16x16xf32>
    %395 = arith.truncf %394 : vector<16x16xf32> to vector<16x16xbf16>
    %396 = arith.truncf %391 : vector<16x16xf32> to vector<16x16xbf16>
    %397 = arith.extf %396 : vector<16x16xbf16> to vector<16x16xf32>
    %398 = arith.subf %391, %397 : vector<16x16xf32>
    %399 = arith.truncf %398 : vector<16x16xf32> to vector<16x16xbf16>
    %400 = arith.addf %389, %391 : vector<16x16xf32>
    %401 = arith.truncf %400 : vector<16x16xf32> to vector<16x16xbf16>
    %402 = arith.extf %401 : vector<16x16xbf16> to vector<16x16xf32>
    %403 = arith.subf %400, %402 : vector<16x16xf32>
    %404 = arith.truncf %403 : vector<16x16xf32> to vector<16x16xbf16>
    %cst_138 = arith.constant dense<0.000000e+00> : vector<16x16xf32>
    %405 = tpu.matmul %392, %31, %cst_138 {dimension_numbers = #tpu.dot_dimension_numbers<[1], [0], [0], [1], [0, 0, 1, 1], [], []>} : vector<16x16xbf16>, vector<16x16xbf16>, vector<16x16xf32> -> vector<16x16xf32>
    %cst_139 = arith.constant dense<0.000000e+00> : vector<16x16xf32>
    %406 = tpu.matmul %395, %31, %cst_139 {dimension_numbers = #tpu.dot_dimension_numbers<[1], [0], [0], [1], [0, 0, 1, 1], [], []>} : vector<16x16xbf16>, vector<16x16xbf16>, vector<16x16xf32> -> vector<16x16xf32>
    %407 = arith.addf %405, %406 : vector<16x16xf32>
    %cst_140 = arith.constant dense<0.000000e+00> : vector<16x16xf32>
    %408 = tpu.matmul %392, %34, %cst_140 {dimension_numbers = #tpu.dot_dimension_numbers<[1], [0], [0], [1], [0, 0, 1, 1], [], []>} : vector<16x16xbf16>, vector<16x16xbf16>, vector<16x16xf32> -> vector<16x16xf32>
    %409 = arith.addf %407, %408 : vector<16x16xf32>
    %cst_141 = arith.constant dense<0.000000e+00> : vector<16x16xf32>
    %410 = tpu.matmul %396, %35, %cst_141 {dimension_numbers = #tpu.dot_dimension_numbers<[1], [0], [0], [1], [0, 0, 1, 1], [], []>} : vector<16x16xbf16>, vector<16x16xbf16>, vector<16x16xf32> -> vector<16x16xf32>
    %cst_142 = arith.constant dense<0.000000e+00> : vector<16x16xf32>
    %411 = tpu.matmul %399, %35, %cst_142 {dimension_numbers = #tpu.dot_dimension_numbers<[1], [0], [0], [1], [0, 0, 1, 1], [], []>} : vector<16x16xbf16>, vector<16x16xbf16>, vector<16x16xf32> -> vector<16x16xf32>
    %412 = arith.addf %410, %411 : vector<16x16xf32>
    %cst_143 = arith.constant dense<0.000000e+00> : vector<16x16xf32>
    %413 = tpu.matmul %396, %38, %cst_143 {dimension_numbers = #tpu.dot_dimension_numbers<[1], [0], [0], [1], [0, 0, 1, 1], [], []>} : vector<16x16xbf16>, vector<16x16xbf16>, vector<16x16xf32> -> vector<16x16xf32>
    %414 = arith.addf %412, %413 : vector<16x16xf32>
    %cst_144 = arith.constant dense<0.000000e+00> : vector<16x16xf32>
    %415 = tpu.matmul %401, %40, %cst_144 {dimension_numbers = #tpu.dot_dimension_numbers<[1], [0], [0], [1], [0, 0, 1, 1], [], []>} : vector<16x16xbf16>, vector<16x16xbf16>, vector<16x16xf32> -> vector<16x16xf32>
    %cst_145 = arith.constant dense<0.000000e+00> : vector<16x16xf32>
    %416 = tpu.matmul %404, %40, %cst_145 {dimension_numbers = #tpu.dot_dimension_numbers<[1], [0], [0], [1], [0, 0, 1, 1], [], []>} : vector<16x16xbf16>, vector<16x16xbf16>, vector<16x16xf32> -> vector<16x16xf32>
    %417 = arith.addf %415, %416 : vector<16x16xf32>
    %cst_146 = arith.constant dense<0.000000e+00> : vector<16x16xf32>
    %418 = tpu.matmul %401, %43, %cst_146 {dimension_numbers = #tpu.dot_dimension_numbers<[1], [0], [0], [1], [0, 0, 1, 1], [], []>} : vector<16x16xbf16>, vector<16x16xbf16>, vector<16x16xf32> -> vector<16x16xf32>
    %419 = arith.addf %417, %418 : vector<16x16xf32>
    %420 = arith.subf %409, %414 : vector<16x16xf32>
    %421 = arith.subf %419, %409 : vector<16x16xf32>
    %422 = arith.subf %421, %414 : vector<16x16xf32>
    %c0_147 = arith.constant 0 : index
    %c2_148 = arith.constant 2 : index
    %c0_149 = arith.constant 0 : index
    %c0_150 = arith.constant 0 : index
    %423 = vector.load %arg4[%c0_147, %c2_148, %c0_149, %c0_150] : memref<1x4x16x16xf32, #tpu.memory_space<vmem>>, vector<1x1x16x16xf32>
    %424 = vector.shape_cast %423 : vector<1x1x16x16xf32> to vector<16x16xf32>
    %425 = arith.subf %420, %424 : vector<16x16xf32>
    %426 = arith.select %7, %425, %8 : vector<16x16xi1>, vector<16x16xf32>
    %c0_151 = arith.constant 0 : index
    %c2_152 = arith.constant 2 : index
    %c0_153 = arith.constant 0 : index
    %c0_154 = arith.constant 0 : index
    %427 = vector.load %arg5[%c0_151, %c2_152, %c0_153, %c0_154] : memref<1x4x16x16xf32, #tpu.memory_space<vmem>>, vector<1x1x16x16xf32>
    %428 = vector.shape_cast %427 : vector<1x1x16x16xf32> to vector<16x16xf32>
    %429 = arith.subf %422, %428 : vector<16x16xf32>
    %430 = arith.select %7, %429, %8 : vector<16x16xi1>, vector<16x16xf32>
    %431 = arith.truncf %426 : vector<16x16xf32> to vector<16x16xbf16>
    %432 = arith.extf %431 : vector<16x16xbf16> to vector<16x16xf32>
    %433 = arith.subf %426, %432 : vector<16x16xf32>
    %434 = arith.truncf %433 : vector<16x16xf32> to vector<16x16xbf16>
    %435 = arith.truncf %430 : vector<16x16xf32> to vector<16x16xbf16>
    %436 = arith.extf %435 : vector<16x16xbf16> to vector<16x16xf32>
    %437 = arith.subf %430, %436 : vector<16x16xf32>
    %438 = arith.truncf %437 : vector<16x16xf32> to vector<16x16xbf16>
    %439 = arith.addf %426, %430 : vector<16x16xf32>
    %440 = arith.truncf %439 : vector<16x16xf32> to vector<16x16xbf16>
    %441 = arith.extf %440 : vector<16x16xbf16> to vector<16x16xf32>
    %442 = arith.subf %439, %441 : vector<16x16xf32>
    %443 = arith.truncf %442 : vector<16x16xf32> to vector<16x16xbf16>
    %cst_155 = arith.constant dense<0.000000e+00> : vector<16x16xf32>
    %444 = tpu.matmul %13, %431, %cst_155 {dimension_numbers = #tpu.dot_dimension_numbers<[1], [0], [0], [1], [0, 0, 1, 1], [], []>} : vector<16x16xbf16>, vector<16x16xbf16>, vector<16x16xf32> -> vector<16x16xf32>
    %cst_156 = arith.constant dense<0.000000e+00> : vector<16x16xf32>
    %445 = tpu.matmul %16, %431, %cst_156 {dimension_numbers = #tpu.dot_dimension_numbers<[1], [0], [0], [1], [0, 0, 1, 1], [], []>} : vector<16x16xbf16>, vector<16x16xbf16>, vector<16x16xf32> -> vector<16x16xf32>
    %446 = arith.addf %444, %445 : vector<16x16xf32>
    %cst_157 = arith.constant dense<0.000000e+00> : vector<16x16xf32>
    %447 = tpu.matmul %13, %434, %cst_157 {dimension_numbers = #tpu.dot_dimension_numbers<[1], [0], [0], [1], [0, 0, 1, 1], [], []>} : vector<16x16xbf16>, vector<16x16xbf16>, vector<16x16xf32> -> vector<16x16xf32>
    %448 = arith.addf %446, %447 : vector<16x16xf32>
    %cst_158 = arith.constant dense<0.000000e+00> : vector<16x16xf32>
    %449 = tpu.matmul %17, %435, %cst_158 {dimension_numbers = #tpu.dot_dimension_numbers<[1], [0], [0], [1], [0, 0, 1, 1], [], []>} : vector<16x16xbf16>, vector<16x16xbf16>, vector<16x16xf32> -> vector<16x16xf32>
    %cst_159 = arith.constant dense<0.000000e+00> : vector<16x16xf32>
    %450 = tpu.matmul %20, %435, %cst_159 {dimension_numbers = #tpu.dot_dimension_numbers<[1], [0], [0], [1], [0, 0, 1, 1], [], []>} : vector<16x16xbf16>, vector<16x16xbf16>, vector<16x16xf32> -> vector<16x16xf32>
    %451 = arith.addf %449, %450 : vector<16x16xf32>
    %cst_160 = arith.constant dense<0.000000e+00> : vector<16x16xf32>
    %452 = tpu.matmul %17, %438, %cst_160 {dimension_numbers = #tpu.dot_dimension_numbers<[1], [0], [0], [1], [0, 0, 1, 1], [], []>} : vector<16x16xbf16>, vector<16x16xbf16>, vector<16x16xf32> -> vector<16x16xf32>
    %453 = arith.addf %451, %452 : vector<16x16xf32>
    %cst_161 = arith.constant dense<0.000000e+00> : vector<16x16xf32>
    %454 = tpu.matmul %27, %440, %cst_161 {dimension_numbers = #tpu.dot_dimension_numbers<[1], [0], [0], [1], [0, 0, 1, 1], [], []>} : vector<16x16xbf16>, vector<16x16xbf16>, vector<16x16xf32> -> vector<16x16xf32>
    %cst_162 = arith.constant dense<0.000000e+00> : vector<16x16xf32>
    %455 = tpu.matmul %30, %440, %cst_162 {dimension_numbers = #tpu.dot_dimension_numbers<[1], [0], [0], [1], [0, 0, 1, 1], [], []>} : vector<16x16xbf16>, vector<16x16xbf16>, vector<16x16xf32> -> vector<16x16xf32>
    %456 = arith.addf %454, %455 : vector<16x16xf32>
    %cst_163 = arith.constant dense<0.000000e+00> : vector<16x16xf32>
    %457 = tpu.matmul %27, %443, %cst_163 {dimension_numbers = #tpu.dot_dimension_numbers<[1], [0], [0], [1], [0, 0, 1, 1], [], []>} : vector<16x16xbf16>, vector<16x16xbf16>, vector<16x16xf32> -> vector<16x16xf32>
    %458 = arith.addf %456, %457 : vector<16x16xf32>
    %459 = arith.addf %448, %453 : vector<16x16xf32>
    %460 = arith.subf %458, %448 : vector<16x16xf32>
    %461 = arith.addf %460, %453 : vector<16x16xf32>
    %462 = arith.truncf %459 : vector<16x16xf32> to vector<16x16xbf16>
    %463 = arith.extf %462 : vector<16x16xbf16> to vector<16x16xf32>
    %464 = arith.subf %459, %463 : vector<16x16xf32>
    %465 = arith.truncf %464 : vector<16x16xf32> to vector<16x16xbf16>
    %466 = arith.truncf %461 : vector<16x16xf32> to vector<16x16xbf16>
    %467 = arith.extf %466 : vector<16x16xbf16> to vector<16x16xf32>
    %468 = arith.subf %461, %467 : vector<16x16xf32>
    %469 = arith.truncf %468 : vector<16x16xf32> to vector<16x16xbf16>
    %470 = arith.addf %459, %461 : vector<16x16xf32>
    %471 = arith.truncf %470 : vector<16x16xf32> to vector<16x16xbf16>
    %472 = arith.extf %471 : vector<16x16xbf16> to vector<16x16xf32>
    %473 = arith.subf %470, %472 : vector<16x16xf32>
    %474 = arith.truncf %473 : vector<16x16xf32> to vector<16x16xbf16>
    %cst_164 = arith.constant dense<0.000000e+00> : vector<16x16xf32>
    %475 = tpu.matmul %462, %31, %cst_164 {dimension_numbers = #tpu.dot_dimension_numbers<[1], [0], [0], [1], [0, 0, 1, 1], [], []>} : vector<16x16xbf16>, vector<16x16xbf16>, vector<16x16xf32> -> vector<16x16xf32>
    %cst_165 = arith.constant dense<0.000000e+00> : vector<16x16xf32>
    %476 = tpu.matmul %465, %31, %cst_165 {dimension_numbers = #tpu.dot_dimension_numbers<[1], [0], [0], [1], [0, 0, 1, 1], [], []>} : vector<16x16xbf16>, vector<16x16xbf16>, vector<16x16xf32> -> vector<16x16xf32>
    %477 = arith.addf %475, %476 : vector<16x16xf32>
    %cst_166 = arith.constant dense<0.000000e+00> : vector<16x16xf32>
    %478 = tpu.matmul %462, %34, %cst_166 {dimension_numbers = #tpu.dot_dimension_numbers<[1], [0], [0], [1], [0, 0, 1, 1], [], []>} : vector<16x16xbf16>, vector<16x16xbf16>, vector<16x16xf32> -> vector<16x16xf32>
    %479 = arith.addf %477, %478 : vector<16x16xf32>
    %cst_167 = arith.constant dense<0.000000e+00> : vector<16x16xf32>
    %480 = tpu.matmul %466, %35, %cst_167 {dimension_numbers = #tpu.dot_dimension_numbers<[1], [0], [0], [1], [0, 0, 1, 1], [], []>} : vector<16x16xbf16>, vector<16x16xbf16>, vector<16x16xf32> -> vector<16x16xf32>
    %cst_168 = arith.constant dense<0.000000e+00> : vector<16x16xf32>
    %481 = tpu.matmul %469, %35, %cst_168 {dimension_numbers = #tpu.dot_dimension_numbers<[1], [0], [0], [1], [0, 0, 1, 1], [], []>} : vector<16x16xbf16>, vector<16x16xbf16>, vector<16x16xf32> -> vector<16x16xf32>
    %482 = arith.addf %480, %481 : vector<16x16xf32>
    %cst_169 = arith.constant dense<0.000000e+00> : vector<16x16xf32>
    %483 = tpu.matmul %466, %38, %cst_169 {dimension_numbers = #tpu.dot_dimension_numbers<[1], [0], [0], [1], [0, 0, 1, 1], [], []>} : vector<16x16xbf16>, vector<16x16xbf16>, vector<16x16xf32> -> vector<16x16xf32>
    %484 = arith.addf %482, %483 : vector<16x16xf32>
    %cst_170 = arith.constant dense<0.000000e+00> : vector<16x16xf32>
    %485 = tpu.matmul %471, %45, %cst_170 {dimension_numbers = #tpu.dot_dimension_numbers<[1], [0], [0], [1], [0, 0, 1, 1], [], []>} : vector<16x16xbf16>, vector<16x16xbf16>, vector<16x16xf32> -> vector<16x16xf32>
    %cst_171 = arith.constant dense<0.000000e+00> : vector<16x16xf32>
    %486 = tpu.matmul %474, %45, %cst_171 {dimension_numbers = #tpu.dot_dimension_numbers<[1], [0], [0], [1], [0, 0, 1, 1], [], []>} : vector<16x16xbf16>, vector<16x16xbf16>, vector<16x16xf32> -> vector<16x16xf32>
    %487 = arith.addf %485, %486 : vector<16x16xf32>
    %cst_172 = arith.constant dense<0.000000e+00> : vector<16x16xf32>
    %488 = tpu.matmul %471, %48, %cst_172 {dimension_numbers = #tpu.dot_dimension_numbers<[1], [0], [0], [1], [0, 0, 1, 1], [], []>} : vector<16x16xbf16>, vector<16x16xbf16>, vector<16x16xf32> -> vector<16x16xf32>
    %489 = arith.addf %487, %488 : vector<16x16xf32>
    %490 = arith.addf %479, %484 : vector<16x16xf32>
    %491 = arith.subf %489, %479 : vector<16x16xf32>
    %492 = arith.addf %491, %484 : vector<16x16xf32>
    %493 = arith.mulf %352, %490 : vector<16x16xf32>
    %494 = arith.mulf %354, %492 : vector<16x16xf32>
    %495 = arith.addf %493, %494 : vector<16x16xf32>
    %496 = arith.addf %346, %495 : vector<16x16xf32>
    %497 = arith.mulf %352, %492 : vector<16x16xf32>
    %498 = arith.mulf %354, %490 : vector<16x16xf32>
    %499 = arith.subf %497, %498 : vector<16x16xf32>
    %500 = arith.addf %350, %499 : vector<16x16xf32>
    %c0_173 = arith.constant 0 : index
    %c3 = arith.constant 3 : index
    %c0_174 = arith.constant 0 : index
    %c0_175 = arith.constant 0 : index
    %501 = vector.load %arg7[%c0_173, %c3, %c0_174, %c0_175] : memref<1x4x16x16xf32, #tpu.memory_space<vmem>>, vector<1x1x16x16xf32>
    %502 = vector.shape_cast %501 : vector<1x1x16x16xf32> to vector<16x16xf32>
    %c0_176 = arith.constant 0 : index
    %c3_177 = arith.constant 3 : index
    %c0_178 = arith.constant 0 : index
    %c0_179 = arith.constant 0 : index
    %503 = vector.load %arg8[%c0_176, %c3_177, %c0_178, %c0_179] : memref<1x4x16x16xf32, #tpu.memory_space<vmem>>, vector<1x1x16x16xf32>
    %504 = vector.shape_cast %503 : vector<1x1x16x16xf32> to vector<16x16xf32>
    %505 = arith.mulf %502, %1 : vector<16x16xf32>
    %506 = arith.mulf %504, %3 : vector<16x16xf32>
    %507 = arith.subf %505, %506 : vector<16x16xf32>
    %508 = arith.mulf %502, %3 : vector<16x16xf32>
    %509 = arith.mulf %504, %1 : vector<16x16xf32>
    %510 = arith.addf %508, %509 : vector<16x16xf32>
    %511 = arith.truncf %507 : vector<16x16xf32> to vector<16x16xbf16>
    %512 = arith.extf %511 : vector<16x16xbf16> to vector<16x16xf32>
    %513 = arith.subf %507, %512 : vector<16x16xf32>
    %514 = arith.truncf %513 : vector<16x16xf32> to vector<16x16xbf16>
    %515 = arith.truncf %510 : vector<16x16xf32> to vector<16x16xbf16>
    %516 = arith.extf %515 : vector<16x16xbf16> to vector<16x16xf32>
    %517 = arith.subf %510, %516 : vector<16x16xf32>
    %518 = arith.truncf %517 : vector<16x16xf32> to vector<16x16xbf16>
    %519 = arith.addf %507, %510 : vector<16x16xf32>
    %520 = arith.truncf %519 : vector<16x16xf32> to vector<16x16xbf16>
    %521 = arith.extf %520 : vector<16x16xbf16> to vector<16x16xf32>
    %522 = arith.subf %519, %521 : vector<16x16xf32>
    %523 = arith.truncf %522 : vector<16x16xf32> to vector<16x16xbf16>
    %cst_180 = arith.constant dense<0.000000e+00> : vector<16x16xf32>
    %524 = tpu.matmul %13, %511, %cst_180 {dimension_numbers = #tpu.dot_dimension_numbers<[1], [0], [0], [1], [0, 0, 1, 1], [], []>} : vector<16x16xbf16>, vector<16x16xbf16>, vector<16x16xf32> -> vector<16x16xf32>
    %cst_181 = arith.constant dense<0.000000e+00> : vector<16x16xf32>
    %525 = tpu.matmul %16, %511, %cst_181 {dimension_numbers = #tpu.dot_dimension_numbers<[1], [0], [0], [1], [0, 0, 1, 1], [], []>} : vector<16x16xbf16>, vector<16x16xbf16>, vector<16x16xf32> -> vector<16x16xf32>
    %526 = arith.addf %524, %525 : vector<16x16xf32>
    %cst_182 = arith.constant dense<0.000000e+00> : vector<16x16xf32>
    %527 = tpu.matmul %13, %514, %cst_182 {dimension_numbers = #tpu.dot_dimension_numbers<[1], [0], [0], [1], [0, 0, 1, 1], [], []>} : vector<16x16xbf16>, vector<16x16xbf16>, vector<16x16xf32> -> vector<16x16xf32>
    %528 = arith.addf %526, %527 : vector<16x16xf32>
    %cst_183 = arith.constant dense<0.000000e+00> : vector<16x16xf32>
    %529 = tpu.matmul %17, %515, %cst_183 {dimension_numbers = #tpu.dot_dimension_numbers<[1], [0], [0], [1], [0, 0, 1, 1], [], []>} : vector<16x16xbf16>, vector<16x16xbf16>, vector<16x16xf32> -> vector<16x16xf32>
    %cst_184 = arith.constant dense<0.000000e+00> : vector<16x16xf32>
    %530 = tpu.matmul %20, %515, %cst_184 {dimension_numbers = #tpu.dot_dimension_numbers<[1], [0], [0], [1], [0, 0, 1, 1], [], []>} : vector<16x16xbf16>, vector<16x16xbf16>, vector<16x16xf32> -> vector<16x16xf32>
    %531 = arith.addf %529, %530 : vector<16x16xf32>
    %cst_185 = arith.constant dense<0.000000e+00> : vector<16x16xf32>
    %532 = tpu.matmul %17, %518, %cst_185 {dimension_numbers = #tpu.dot_dimension_numbers<[1], [0], [0], [1], [0, 0, 1, 1], [], []>} : vector<16x16xbf16>, vector<16x16xbf16>, vector<16x16xf32> -> vector<16x16xf32>
    %533 = arith.addf %531, %532 : vector<16x16xf32>
    %cst_186 = arith.constant dense<0.000000e+00> : vector<16x16xf32>
    %534 = tpu.matmul %22, %520, %cst_186 {dimension_numbers = #tpu.dot_dimension_numbers<[1], [0], [0], [1], [0, 0, 1, 1], [], []>} : vector<16x16xbf16>, vector<16x16xbf16>, vector<16x16xf32> -> vector<16x16xf32>
    %cst_187 = arith.constant dense<0.000000e+00> : vector<16x16xf32>
    %535 = tpu.matmul %25, %520, %cst_187 {dimension_numbers = #tpu.dot_dimension_numbers<[1], [0], [0], [1], [0, 0, 1, 1], [], []>} : vector<16x16xbf16>, vector<16x16xbf16>, vector<16x16xf32> -> vector<16x16xf32>
    %536 = arith.addf %534, %535 : vector<16x16xf32>
    %cst_188 = arith.constant dense<0.000000e+00> : vector<16x16xf32>
    %537 = tpu.matmul %22, %523, %cst_188 {dimension_numbers = #tpu.dot_dimension_numbers<[1], [0], [0], [1], [0, 0, 1, 1], [], []>} : vector<16x16xbf16>, vector<16x16xbf16>, vector<16x16xf32> -> vector<16x16xf32>
    %538 = arith.addf %536, %537 : vector<16x16xf32>
    %539 = arith.subf %528, %533 : vector<16x16xf32>
    %540 = arith.subf %538, %528 : vector<16x16xf32>
    %541 = arith.subf %540, %533 : vector<16x16xf32>
    %542 = arith.truncf %539 : vector<16x16xf32> to vector<16x16xbf16>
    %543 = arith.extf %542 : vector<16x16xbf16> to vector<16x16xf32>
    %544 = arith.subf %539, %543 : vector<16x16xf32>
    %545 = arith.truncf %544 : vector<16x16xf32> to vector<16x16xbf16>
    %546 = arith.truncf %541 : vector<16x16xf32> to vector<16x16xbf16>
    %547 = arith.extf %546 : vector<16x16xbf16> to vector<16x16xf32>
    %548 = arith.subf %541, %547 : vector<16x16xf32>
    %549 = arith.truncf %548 : vector<16x16xf32> to vector<16x16xbf16>
    %550 = arith.addf %539, %541 : vector<16x16xf32>
    %551 = arith.truncf %550 : vector<16x16xf32> to vector<16x16xbf16>
    %552 = arith.extf %551 : vector<16x16xbf16> to vector<16x16xf32>
    %553 = arith.subf %550, %552 : vector<16x16xf32>
    %554 = arith.truncf %553 : vector<16x16xf32> to vector<16x16xbf16>
    %cst_189 = arith.constant dense<0.000000e+00> : vector<16x16xf32>
    %555 = tpu.matmul %542, %31, %cst_189 {dimension_numbers = #tpu.dot_dimension_numbers<[1], [0], [0], [1], [0, 0, 1, 1], [], []>} : vector<16x16xbf16>, vector<16x16xbf16>, vector<16x16xf32> -> vector<16x16xf32>
    %cst_190 = arith.constant dense<0.000000e+00> : vector<16x16xf32>
    %556 = tpu.matmul %545, %31, %cst_190 {dimension_numbers = #tpu.dot_dimension_numbers<[1], [0], [0], [1], [0, 0, 1, 1], [], []>} : vector<16x16xbf16>, vector<16x16xbf16>, vector<16x16xf32> -> vector<16x16xf32>
    %557 = arith.addf %555, %556 : vector<16x16xf32>
    %cst_191 = arith.constant dense<0.000000e+00> : vector<16x16xf32>
    %558 = tpu.matmul %542, %34, %cst_191 {dimension_numbers = #tpu.dot_dimension_numbers<[1], [0], [0], [1], [0, 0, 1, 1], [], []>} : vector<16x16xbf16>, vector<16x16xbf16>, vector<16x16xf32> -> vector<16x16xf32>
    %559 = arith.addf %557, %558 : vector<16x16xf32>
    %cst_192 = arith.constant dense<0.000000e+00> : vector<16x16xf32>
    %560 = tpu.matmul %546, %35, %cst_192 {dimension_numbers = #tpu.dot_dimension_numbers<[1], [0], [0], [1], [0, 0, 1, 1], [], []>} : vector<16x16xbf16>, vector<16x16xbf16>, vector<16x16xf32> -> vector<16x16xf32>
    %cst_193 = arith.constant dense<0.000000e+00> : vector<16x16xf32>
    %561 = tpu.matmul %549, %35, %cst_193 {dimension_numbers = #tpu.dot_dimension_numbers<[1], [0], [0], [1], [0, 0, 1, 1], [], []>} : vector<16x16xbf16>, vector<16x16xbf16>, vector<16x16xf32> -> vector<16x16xf32>
    %562 = arith.addf %560, %561 : vector<16x16xf32>
    %cst_194 = arith.constant dense<0.000000e+00> : vector<16x16xf32>
    %563 = tpu.matmul %546, %38, %cst_194 {dimension_numbers = #tpu.dot_dimension_numbers<[1], [0], [0], [1], [0, 0, 1, 1], [], []>} : vector<16x16xbf16>, vector<16x16xbf16>, vector<16x16xf32> -> vector<16x16xf32>
    %564 = arith.addf %562, %563 : vector<16x16xf32>
    %cst_195 = arith.constant dense<0.000000e+00> : vector<16x16xf32>
    %565 = tpu.matmul %551, %40, %cst_195 {dimension_numbers = #tpu.dot_dimension_numbers<[1], [0], [0], [1], [0, 0, 1, 1], [], []>} : vector<16x16xbf16>, vector<16x16xbf16>, vector<16x16xf32> -> vector<16x16xf32>
    %cst_196 = arith.constant dense<0.000000e+00> : vector<16x16xf32>
    %566 = tpu.matmul %554, %40, %cst_196 {dimension_numbers = #tpu.dot_dimension_numbers<[1], [0], [0], [1], [0, 0, 1, 1], [], []>} : vector<16x16xbf16>, vector<16x16xbf16>, vector<16x16xf32> -> vector<16x16xf32>
    %567 = arith.addf %565, %566 : vector<16x16xf32>
    %cst_197 = arith.constant dense<0.000000e+00> : vector<16x16xf32>
    %568 = tpu.matmul %551, %43, %cst_197 {dimension_numbers = #tpu.dot_dimension_numbers<[1], [0], [0], [1], [0, 0, 1, 1], [], []>} : vector<16x16xbf16>, vector<16x16xbf16>, vector<16x16xf32> -> vector<16x16xf32>
    %569 = arith.addf %567, %568 : vector<16x16xf32>
    %570 = arith.subf %559, %564 : vector<16x16xf32>
    %571 = arith.subf %569, %559 : vector<16x16xf32>
    %572 = arith.subf %571, %564 : vector<16x16xf32>
    %c0_198 = arith.constant 0 : index
    %c3_199 = arith.constant 3 : index
    %c0_200 = arith.constant 0 : index
    %c0_201 = arith.constant 0 : index
    %573 = vector.load %arg4[%c0_198, %c3_199, %c0_200, %c0_201] : memref<1x4x16x16xf32, #tpu.memory_space<vmem>>, vector<1x1x16x16xf32>
    %574 = vector.shape_cast %573 : vector<1x1x16x16xf32> to vector<16x16xf32>
    %575 = arith.subf %570, %574 : vector<16x16xf32>
    %576 = arith.select %7, %575, %8 : vector<16x16xi1>, vector<16x16xf32>
    %c0_202 = arith.constant 0 : index
    %c3_203 = arith.constant 3 : index
    %c0_204 = arith.constant 0 : index
    %c0_205 = arith.constant 0 : index
    %577 = vector.load %arg5[%c0_202, %c3_203, %c0_204, %c0_205] : memref<1x4x16x16xf32, #tpu.memory_space<vmem>>, vector<1x1x16x16xf32>
    %578 = vector.shape_cast %577 : vector<1x1x16x16xf32> to vector<16x16xf32>
    %579 = arith.subf %572, %578 : vector<16x16xf32>
    %580 = arith.select %7, %579, %8 : vector<16x16xi1>, vector<16x16xf32>
    %581 = arith.truncf %576 : vector<16x16xf32> to vector<16x16xbf16>
    %582 = arith.extf %581 : vector<16x16xbf16> to vector<16x16xf32>
    %583 = arith.subf %576, %582 : vector<16x16xf32>
    %584 = arith.truncf %583 : vector<16x16xf32> to vector<16x16xbf16>
    %585 = arith.truncf %580 : vector<16x16xf32> to vector<16x16xbf16>
    %586 = arith.extf %585 : vector<16x16xbf16> to vector<16x16xf32>
    %587 = arith.subf %580, %586 : vector<16x16xf32>
    %588 = arith.truncf %587 : vector<16x16xf32> to vector<16x16xbf16>
    %589 = arith.addf %576, %580 : vector<16x16xf32>
    %590 = arith.truncf %589 : vector<16x16xf32> to vector<16x16xbf16>
    %591 = arith.extf %590 : vector<16x16xbf16> to vector<16x16xf32>
    %592 = arith.subf %589, %591 : vector<16x16xf32>
    %593 = arith.truncf %592 : vector<16x16xf32> to vector<16x16xbf16>
    %cst_206 = arith.constant dense<0.000000e+00> : vector<16x16xf32>
    %594 = tpu.matmul %13, %581, %cst_206 {dimension_numbers = #tpu.dot_dimension_numbers<[1], [0], [0], [1], [0, 0, 1, 1], [], []>} : vector<16x16xbf16>, vector<16x16xbf16>, vector<16x16xf32> -> vector<16x16xf32>
    %cst_207 = arith.constant dense<0.000000e+00> : vector<16x16xf32>
    %595 = tpu.matmul %16, %581, %cst_207 {dimension_numbers = #tpu.dot_dimension_numbers<[1], [0], [0], [1], [0, 0, 1, 1], [], []>} : vector<16x16xbf16>, vector<16x16xbf16>, vector<16x16xf32> -> vector<16x16xf32>
    %596 = arith.addf %594, %595 : vector<16x16xf32>
    %cst_208 = arith.constant dense<0.000000e+00> : vector<16x16xf32>
    %597 = tpu.matmul %13, %584, %cst_208 {dimension_numbers = #tpu.dot_dimension_numbers<[1], [0], [0], [1], [0, 0, 1, 1], [], []>} : vector<16x16xbf16>, vector<16x16xbf16>, vector<16x16xf32> -> vector<16x16xf32>
    %598 = arith.addf %596, %597 : vector<16x16xf32>
    %cst_209 = arith.constant dense<0.000000e+00> : vector<16x16xf32>
    %599 = tpu.matmul %17, %585, %cst_209 {dimension_numbers = #tpu.dot_dimension_numbers<[1], [0], [0], [1], [0, 0, 1, 1], [], []>} : vector<16x16xbf16>, vector<16x16xbf16>, vector<16x16xf32> -> vector<16x16xf32>
    %cst_210 = arith.constant dense<0.000000e+00> : vector<16x16xf32>
    %600 = tpu.matmul %20, %585, %cst_210 {dimension_numbers = #tpu.dot_dimension_numbers<[1], [0], [0], [1], [0, 0, 1, 1], [], []>} : vector<16x16xbf16>, vector<16x16xbf16>, vector<16x16xf32> -> vector<16x16xf32>
    %601 = arith.addf %599, %600 : vector<16x16xf32>
    %cst_211 = arith.constant dense<0.000000e+00> : vector<16x16xf32>
    %602 = tpu.matmul %17, %588, %cst_211 {dimension_numbers = #tpu.dot_dimension_numbers<[1], [0], [0], [1], [0, 0, 1, 1], [], []>} : vector<16x16xbf16>, vector<16x16xbf16>, vector<16x16xf32> -> vector<16x16xf32>
    %603 = arith.addf %601, %602 : vector<16x16xf32>
    %cst_212 = arith.constant dense<0.000000e+00> : vector<16x16xf32>
    %604 = tpu.matmul %27, %590, %cst_212 {dimension_numbers = #tpu.dot_dimension_numbers<[1], [0], [0], [1], [0, 0, 1, 1], [], []>} : vector<16x16xbf16>, vector<16x16xbf16>, vector<16x16xf32> -> vector<16x16xf32>
    %cst_213 = arith.constant dense<0.000000e+00> : vector<16x16xf32>
    %605 = tpu.matmul %30, %590, %cst_213 {dimension_numbers = #tpu.dot_dimension_numbers<[1], [0], [0], [1], [0, 0, 1, 1], [], []>} : vector<16x16xbf16>, vector<16x16xbf16>, vector<16x16xf32> -> vector<16x16xf32>
    %606 = arith.addf %604, %605 : vector<16x16xf32>
    %cst_214 = arith.constant dense<0.000000e+00> : vector<16x16xf32>
    %607 = tpu.matmul %27, %593, %cst_214 {dimension_numbers = #tpu.dot_dimension_numbers<[1], [0], [0], [1], [0, 0, 1, 1], [], []>} : vector<16x16xbf16>, vector<16x16xbf16>, vector<16x16xf32> -> vector<16x16xf32>
    %608 = arith.addf %606, %607 : vector<16x16xf32>
    %609 = arith.addf %598, %603 : vector<16x16xf32>
    %610 = arith.subf %608, %598 : vector<16x16xf32>
    %611 = arith.addf %610, %603 : vector<16x16xf32>
    %612 = arith.truncf %609 : vector<16x16xf32> to vector<16x16xbf16>
    %613 = arith.extf %612 : vector<16x16xbf16> to vector<16x16xf32>
    %614 = arith.subf %609, %613 : vector<16x16xf32>
    %615 = arith.truncf %614 : vector<16x16xf32> to vector<16x16xbf16>
    %616 = arith.truncf %611 : vector<16x16xf32> to vector<16x16xbf16>
    %617 = arith.extf %616 : vector<16x16xbf16> to vector<16x16xf32>
    %618 = arith.subf %611, %617 : vector<16x16xf32>
    %619 = arith.truncf %618 : vector<16x16xf32> to vector<16x16xbf16>
    %620 = arith.addf %609, %611 : vector<16x16xf32>
    %621 = arith.truncf %620 : vector<16x16xf32> to vector<16x16xbf16>
    %622 = arith.extf %621 : vector<16x16xbf16> to vector<16x16xf32>
    %623 = arith.subf %620, %622 : vector<16x16xf32>
    %624 = arith.truncf %623 : vector<16x16xf32> to vector<16x16xbf16>
    %cst_215 = arith.constant dense<0.000000e+00> : vector<16x16xf32>
    %625 = tpu.matmul %612, %31, %cst_215 {dimension_numbers = #tpu.dot_dimension_numbers<[1], [0], [0], [1], [0, 0, 1, 1], [], []>} : vector<16x16xbf16>, vector<16x16xbf16>, vector<16x16xf32> -> vector<16x16xf32>
    %cst_216 = arith.constant dense<0.000000e+00> : vector<16x16xf32>
    %626 = tpu.matmul %615, %31, %cst_216 {dimension_numbers = #tpu.dot_dimension_numbers<[1], [0], [0], [1], [0, 0, 1, 1], [], []>} : vector<16x16xbf16>, vector<16x16xbf16>, vector<16x16xf32> -> vector<16x16xf32>
    %627 = arith.addf %625, %626 : vector<16x16xf32>
    %cst_217 = arith.constant dense<0.000000e+00> : vector<16x16xf32>
    %628 = tpu.matmul %612, %34, %cst_217 {dimension_numbers = #tpu.dot_dimension_numbers<[1], [0], [0], [1], [0, 0, 1, 1], [], []>} : vector<16x16xbf16>, vector<16x16xbf16>, vector<16x16xf32> -> vector<16x16xf32>
    %629 = arith.addf %627, %628 : vector<16x16xf32>
    %cst_218 = arith.constant dense<0.000000e+00> : vector<16x16xf32>
    %630 = tpu.matmul %616, %35, %cst_218 {dimension_numbers = #tpu.dot_dimension_numbers<[1], [0], [0], [1], [0, 0, 1, 1], [], []>} : vector<16x16xbf16>, vector<16x16xbf16>, vector<16x16xf32> -> vector<16x16xf32>
    %cst_219 = arith.constant dense<0.000000e+00> : vector<16x16xf32>
    %631 = tpu.matmul %619, %35, %cst_219 {dimension_numbers = #tpu.dot_dimension_numbers<[1], [0], [0], [1], [0, 0, 1, 1], [], []>} : vector<16x16xbf16>, vector<16x16xbf16>, vector<16x16xf32> -> vector<16x16xf32>
    %632 = arith.addf %630, %631 : vector<16x16xf32>
    %cst_220 = arith.constant dense<0.000000e+00> : vector<16x16xf32>
    %633 = tpu.matmul %616, %38, %cst_220 {dimension_numbers = #tpu.dot_dimension_numbers<[1], [0], [0], [1], [0, 0, 1, 1], [], []>} : vector<16x16xbf16>, vector<16x16xbf16>, vector<16x16xf32> -> vector<16x16xf32>
    %634 = arith.addf %632, %633 : vector<16x16xf32>
    %cst_221 = arith.constant dense<0.000000e+00> : vector<16x16xf32>
    %635 = tpu.matmul %621, %45, %cst_221 {dimension_numbers = #tpu.dot_dimension_numbers<[1], [0], [0], [1], [0, 0, 1, 1], [], []>} : vector<16x16xbf16>, vector<16x16xbf16>, vector<16x16xf32> -> vector<16x16xf32>
    %cst_222 = arith.constant dense<0.000000e+00> : vector<16x16xf32>
    %636 = tpu.matmul %624, %45, %cst_222 {dimension_numbers = #tpu.dot_dimension_numbers<[1], [0], [0], [1], [0, 0, 1, 1], [], []>} : vector<16x16xbf16>, vector<16x16xbf16>, vector<16x16xf32> -> vector<16x16xf32>
    %637 = arith.addf %635, %636 : vector<16x16xf32>
    %cst_223 = arith.constant dense<0.000000e+00> : vector<16x16xf32>
    %638 = tpu.matmul %621, %48, %cst_223 {dimension_numbers = #tpu.dot_dimension_numbers<[1], [0], [0], [1], [0, 0, 1, 1], [], []>} : vector<16x16xbf16>, vector<16x16xbf16>, vector<16x16xf32> -> vector<16x16xf32>
    %639 = arith.addf %637, %638 : vector<16x16xf32>
    %640 = arith.addf %629, %634 : vector<16x16xf32>
    %641 = arith.subf %639, %629 : vector<16x16xf32>
    %642 = arith.addf %641, %634 : vector<16x16xf32>
    %643 = arith.mulf %502, %640 : vector<16x16xf32>
    %644 = arith.mulf %504, %642 : vector<16x16xf32>
    %645 = arith.addf %643, %644 : vector<16x16xf32>
    %646 = arith.addf %496, %645 : vector<16x16xf32>
    %647 = arith.mulf %502, %642 : vector<16x16xf32>
    %648 = arith.mulf %504, %640 : vector<16x16xf32>
    %649 = arith.subf %647, %648 : vector<16x16xf32>
    %650 = arith.addf %500, %649 : vector<16x16xf32>
    %c0_224 = arith.constant 0 : index
    %651 = memref.load %arg1[%c0_224] : memref<1xf32, #tpu.memory_space<smem>>
    %652 = vector.broadcast %651 : f32 to vector<16x16xf32>
    %653 = arith.mulf %652, %646 : vector<16x16xf32>
    %654 = arith.subf %1, %653 : vector<16x16xf32>
    %c0_225 = arith.constant 0 : index
    %c0_226 = arith.constant 0 : index
    %c0_227 = arith.constant 0 : index
    %655 = vector.load %arg13[%c0_225, %c0_226, %c0_227] : memref<1x16x16xf32, #tpu.memory_space<vmem>>, vector<1x16x16xf32>
    %656 = vector.shape_cast %655 : vector<1x16x16xf32> to vector<16x16xf32>
    %657 = vector.shape_cast %654 : vector<16x16xf32> to vector<1x16x16xf32>
    tpu.vector_store %arg13[%c0_225, %c0_226, %c0_227], %657 {strides = array<i32>} : memref<1x16x16xf32, #tpu.memory_space<vmem>>, vector<1x16x16xf32>,
    %658 = vector.broadcast %651 : f32 to vector<16x16xf32>
    %659 = arith.mulf %658, %650 : vector<16x16xf32>
    %660 = arith.subf %3, %659 : vector<16x16xf32>
    %c0_228 = arith.constant 0 : index
    %c0_229 = arith.constant 0 : index
    %c0_230 = arith.constant 0 : index
    %661 = vector.load %arg14[%c0_228, %c0_229, %c0_230] : memref<1x16x16xf32, #tpu.memory_space<vmem>>, vector<1x16x16xf32>
    %662 = vector.shape_cast %661 : vector<1x16x16xf32> to vector<16x16xf32>
    %663 = vector.shape_cast %660 : vector<16x16xf32> to vector<1x16x16xf32>
    tpu.vector_store %arg14[%c0_228, %c0_229, %c0_230], %663 {strides = array<i32>} : memref<1x16x16xf32, #tpu.memory_space<vmem>>, vector<1x16x16xf32>,
    return
  }
  func.func @transform_0(%arg0: i32) -> i32 {
    %c0_i32 = arith.constant 0 : i32
    %c0_i32_0 = arith.constant 0 : i32
    return %c0_i32 : i32
  }
  func.func @transform_1(%arg0: i32) -> (i32, i32, i32) {
    %c0_i32 = arith.constant 0 : i32
    %c0_i32_0 = arith.constant 0 : i32
    %c0_i32_1 = arith.constant 0 : i32
    return %arg0, %c0_i32, %c0_i32_0 : i32, i32, i32
  }
  func.func @transform_2(%arg0: i32) -> (i32, i32, i32) {
    %c0_i32 = arith.constant 0 : i32
    %c0_i32_0 = arith.constant 0 : i32
    %c0_i32_1 = arith.constant 0 : i32
    return %arg0, %c0_i32, %c0_i32_0 : i32, i32, i32
  }
  func.func @transform_3(%arg0: i32) -> (i32, i32, i32, i32) {
    %c0_i32 = arith.constant 0 : i32
    %c0_i32_0 = arith.constant 0 : i32
    %c0_i32_1 = arith.constant 0 : i32
    %c0_i32_2 = arith.constant 0 : i32
    return %arg0, %c0_i32, %c0_i32_0, %c0_i32_1 : i32, i32, i32, i32
  }
  func.func @transform_4(%arg0: i32) -> (i32, i32, i32, i32) {
    %c0_i32 = arith.constant 0 : i32
    %c0_i32_0 = arith.constant 0 : i32
    %c0_i32_1 = arith.constant 0 : i32
    %c0_i32_2 = arith.constant 0 : i32
    return %arg0, %c0_i32, %c0_i32_0, %c0_i32_1 : i32, i32, i32, i32
  }
  func.func @transform_5(%arg0: i32) -> (i32, i32, i32) {
    %c0_i32 = arith.constant 0 : i32
    %c0_i32_0 = arith.constant 0 : i32
    %c0_i32_1 = arith.constant 0 : i32
    return %arg0, %c0_i32, %c0_i32_0 : i32, i32, i32
  }
  func.func @transform_6(%arg0: i32) -> (i32, i32, i32, i32) {
    %c0_i32 = arith.constant 0 : i32
    %c0_i32_0 = arith.constant 0 : i32
    %c0_i32_1 = arith.constant 0 : i32
    %c0_i32_2 = arith.constant 0 : i32
    return %arg0, %c0_i32, %c0_i32_0, %c0_i32_1 : i32, i32, i32, i32
  }
  func.func @transform_7(%arg0: i32) -> (i32, i32, i32, i32) {
    %c0_i32 = arith.constant 0 : i32
    %c0_i32_0 = arith.constant 0 : i32
    %c0_i32_1 = arith.constant 0 : i32
    %c0_i32_2 = arith.constant 0 : i32
    return %arg0, %c0_i32, %c0_i32_0, %c0_i32_1 : i32, i32, i32, i32
  }
  func.func @transform_8(%arg0: i32) -> (i32, i32) {
    %c0_i32 = arith.constant 0 : i32
    %c0_i32_0 = arith.constant 0 : i32
    %c0_i32_1 = arith.constant 0 : i32
    return %c0_i32, %c0_i32_0 : i32, i32
  }
  func.func @transform_9(%arg0: i32) -> (i32, i32) {
    %c0_i32 = arith.constant 0 : i32
    %c0_i32_0 = arith.constant 0 : i32
    %c0_i32_1 = arith.constant 0 : i32
    return %c0_i32, %c0_i32_0 : i32, i32
  }
  func.func @transform_10(%arg0: i32) -> (i32, i32) {
    %c0_i32 = arith.constant 0 : i32
    %c0_i32_0 = arith.constant 0 : i32
    %c0_i32_1 = arith.constant 0 : i32
    return %c0_i32, %c0_i32_0 : i32, i32
  }
  func.func @transform_11(%arg0: i32) -> (i32, i32) {
    %c0_i32 = arith.constant 0 : i32
    %c0_i32_0 = arith.constant 0 : i32
    %c0_i32_1 = arith.constant 0 : i32
    return %c0_i32, %c0_i32_0 : i32, i32
  }
  func.func @transform_12(%arg0: i32) -> (i32, i32, i32) {
    %c0_i32 = arith.constant 0 : i32
    %c0_i32_0 = arith.constant 0 : i32
    %c0_i32_1 = arith.constant 0 : i32
    return %arg0, %c0_i32, %c0_i32_0 : i32, i32, i32
  }
  func.func @transform_13(%arg0: i32) -> (i32, i32, i32) {
    %c0_i32 = arith.constant 0 : i32
    %c0_i32_0 = arith.constant 0 : i32
    %c0_i32_1 = arith.constant 0 : i32
    return %arg0, %c0_i32, %c0_i32_0 : i32, i32, i32
  }
}

</mosaic_0001>

<bundles_post_ra>
// kernel: tpu_custom_call.1
= control target key start
LH: loop header
LB: loop body
LE: loop exit
PB: predicated region body
PF: predicated region fallthrough
CT: control target
= control target key end

     0   :  { %s11962_s0 = inlined_call_operand.<no memory space> [shape: f32[1], index: 0, kind: input, shape index: {}]   ;;  %s11963_s1 = inlined_call_operand.hbm [shape: f32[2,16,16], index: 1, kind: input, shape index: {}]   ;;  %s11964_s2 = inlined_call_operand.hbm [shape: f32[2,16,16], index: 2, kind: input, shape index: {}]   ;;  %s11965_s3 = inlined_call_operand.hbm [shape: f32[2,4,16,16], index: 3, kind: input, shape index: {}]   ;;  %s11966_s4 = inlined_call_operand.hbm [shape: f32[2,4,16,16], index: 4, kind: input, shape index: {}]   ;;  %s11967_s5 = inlined_call_operand.hbm [shape: f32[2,16,16], index: 5, kind: input, shape index: {}]   ;;  %s11968_s6 = inlined_call_operand.hbm [shape: f32[2,4,16,16], index: 6, kind: input, shape index: {}]   ;;  %s11969_s7 = inlined_call_operand.hbm [shape: f32[2,4,16,16], index: 7, kind: input, shape index: {}]   ;;  %s11970_s8 = inlined_call_operand.vmem [shape: f32[16,16], index: 8, kind: input, shape index: {}]   ;;  %s11971_s9 = inlined_call_operand.vmem [shape: f32[16,16], index: 9, kind: input, shape index: {}]   ;;  %s11972_s10 = inlined_call_operand.hbm [shape: f32[16,16], index: 10, kind: input, shape index: {}]   ;;  %s11973_s11 = inlined_call_operand.hbm [shape: f32[16,16], index: 11, kind: input, shape index: {}]   ;;  %s11974_s12 = inlined_call_operand.hbm [shape: f32[2,16,16], index: 12, kind: output, shape index: {0}]   ;;  %s11975_s13 = inlined_call_operand.hbm [shape: f32[2,16,16], index: 13, kind: output, shape index: {1}]  }
   0x1   :  { %12007 = sst [smem:[#allocation36_spill]] %s11964_s2 }
   0x2   :  { %12008 = sst [smem:[#allocation37_spill]] %s11966_s4 }
   0x3   :  { %12009 = sst [smem:[#allocation38_spill]] %s11968_s6 }
   0x4   :  { %12010 = sst [smem:[#allocation39_spill]] %s11970_s8 }
   0x5   :  { %12011 = sst [smem:[#allocation40_spill]] %s11971_s9 }
   0x6   :  { %12012 = sst [smem:[#allocation41_spill]] %s11972_s10 }
   0x7   :  { %12013 = sst [smem:[#allocation42_spill]] %s11974_s12 }
   0x8   :  { %12014 = sst [smem:[#allocation43_spill]] %s11975_s13 }
   0x9   :  { %19 = sst [smem:[#allocation2]] %s11962_s0 }
   0xa   :  { %20 = vsyncpa [#allocation4], 0 }
   0xb   :  { %22 = vsyncpa [#allocation4 + $0x1], 0 }
   0xc   :  { %23 = vsyncpa [#allocation7], 0 }
   0xd   :  { %25 = vsyncpa [#allocation7 + $0x1], 0 }
   0xe   :  { %26 = vsyncpa [#allocation10], 0 }
   0xf   :  { %28 = vsyncpa [#allocation10 + $0x1], 0 }
  0x10   :  { %29 = vsyncpa [#allocation13], 0 }
  0x11   :  { %31 = vsyncpa [#allocation13 + $0x1], 0 }
  0x12   :  { %32 = vsyncpa [#allocation16], 0 }
  0x13   :  { %33 = vsyncpa [#allocation5], 0 }
  0x14   :  { %35 = vsyncpa [#allocation5 + $0x1], 0 }
  0x15   :  { %36 = vsyncpa [#allocation20], 0 }
  0x16   :  { %38 = vsyncpa [#allocation20 + $0x1], 0  ;;  %s10274_s27 = smov 0   ;;  %s10276_s28 = smov 0  }
  0x17   :  { %s10278_s29 = smov 0   ;;  %s10280_s0 = smov 0  }
  0x18 LB: > { %12015 = sst [smem:[#allocation28_spill]] %s10170_s27  ;;  %s10295_s30 = sadd.s32 4294967295, %s10182_s0   ;;  %s10182_s0 = sphi %s10280_s0, %s12066_s0   ;;  %s10178_s29 = sphi %s10278_s29, %s12068_s29   ;;  %s10174_s28 = sphi %s10276_s28, %s12070_s28   ;;  %s10170_s27 = sphi %s10274_s27, %s12069_s27  }
  0x19   : > { %12016 = sst [smem:[#allocation29_spill]] %s10178_s29  ;;  %s7879_s14 = sadd.s32 4294967294, %s10182_s0  }
  0x1a   : > { %12017 = sst [smem:[#allocation30_spill]] %s10295_s30  ;;  %s10299_s15 = sadd.s32 1, %s10182_s0  }
  0x1b   : > { %12018 = sst [smem:[#allocation31_spill]] %s10299_s15  ;;  %s72_s16 = sadd.s32 1, %s10178_s29 }
  0x1c   : > { %s69_s17 = ssub.s32 %s10182_s0, %s10299_s15  ;;  %p79_p0 = scmp.ne.s32.totalorder %s10178_s29, %s10174_s28 }
  0x1d   : > { %p70_p1 = scmp.eq.s32.totalorder %s69_s17, 0  ;;  %p80_p2 = scmp.eq.s32.totalorder %s10182_s0, 0 }
  0x1e   : > { %p85_p3 = scmp.ne.s32.totalorder %s10174_s28, %s10170_s27  ;;  %p11982_p4 = scmp.eq.s32.totalorder %s10295_s30, 0 }
  0x1f   : > { %s10311_s18 = scalar_select %p70_p1, %s10178_s29, %s72_s16  }
  0x20   : > { %p10313_p5 = por %p80_p2, %p79_p0  ;;  %p10319_p6 = por %p11982_p4, %p85_p3 }
  0x21   : > { %12019 = sst [smem:[#allocation32_spill]] %s10311_s18  ;;  %p349_p7 = scmp.eq.s32.totalorder %s10295_s30, 1 }
  0x22   : > { %s12020_s19 = scalar_select %p10313_p5, 1, 0 }
  0x23   : > { %s12021_s20 = scalar_select %p10319_p6, 1, 0 }
  0x24   : > { %p355_p8 = scmp.eq.s32.totalorder %s7879_s14, 1  ;;  %p7880_p9 = scmp.ge.s32.totalorder %s10182_s0, 1 }
  0x25   : > { %12022 = sst [smem:[#allocation33_spill]] %s12021_s20  ;;  %p388_p10 = scmp.lt.s32.totalorder %s10182_s0, 3 }
  0x26   : > { %p10326_p11 = por %p349_p7, %p79_p0  ;;  %p10330_p12 = por %p355_p8, %p85_p3 }
  0x27   : > { %p10334_p13 = pnand %p7880_p9, %p388_p10  ;;  %s10184_s24 = smov [#allocation15]  }
  0x28   : > { %s12023_s21 = scalar_select %p10326_p11, 1, 0 }
  0x29   : > { %s12025_s22 = scalar_select %p10330_p12, 1, 0 }
  0x2a   : > { %12024 = sst [smem:[#allocation34_spill]] %s12023_s21  ;;  %p9712_p1 = pneg %p10334_p13 }
  0x2b   : > { %12026 = sst [smem:[#allocation35_spill]] %s12025_s22  ;;  %s409_s25 = sshll.u32 %s10184_s24, 4  ;;  %s410_s25 = int_to_ptr.vmem [resolvable:$true] %s409_s25 }
  0x2c   : > { %s12027_s23 = scalar_select %p10334_p13, 1, 0 }
  0x2d   : > { %p10342_p2 = pnand %p9712_p1, %p11982_p4  ;;  %s10349_s14 = sand.u32 1, %s10178_s29  }
  0x2e   : > { %s10352_s16 = sshll.u32 %s10349_s14, 4  ;;  %s12029_s10 = sld [smem:[#allocation41_spill]] }
  0x2f   : > { %s12028_s26 = scalar_select %p10342_p2, 1, 0 }
  0x30   : > { %p11994_p8 = pneg %p10342_p2 }
  0x34   : > { %s9802_s15 = scalar_lea.hbm %s12029_s10, 256 }
  0x35   : > { %p9803_p7 = scmp.ne.s32.totalorder %s12029_s10, %s9802_s15  ;;  %p9809_p1 = scmp.lt.u32.totalorder %s9802_s15, %s12029_s10 }
  0x37   : > { %p9805_p9 = pnand %p11994_p8, %p9803_p7 }
  0x39   : > { %p9806_p10 = pneg %p9805_p9 }
  0x3b   : > { %p9811_p0 = pnand %p9809_p1, %p9806_p10 }
  0x3d   : > { %9814 = shalt.err (!%p9811_p0)
}
  0x3e   : > { %s9815_s13 = scalar_lea.vmem %s410_s25, 256  ;;  %p9823_p11 = scmp.lt.s32.totalorder %s410_s25, %s410_s25 }
  0x3f   : > { %p9816_p4 = scmp.ne.s32.totalorder %s410_s25, %s9815_s13  ;;  %p9824_p6 = scmp.lt.s32.totalorder %s9815_s13, %s9815_s13 }
  0x41   : > { %p9818_p3 = pnand %p9816_p4, %p11994_p8  ;;  %p9825_p13 = por %p9824_p6, %p9823_p11 }
  0x43   : > { %p9819_p12 = pneg %p9818_p3 }
  0x45   : > { %p9826_p5 = pnand %p9825_p13, %p9819_p12 }
  0x47   : > { %9829 = shalt.err (!%p9826_p5)
}
  0x48   : > { %s11989_s18 = smov 128   ;;  %s11991_s27 = smov 8  }
  0x49   : > { %9715 = dma.hbm_to_vmem [thread:$0]  (!%p10342_p2), %s12029_s10, 256, %s410_s25, [#allocation16], %s11989_s18, %s11989_s18, %s11991_s27  }
  0x4a   : > { %p12030_p4 = scmp.ne.s32.totalorder %s12020_s19, 0  ;;  %p12031_p6 = scmp.lt.s32.totalorder %s10182_s0, 2 }
  0x4b   : > { %s10388_s22 = sshll.u32 %s10182_s0, 8  ;;  %s10391_s17 = sand.u32 1, %s10182_s0  }
  0x4c   : > { %p10383_p5 = pnand %p12031_p6, %p12030_p4  ;;  %s12033_s2 = sld [smem:[#allocation36_spill]] }
  0x4d   : > { %s461_s19 = scalar_lea.vmem [#allocation6], %s10352_s16  ;;  %s10403_s29 = sshll.u32 %s10349_s14, 6 }
  0x4e   : > { %s12032_s13 = scalar_select %p10383_p5, 1, 0 }
  0x4f   : > { %s468_s25 = sshll.u32 %s461_s19, 4  ;;  %p10410_p12 = pneg %p10383_p5  ;;  %s10400_s25 = int_to_ptr.vmem [resolvable:$true] %s468_s25 }
  0x51   : > { %s12034_s27 = scalar_select %p10410_p12, 1, 0 }
  0x52   : > { %s10397_s12 = scalar_lea.hbm %s12033_s2, %s10388_s22  ;;  %s9835_s19 = scalar_lea.hbm %s12033_s2, 512 }
  0x53   : > { %s9830_s18 = scalar_lea.hbm %s10397_s12, 256  ;;  %p9836_p3 = scmp.lt.u32.totalorder %s10397_s12, %s12033_s2 }
  0x54   : > { %p9831_p11 = scmp.ne.s32.totalorder %s10397_s12, %s9830_s18  ;;  %p9837_p7 = scmp.lt.u32.totalorder %s9835_s19, %s9830_s18 }
  0x55   : > { %p9839_p10 = scmp.lt.u32.totalorder %s9830_s18, %s10397_s12 }
  0x56   : > { %p9833_p13 = pnand %p10410_p12, %p9831_p11  ;;  %p9838_p9 = por %p9837_p7, %p9836_p3 }
  0x58   : > { %p9834_p0 = pneg %p9833_p13  ;;  %p9840_p1 = por %p9839_p10, %p9838_p9 }
  0x5a   : > { %p9841_p4 = pnand %p9840_p1, %p9834_p0 }
  0x5c   : > { %9844 = shalt.err (!%p9841_p4)
}
  0x5d   : > { %s9845_s15 = scalar_lea.vmem %s10400_s25, 256  ;;  %s10187_s21 = smov [#allocation6]  }
  0x5e   : > { %p9846_p6 = scmp.ne.s32.totalorder %s10400_s25, %s9845_s15  ;;  %s9850_s24 = sshll.u32 %s10187_s21, 4  ;;  %s9851_s24 = int_to_ptr.vmem [resolvable:$false] %s9850_s24 }
  0x5f   : > { %s9852_s9 = scalar_lea.vmem %s9851_s24, 512  ;;  %p9853_p8 = scmp.lt.s32.totalorder %s10400_s25, %s9851_s24 }
  0x60   : > { %p9848_p11 = pnand %p9846_p6, %p10410_p12  ;;  %p9854_p2 = scmp.lt.s32.totalorder %s9852_s9, %s9845_s15 }
  0x62   : > { %p9849_p13 = pneg %p9848_p11  ;;  %p9855_p3 = por %p9854_p2, %p9853_p8 }
  0x64   : > { %p9856_p7 = pnand %p9855_p3, %p9849_p13 }
  0x66   : > { %9859 = shalt.err (!%p9856_p7)
}
  0x67   : > { %s12035_s10 = smov 8   ;;  %s12036_s18 = smov 128  }
  0x68   : > { %s12037_s19 = scalar_lea.sflag [#allocation7], %s10391_s17  ;;  %s10439_s21 = sshll.u32 %s10182_s0, 10 }
  0x69   : > { %9725 = dma.hbm_to_vmem [thread:$0]  (!%p10383_p5), %s10397_s12, 256, %s10400_s25, %s12037_s19, %s12036_s18, %s12036_s18, %s12035_s10  }
  0x6a   : > { %s12038_s4 = sld [smem:[#allocation37_spill]]  ;;  %s503_s2 = scalar_lea.vmem [#allocation9], %s10403_s29 }
  0x6b   : > { %s510_s8 = sshll.u32 %s503_s2, 4  ;;  %s12002_s30 = scalar_lea.sflag [#allocation10], %s10391_s17  ;;  %s10448_s8 = int_to_ptr.vmem [resolvable:$true] %s510_s8 }
  0x70   : > { %s10445_s9 = scalar_lea.hbm %s12038_s4, %s10439_s21  ;;  %s9865_s19 = scalar_lea.hbm %s12038_s4, 2048 }
  0x71   : > { %s9860_s20 = scalar_lea.hbm %s10445_s9, 1024  ;;  %p9866_p9 = scmp.lt.u32.totalorder %s10445_s9, %s12038_s4 }
  0x72   : > { %p9861_p2 = scmp.ne.s32.totalorder %s10445_s9, %s9860_s20  ;;  %p9867_p10 = scmp.lt.u32.totalorder %s9865_s19, %s9860_s20 }
  0x73   : > { %p9869_p4 = scmp.lt.u32.totalorder %s9860_s20, %s10445_s9 }
  0x74   : > { %p9863_p8 = pnand %p9861_p2, %p10410_p12  ;;  %p9868_p1 = por %p9867_p10, %p9866_p9 }
  0x76   : > { %p9864_p0 = pneg %p9863_p8  ;;  %p9870_p6 = por %p9869_p4, %p9868_p1 }
  0x78   : > { %p9871_p11 = pnand %p9870_p6, %p9864_p0 }
  0x7a   : > { %9874 = shalt.err (!%p9871_p11)
}
  0x7b   : > { %s9875_s2 = scalar_lea.vmem %s10448_s8, 1024  ;;  %s10188_s12 = smov [#allocation9]  }
  0x7c   : > { %p9876_p13 = scmp.ne.s32.totalorder %s10448_s8, %s9875_s2  ;;  %s9880_s25 = sshll.u32 %s10188_s12, 4  ;;  %s9881_s25 = int_to_ptr.vmem [resolvable:$false] %s9880_s25 }
  0x7d   : > { %s9882_s15 = scalar_lea.vmem %s9881_s25, 2048  ;;  %p9883_p2 = scmp.lt.s32.totalorder %s10448_s8, %s9881_s25 }
  0x7e   : > { %p9878_p3 = pnand %p9876_p13, %p10410_p12  ;;  %p9884_p8 = scmp.lt.s32.totalorder %s9882_s15, %s9875_s2 }
  0x80   : > { %p9879_p7 = pneg %p9878_p3  ;;  %p9885_p9 = por %p9884_p8, %p9883_p2 }
  0x82   : > { %p9886_p10 = pnand %p9885_p9, %p9879_p7 }
  0x84   : > { %9889 = shalt.err (!%p9886_p10)
}
  0x85   : > { %9731 = dma.hbm_to_vmem [thread:$0]  (!%p10383_p5), %s10445_s9, 1024, %s10448_s8, %s12002_s30, %s12036_s18, %s12036_s18, %s12035_s10  }
  0x86   : > { %s12039_s6 = sld [smem:[#allocation38_spill]]  ;;  %s545_s2 = scalar_lea.vmem [#allocation12], %s10403_s29 }
  0x87   : > { %s552_s12 = sshll.u32 %s545_s2, 4  ;;  %s542_s25 = scalar_lea.sflag [#allocation13], %s10391_s17  ;;  %s10484_s12 = int_to_ptr.vmem [resolvable:$true] %s552_s12 }
  0x8c   : > { %s10481_s24 = scalar_lea.hbm %s12039_s6, %s10439_s21  ;;  %s9895_s20 = scalar_lea.hbm %s12039_s6, 2048 }
  0x8d   : > { %s9890_s15 = scalar_lea.hbm %s10481_s24, 1024  ;;  %p9896_p6 = scmp.lt.u32.totalorder %s10481_s24, %s12039_s6 }
  0x8e   : > { %p9891_p0 = scmp.ne.s32.totalorder %s10481_s24, %s9890_s15  ;;  %p9897_p11 = scmp.lt.u32.totalorder %s9895_s20, %s9890_s15 }
  0x8f   : > { %p9899_p3 = scmp.lt.u32.totalorder %s9890_s15, %s10481_s24 }
  0x90   : > { %p9893_p1 = pnand %p9891_p0, %p10410_p12  ;;  %p9898_p13 = por %p9897_p11, %p9896_p6 }
  0x92   : > { %p9894_p4 = pneg %p9893_p1  ;;  %p9900_p7 = por %p9899_p3, %p9898_p13 }
  0x94   : > { %p9901_p2 = pnand %p9900_p7, %p9894_p4 }
  0x96   : > { %9904 = shalt.err (!%p9901_p2)
}
  0x97   : > { %s9905_s2 = scalar_lea.vmem %s10484_s12, 1024  ;;  %s10189_s8 = smov [#allocation12]  }
  0x98   : > { %p9906_p8 = scmp.ne.s32.totalorder %s10484_s12, %s9905_s2  ;;  %s9910_s9 = sshll.u32 %s10189_s8, 4  ;;  %s9911_s9 = int_to_ptr.vmem [resolvable:$false] %s9910_s9 }
  0x99   : > { %s9912_s30 = scalar_lea.vmem %s9911_s9, 2048  ;;  %p9913_p0 = scmp.lt.s32.totalorder %s10484_s12, %s9911_s9 }
  0x9a   : > { %p9908_p9 = pnand %p9906_p8, %p10410_p12  ;;  %p9914_p1 = scmp.lt.s32.totalorder %s9912_s30, %s9905_s2 }
  0x9c   : > { %p9909_p10 = pneg %p9908_p9  ;;  %p9915_p6 = por %p9914_p1, %p9913_p0 }
  0x9e   : > { %p9916_p11 = pnand %p9915_p6, %p9909_p10 }
  0xa0   : > { %9919 = shalt.err (!%p9916_p11)
}
  0xa1   : > { %9737 = dma.hbm_to_vmem [thread:$0]  (!%p10383_p5), %s10481_s24, 1024, %s10484_s12, %s542_s25, %s12036_s18, %s12036_s18, %s12035_s10  }
  0xa2   : > { %s10190_s15 = smov [#allocation17]   ;;  %s9920_s2 = scalar_lea.hbm %s11973_s11, 256 }
  0xa3   : > { %s422_s20 = sshll.u32 %s10190_s15, 4  ;;  %p9921_p4 = scmp.ne.s32.totalorder %s11973_s11, %s9920_s2  ;;  %s423_s20 = int_to_ptr.vmem [resolvable:$true] %s422_s20 }
  0xa4   : > { %p12040_p13 = scmp.ne.s32.totalorder %s12028_s26, 0  ;;  %p9927_p8 = scmp.lt.u32.totalorder %s9920_s2, %s11973_s11 }
  0xa6   : > { %p12041_p3 = pneg %p12040_p13 }
  0xa8   : > { %p9923_p7 = pnand %p9921_p4, %p12041_p3 }
  0xaa   : > { %p9924_p2 = pneg %p9923_p7 }
  0xac   : > { %p9929_p9 = pnand %p9927_p8, %p9924_p2 }
  0xae   : > { %9932 = shalt.err (!%p9929_p9)
}
  0xaf   : > { %s9933_s24 = scalar_lea.vmem %s423_s20, 256  ;;  %p12042_p0 = pmov %p12041_p3 }
  0xb0   : > { %p9934_p10 = scmp.ne.s32.totalorder %s423_s20, %s9933_s24  ;;  %p9941_p11 = scmp.lt.s32.totalorder %s423_s20, %s423_s20 }
  0xb1   : > { %p9942_p5 = scmp.lt.s32.totalorder %s9933_s24, %s9933_s24 }
  0xb2   : > { %p9936_p1 = pnand %p9934_p10, %p12042_p0 }
  0xb3   : > { %p9943_p12 = por %p9942_p5, %p9941_p11 }
  0xb4   : > { %p9937_p6 = pneg %p9936_p1 }
  0xb6   : > { %p9944_p3 = pnand %p9943_p12, %p9937_p6 }
  0xb8   : > { %9947 = shalt.err (!%p9944_p3)
}
  0xb9   : > { %9718 = dma.hbm_to_vmem [thread:$0]  (!%p12040_p13), %s11973_s11, 256, %s423_s20, [#allocation16], %s12036_s18, %s12036_s18, %s12035_s10  }
  0xba   : > { %s10540_s19 = scalar_lea.hbm %s11963_s1, %s10388_s22  ;;  %s440_s26 = scalar_lea.vmem [#allocation3], %s10352_s16 }
  0xbb   : > { %s447_s8 = sshll.u32 %s440_s26, 4  ;;  %s437_s2 = scalar_lea.sflag [#allocation4], %s10349_s14  ;;  %s10543_s8 = int_to_ptr.vmem [resolvable:$true] %s447_s8 }
  0xbc   : > { %s9948_s9 = scalar_lea.hbm %s10540_s19, 256  ;;  %p12043_p12 = scmp.ne.s32.totalorder %s12034_s27, 0 }
  0xbd   : > { %p9949_p5 = scmp.ne.s32.totalorder %s10540_s19, %s9948_s9  ;;  %s9953_s24 = scalar_lea.hbm %s11963_s1, 512 }
  0xbe   : > { %p9954_p13 = scmp.lt.u32.totalorder %s10540_s19, %s11963_s1  ;;  %p9955_p2 = scmp.lt.u32.totalorder %s9953_s24, %s9948_s9 }
  0xbf   : > { %p9951_p4 = pnand %p9949_p5, %p12043_p12  ;;  %p9957_p9 = scmp.lt.u32.totalorder %s9948_s9, %s10540_s19 }
  0xc0   : > { %p9956_p8 = por %p9955_p2, %p9954_p13 }
  0xc1   : > { %p9952_p7 = pneg %p9951_p4 }
  0xc2   : > { %p9958_p10 = por %p9957_p9, %p9956_p8 }
  0xc4   : > { %p9959_p0 = pnand %p9958_p10, %p9952_p7 }
  0xc6   : > { %9962 = shalt.err (!%p9959_p0)
}
  0xc7   : > { %s9963_s12 = scalar_lea.vmem %s10543_s8, 256  ;;  %s10191_s15 = smov [#allocation3]  }
  0xc8   : > { %p9964_p1 = scmp.ne.s32.totalorder %s10543_s8, %s9963_s12  ;;  %s9968_s26 = sshll.u32 %s10191_s15, 4  ;;  %s9969_s26 = int_to_ptr.vmem [resolvable:$false] %s9968_s26 }
  0xc9   : > { %s9970_s20 = scalar_lea.vmem %s9969_s26, 512  ;;  %p9971_p3 = scmp.lt.s32.totalorder %s10543_s8, %s9969_s26 }
  0xca   : > { %p9966_p6 = pnand %p9964_p1, %p12043_p12  ;;  %p9972_p5 = scmp.lt.s32.totalorder %s9970_s20, %s9963_s12 }
  0xcc   : > { %p9967_p11 = pneg %p9966_p6  ;;  %p9973_p4 = por %p9972_p5, %p9971_p3 }
  0xce   : > { %p9974_p13 = pnand %p9973_p4, %p9967_p11 }
  0xd0   : > { %9977 = shalt.err (!%p9974_p13)
}
  0xd1   : > { %p12044_p7 = scmp.ne.s32.totalorder %s12032_s13, 0  ;;  %s10576_s24 = scalar_lea.hbm %s11965_s3, %s10439_s21 }
  0xd2   : > { %s482_s4 = scalar_lea.vmem [#allocation8], %s10403_s29  ;;  %s9978_s14 = scalar_lea.hbm %s10576_s24, 1024 }
  0xd3   : > { %9722 = dma.hbm_to_vmem [thread:$0]  (!%p12044_p7), %s10540_s19, 256, %s10543_s8, %s437_s2, %s12036_s18, %s12036_s18, %s12035_s10  }
  0xd4   : > { %s489_s6 = sshll.u32 %s482_s4, 4  ;;  %p9979_p2 = scmp.ne.s32.totalorder %s10576_s24, %s9978_s14  ;;  %s10579_s6 = int_to_ptr.vmem [resolvable:$true] %s489_s6 }
  0xd5   : > { %s9983_s8 = scalar_lea.hbm %s11965_s3, 2048  ;;  %p9984_p10 = scmp.lt.u32.totalorder %s10576_s24, %s11965_s3 }
  0xd6   : > { %p9981_p8 = pnand %p9979_p2, %p12043_p12  ;;  %p9985_p0 = scmp.lt.u32.totalorder %s9983_s8, %s9978_s14 }
  0xd7   : > { %p9987_p6 = scmp.lt.u32.totalorder %s9978_s14, %s10576_s24 }
  0xd8   : > { %p9982_p9 = pneg %p9981_p8  ;;  %p9986_p1 = por %p9985_p0, %p9984_p10 }
  0xda   : > { %p9988_p11 = por %p9987_p6, %p9986_p1 }
  0xdc   : > { %p9989_p3 = pnand %p9988_p11, %p9982_p9 }
  0xde   : > { %9992 = shalt.err (!%p9989_p3)
}
  0xdf   : > { %s9993_s26 = scalar_lea.vmem %s10579_s6, 1024  ;;  %s10192_s20 = smov [#allocation8]  }
  0xe0   : > { %p9994_p5 = scmp.ne.s32.totalorder %s10579_s6, %s9993_s26  ;;  %s9998_s9 = sshll.u32 %s10192_s20, 4  ;;  %s9999_s9 = int_to_ptr.vmem [resolvable:$false] %s9998_s9 }
  0xe1   : > { %s10000_s30 = scalar_lea.vmem %s9999_s9, 2048  ;;  %p10001_p2 = scmp.lt.s32.totalorder %s10579_s6, %s9999_s9 }
  0xe2   : > { %p9996_p4 = pnand %p9994_p5, %p12043_p12  ;;  %p10002_p8 = scmp.lt.s32.totalorder %s10000_s30, %s9993_s26 }
  0xe4   : > { %p9997_p13 = pneg %p9996_p4  ;;  %p10003_p10 = por %p10002_p8, %p10001_p2 }
  0xe6   : > { %p10004_p0 = pnand %p10003_p10, %p9997_p13 }
  0xe8   : > { %10007 = shalt.err (!%p10004_p0)
}
  0xe9   : > { %s12045_s4 = scalar_lea.sflag [#allocation7], %s10391_s17  ;;  %s10611_s19 = scalar_lea.hbm %s11967_s5, %s10388_s22 }
  0xea   : > { %9728 = dma.hbm_to_vmem [thread:$0]  (!%p12044_p7), %s10576_s24, 1024, %s10579_s6, %s12045_s4, %s12036_s18, %s12036_s18, %s12035_s10  }
  0xeb   : > { %s524_s8 = scalar_lea.vmem [#allocation11], %s10352_s16  ;;  %s10008_s15 = scalar_lea.hbm %s10611_s19, 256 }
  0xec   : > { %s531_s2 = sshll.u32 %s524_s8, 4  ;;  %p10009_p9 = scmp.ne.s32.totalorder %s10611_s19, %s10008_s15  ;;  %s10614_s2 = int_to_ptr.vmem [resolvable:$true] %s531_s2 }
  0xed   : > { %s10013_s6 = scalar_lea.hbm %s11967_s5, 512  ;;  %p10014_p11 = scmp.lt.u32.totalorder %s10611_s19, %s11967_s5 }
  0xee   : > { %p10011_p1 = pnand %p10009_p9, %p12043_p12  ;;  %p10015_p3 = scmp.lt.u32.totalorder %s10013_s6, %s10008_s15 }
  0xef   : > { %p10017_p4 = scmp.lt.u32.totalorder %s10008_s15, %s10611_s19 }
  0xf0   : > { %p10012_p6 = pneg %p10011_p1  ;;  %p10016_p5 = por %p10015_p3, %p10014_p11 }
  0xf2   : > { %p10018_p13 = por %p10017_p4, %p10016_p5 }
  0xf4   : > { %p10019_p2 = pnand %p10018_p13, %p10012_p6 }
  0xf6   : > { %10022 = shalt.err (!%p10019_p2)
}
  0xf7   : > { %s10023_s16 = scalar_lea.vmem %s10614_s2, 256  ;;  %s10193_s9 = smov [#allocation11]  }
  0xf8   : > { %p10024_p8 = scmp.ne.s32.totalorder %s10614_s2, %s10023_s16  ;;  %s10028_s30 = sshll.u32 %s10193_s9, 4  ;;  %s10029_s30 = int_to_ptr.vmem [resolvable:$false] %s10028_s30 }
  0xf9   : > { %s10030_s4 = scalar_lea.vmem %s10029_s30, 512  ;;  %p10031_p9 = scmp.lt.s32.totalorder %s10614_s2, %s10029_s30 }
  0xfa   : > { %p10026_p10 = pnand %p10024_p8, %p12043_p12  ;;  %p10032_p1 = scmp.lt.s32.totalorder %s10030_s4, %s10023_s16 }
  0xfc   : > { %p10027_p0 = pneg %p10026_p10  ;;  %p10033_p11 = por %p10032_p1, %p10031_p9 }
  0xfe   : > { %p10034_p3 = pnand %p10033_p11, %p10027_p0 }
 0x100   : > { %10037 = shalt.err (!%p10034_p3)
}
 0x101   : > { %s12046_s14 = scalar_lea.sflag [#allocation10], %s10391_s17  ;;  %s10646_s15 = scalar_lea.hbm %s11969_s7, %s10439_s21 }
 0x102   : > { %9734 = dma.hbm_to_vmem [thread:$0]  (!%p12044_p7), %s10611_s19, 256, %s10614_s2, %s12046_s14, %s12036_s18, %s12036_s18, %s12035_s10  }
 0x103   : > { %s566_s26 = scalar_lea.vmem [#allocation14], %s10403_s29  ;;  %s10038_s6 = scalar_lea.hbm %s10646_s15, 1024 }
 0x104   : > { %s573_s24 = sshll.u32 %s566_s26, 4  ;;  %p10039_p6 = scmp.ne.s32.totalorder %s10646_s15, %s10038_s6  ;;  %s10649_s24 = int_to_ptr.vmem [resolvable:$true] %s573_s24 }
 0x105   : > { %s10043_s2 = scalar_lea.hbm %s11969_s7, 2048  ;;  %p10044_p13 = scmp.lt.u32.totalorder %s10646_s15, %s11969_s7 }
 0x106   : > { %p10041_p5 = pnand %p10039_p6, %p12043_p12  ;;  %p10045_p2 = scmp.lt.u32.totalorder %s10043_s2, %s10038_s6 }
 0x107   : > { %p10047_p10 = scmp.lt.u32.totalorder %s10038_s6, %s10646_s15 }
 0x108   : > { %p10042_p4 = pneg %p10041_p5  ;;  %p10046_p8 = por %p10045_p2, %p10044_p13 }
 0x10a   : > { %p10048_p0 = por %p10047_p10, %p10046_p8 }
 0x10c   : > { %p10049_p9 = pnand %p10048_p0, %p10042_p4 }
 0x10e   : > { %10052 = shalt.err (!%p10049_p9)
}
 0x10f   : > { %s10053_s29 = scalar_lea.vmem %s10649_s24, 1024  ;;  %s10194_s16 = smov [#allocation14]  }
 0x110   : > { %p10054_p1 = scmp.ne.s32.totalorder %s10649_s24, %s10053_s29  ;;  %s10058_s9 = sshll.u32 %s10194_s16, 4  ;;  %s10059_s9 = int_to_ptr.vmem [resolvable:$false] %s10058_s9 }
 0x111   : > { %s10060_s30 = scalar_lea.vmem %s10059_s9, 2048  ;;  %p10061_p6 = scmp.lt.s32.totalorder %s10649_s24, %s10059_s9 }
 0x112   : > { %p10056_p11 = pnand %p10054_p1, %p12043_p12  ;;  %p10062_p5 = scmp.lt.s32.totalorder %s10060_s30, %s10053_s29 }
 0x114   : > { %p10057_p3 = pneg %p10056_p11  ;;  %p10063_p13 = por %p10062_p5, %p10061_p6 }
 0x116   : > { %p10064_p2 = pnand %p10063_p13, %p10057_p3 }
 0x118   : > { %10067 = shalt.err (!%p10064_p2)
}
 0x119   : > { %9740 = dma.hbm_to_vmem [thread:$0]  (!%p12044_p7), %s10646_s15, 1024, %s10649_s24, %s542_s25, %s12036_s18, %s12036_s18, %s12035_s10  }
 0x11a   : > { %p12047_p12 = scmp.ne.s32.totalorder %s12027_s23, 0 }
 0x11b   : > { %s12048_s27 = sld [smem:[#allocation33_spill]] (!%p12047_p12)  ;;  %s10680_s4 = sand.u32 (!%p12047_p12), 1, %s10174_s28  }
 0x11c   : > { %585 = sbr.rel (%p12047_p12) target bundleno = 3959 (0xf77), region = 68  ;;  %s10683_s14 = sshll.u32 (!%p12047_p12), %s10680_s4, 4 }
 0x11d   : > { %s588_s13 = scalar_lea.sflag (!%p12047_p12), [#allocation4], %s10680_s4  ;;  %s10687_s12 = scalar_lea.vmem (!%p12047_p12), [#allocation3], %s10683_s14 }
 0x121   : > { %p12049_p4 = scmp.ne.s32.totalorder (!%p12047_p12), %s12048_s27, 0 }
 0x123   : > { %10141 = dma.done.wait (%p12049_p4), %s588_s13, 256  }
 0x124   : > { %10143 = vsyncadd (%p12049_p4), %s588_s13, 4294967040  ;;  %s12050_s17 = sld [smem:[#allocation30_spill]]  ;;  %s10695_s18 = scalar_lea.vmem [#allocation6], %s10683_s14 }
 0x12a   : > { %s596_s23 = sand.u32 1, %s12050_s17  }
 0x12b   : > { %s597_s10 = scalar_lea.sflag [#allocation7], %s596_s23 }
 0x12c   : > { %10145 = dma.done.wait (%p12049_p4), %s597_s10, 1280  }
 0x12d   : > { %10147 = vsyncadd (%p12049_p4), %s597_s10, 4294966016  ;;  %s7908_s25 = sshll.u32 %s10680_s4, 6  ;;  %s615_s15 = scalar_lea.sflag [#allocation10], %s596_s23 }
 0x12e   : > { %s10702_s8 = scalar_lea.vmem [#allocation8], %s7908_s25  ;;  %s10704_s26 = scalar_lea.vmem [#allocation9], %s7908_s25 }
 0x12f   : > { %10149 = dma.done.wait (%p12049_p4), %s615_s15, 1280  }
 0x130   : > { %10151 = vsyncadd (%p12049_p4), %s615_s15, 4294966016  ;;  %s627_s24 = scalar_lea.vmem [#allocation11], %s10683_s14  ;;  %s633_s6 = scalar_lea.sflag [#allocation13], %s596_s23 }
 0x131   : > { %s10711_s20 = scalar_lea.vmem [#allocation12], %s7908_s25 }
 0x132   : > { %10153 = dma.done.wait (%p12049_p4), %s633_s6, 2048  }
 0x133   : > { %10155 = vsyncadd (%p12049_p4), %s633_s6, 4294965248  ;;  %s10717_s19 = scalar_lea.vmem [#allocation14], %s7908_s25  ;;  %p12051_p7 = scmp.eq.s32.totalorder %s12050_s17, 0 }
 0x135   : > { %10157 = dma.done.wait (%p12051_p7), [#allocation16], 512   ;;  %p12052_p8 = pmov %p12051_p7 }
 0x136   : > { %v10195_v0 = vmov 0.0   ;;  %vm10196_vm0 = vmmov 0   ;;  %v10730_v1 = vld [vmem:[%s10687_s12] sm:$0xff]  ;;  %v10733_v2 = vld [vmem:[%s10687_s12 + $0x8] sm:$0xff]  ;;  %s12053_s21 = sld [smem:[#allocation39_spill]]  ;;  %s12054_s27 = sld [smem:[#allocation40_spill]] }
 0x137   : > { %10159 = vsyncadd (%p12052_p8), [#allocation16], 4294966784  ;;  %8438 = vmatprep.subr.bf16.mxu0 %v10195_v0  ;;  %8456 = vmatprep.subr.bf16.mxu1 %v10195_v0  ;;  %v10736_v3 = vld [vmem:[%s10695_s18] sm:$0xff]  ;;  %v10739_v4 = vld [vmem:[%s10695_s18 + $0x8] sm:$0xff]  ;;  %vm840_vm1 = vcmask 130048   ;;  %s7577_s25 = sld [smem:[#allocation2]] }
 0x138   : > { %8440 = vmatprep.mubr.msk.bf16.mxu0 %vm10196_vm0, %v10195_v0  ;;  %8458 = vmatprep.mubr.msk.bf16.mxu1 %vm10196_vm0, %v10195_v0  ;;  %v10742_v5 = vld [vmem:[%s10711_s20] sm:$0xff]  ;;  %v10745_v6 = vld [vmem:[%s10711_s20 + $0x8] sm:$0xff]  ;;  %s723_s15 = scalar_lea.vmem [#allocation18], %s10683_s14  ;;  %s12059_s2 = sld [smem:[#allocation34_spill]] }
 0x139   : > { %v10748_v7 = vld [vmem:[%s10717_s19] sm:$0xff]  ;;  %v10751_v8 = vld [vmem:[%s10717_s19 + $0x8] sm:$0xff]  ;;  %v808_v9 = vmul.f32 %v10742_v5, %v10730_v1  ;;  %v809_v10 = vmul.f32 %v10745_v6, %v10733_v2  ;;  %v814_v11 = vmul.f32 %v10742_v5, %v10736_v3  ;;  %v815_v12 = vmul.f32 %v10745_v6, %v10739_v4  ;;  %s12060_s9 = sld [smem:[#allocation43_spill]] }
 0x13a   : > { %v810_v14 = vmul.f32 %v10748_v7, %v10736_v3  ;;  %v811_v15 = vmul.f32 %v10751_v8, %v10739_v4  ;;  %v816_v16 = vmul.f32 %v10748_v7, %v10730_v1  ;;  %v817_v17 = vmul.f32 %v10751_v8, %v10733_v2 }
 0x13c   : > { %v10764_v13 = vld [vmem:[%s12053_s21] sm:$0xff]  ;;  %v10777_v18 = vld [vmem:[%s12053_s21 + $0x8] sm:$0xff]  ;;  %s12055_s13 = smov %s12054_s27  ;;  %v812_v23 = vsub.f32 %v808_v9, %v810_v14  ;;  %v813_v24 = vsub.f32 %v809_v10, %v811_v15  ;;  %v818_v25 = vadd.f32 %v816_v16, %v814_v11  ;;  %v819_v26 = vadd.f32 %v817_v17, %v815_v12  ;;  %v10874_v14 = vld [vmem:[#allocation17] sm:$0xff] }
 0x13d   : > { %v10782_v19 = vld [vmem:[%s12054_s27] sm:$0xff]  ;;  %v10787_v20 = vld [vmem:[%s12055_s13 + $0x8] sm:$0xff]  ;;  %v10791_v21 = vpack.c.bf16 %v10777_v18, %v10764_v13  ;;  %v10876_v15 = vld [vmem:[#allocation17 + $0x8] sm:$0xff] }
 0x13e   : > { %v10795_v22 = vpack.c.bf16 %v10787_v20, %v10782_v19  ;;  %v820_v31 = vpack.c.bf16 %v813_v24, %v812_v23  ;;  %v826_v32 = vpack.c.bf16 %v819_v26, %v818_v25  ;;  %v760_v49 = vadd.f32 %v10782_v19, %v10764_v13  ;;  %v10864_v10 = vld [vmem:[#allocation15] sm:$0xff]  ;;  %v10866_v11 = vld [vmem:[#allocation15 + $0x8] sm:$0xff]  ;;  %p12061_p0 = scmp.ne.s32.totalorder %s12059_s2, 0 }
 0x13f   : > { %v749_v27 = vunpack.c.l.bf16 %v10791_v21  ;;  %v750_v28 = vunpack.c.h.bf16 %v10791_v21  ;;  %v761_v50 = vadd.f32 %v10787_v20, %v10777_v18  ;;  %v832_v52 = vadd.f32 %v818_v25, %v812_v23 }
 0x140   : > { %v755_v29 = vunpack.c.l.bf16 %v10795_v22  ;;  %v756_v30 = vunpack.c.h.bf16 %v10795_v22  ;;  %8439 = vmatpush3.bf16.msra.mxu0 %v820_v31  ;;  %8457 = vmatpush3.bf16.msra.mxu1 %v826_v32  ;;  %v821_v39 = vunpack.c.l.bf16 %v820_v31  ;;  %v822_v40 = vunpack.c.h.bf16 %v820_v31 }
 0x141   : > { %v751_v33 = vsub.f32 %v10764_v13, %v749_v27  ;;  %v752_v34 = vsub.f32 %v10777_v18, %v750_v28  ;;  %8444 = vmatprep.subr.bf16.mxu0 %v10195_v0  ;;  %8462 = vmatprep.subr.bf16.mxu1 %v10195_v0  ;;  %v827_v41 = vunpack.c.l.bf16 %v826_v32  ;;  %v828_v42 = vunpack.c.h.bf16 %v826_v32 }
 0x142   : > { %v757_v35 = vsub.f32 %v10782_v19, %v755_v29  ;;  %v758_v36 = vsub.f32 %v10787_v20, %v756_v30  ;;  %v823_v43 = vsub.f32 %v812_v23, %v821_v39  ;;  %v824_v44 = vsub.f32 %v813_v24, %v822_v40 }
 0x143   : > { %v10805_v37 = vpack.c.bf16 %v752_v34, %v751_v33  ;;  %v829_v45 = vsub.f32 %v818_v25, %v827_v41  ;;  %v830_v46 = vsub.f32 %v819_v26, %v828_v42  ;;  %v10835_v51 = vpack.c.bf16 %v761_v50, %v760_v49 }
 0x144   : > { %v10807_v38 = vpack.c.bf16 %v758_v36, %v757_v35  ;;  %v825_v47 = vpack.c.bf16 %v824_v44, %v823_v43  ;;  %v833_v53 = vadd.f32 %v819_v26, %v813_v24  ;;  %v10870_v12 = vpack.c.bf16 %v10866_v11, %v10864_v10 }
 0x145   : > { %8441 = vmatmul.mubr.msk.bf16.vlgmr.msra.gmra.mrb[0].mxu0 %vm840_vm1, %v10805_v37  ;;  %v831_v48 = vpack.c.bf16 %v830_v46, %v829_v45  ;;  %v763_v54 = vunpack.c.l.bf16 %v10835_v51  ;;  %v764_v55 = vunpack.c.h.bf16 %v10835_v51  ;;  %v10880_v16 = vpack.c.bf16 %v10876_v15, %v10874_v14 }
 0x146   : > { %8459 = vmatmul.mubr.msk.bf16.vlgmr.msra.gmra.mrb[0].mxu1 %vm840_vm1, %v10807_v38  ;;  %8445 = vmatpush3.bf16.msra.mxu0 %v820_v31  ;;  %v834_v56 = vpack.c.bf16 %v833_v53, %v832_v52  ;;  %v777_v40 = vunpack.c.l.bf16 %v10870_v12  ;;  %v778_v41 = vunpack.c.h.bf16 %v10870_v12  ;;  %v788_v45 = vadd.f32 %v10874_v14, %v10864_v10 }
 0x147   : > { %8463 = vmatpush3.bf16.msra.mxu1 %v826_v32  ;;  %8446 = vmatprep.mubr.msk.bf16.mxu0 %vm10196_vm0, %v10195_v0  ;;  %v765_v57 = vsub.f32 %v760_v49, %v763_v54  ;;  %v766_v58 = vsub.f32 %v761_v50, %v764_v55  ;;  %v789_v46 = vadd.f32 %v10876_v15, %v10866_v11 }
 0x148   : > { %8464 = vmatprep.mubr.msk.bf16.mxu1 %vm10196_vm0, %v10195_v0  ;;  %8450 = vmatprep.subr.bf16.mxu0 %v10195_v0  ;;  %v835_v60 = vunpack.c.l.bf16 %v834_v56  ;;  %v836_v61 = vunpack.c.h.bf16 %v834_v56  ;;  %v779_v42 = vsub.f32 %v10864_v10, %v777_v40  ;;  %v780_v43 = vsub.f32 %v10866_v11, %v778_v41 }
 0x149   : > { %8468 = vmatprep.subr.bf16.mxu1 %v10195_v0  ;;  %v10848_v59 = vpack.c.bf16 %v766_v58, %v765_v57 }
 0x14a   : > { %v837_v62 = vsub.f32 %v832_v52, %v835_v60  ;;  %v838_v63 = vsub.f32 %v833_v53, %v836_v61  ;;  %v10893_v44 = vpack.c.bf16 %v780_v43, %v779_v42  ;;  %v10904_v52 = vpack.c.bf16 %v789_v46, %v788_v45 }
 0x14c   : > { %v839_v9 = vpack.c.bf16 %v838_v63, %v837_v62 }
 0x151   : > { %8447 = vmatmul.mubr.msk.bf16.vlgmr.msra.gmra.mrb[0].mxu0 %vm840_vm1, %v10791_v21 }
 0x152   : > { %8465 = vmatmul.mubr.msk.bf16.vlgmr.msra.gmra.mrb[0].mxu1 %vm840_vm1, %v10795_v22  ;;  %8451 = vmatpush3.bf16.msra.mxu0 %v825_v47 }
 0x153   : > { %8469 = vmatpush3.bf16.msra.mxu1 %v831_v48  ;;  %8452 = vmatprep.mubr.msk.bf16.mxu0 %vm10196_vm0, %v10195_v0 }
 0x154   : > { %8470 = vmatprep.mubr.msk.bf16.mxu1 %vm10196_vm0, %v10195_v0  ;;  %8474 = vmatprep.subr.bf16.mxu0 %v10195_v0 }
 0x155   : > { %8492 = vmatprep.subr.bf16.mxu1 %v10195_v0 }
 0x15d   : > { %8453 = vmatmul.mubr.msk.bf16.vlgmr.msra.gmra.mrb[0].mxu0 %vm840_vm1, %v10791_v21 }
 0x15e   : > { %8471 = vmatmul.mubr.msk.bf16.vlgmr.msra.gmra.mrb[0].mxu1 %vm840_vm1, %v10795_v22  ;;  %8475 = vmatpush3.bf16.msra.mxu0 %v834_v56 }
 0x15f   : > { %8476 = vmatprep.mubr.msk.bf16.mxu0 %vm10196_vm0, %v10195_v0  ;;  %8480 = vmatprep.subr.bf16.mxu0 %v10195_v0 }
 0x160   : > { %8494 = vmatprep.mubr.msk.bf16.mxu1 %vm10196_vm0, %v10195_v0  ;;  %8493 = vmatpush3.bf16.msra.mxu1 %v10870_v12 }
 0x161   : > { %8498 = vmatprep.subr.bf16.mxu1 %v10195_v0 }
 0x165   : > { %8477 = vmatmul.mubr.msk.bf16.vlgmr.msra.gmra.mrb[4].mxu0 %vm840_vm1, %v10848_v59 }
 0x166   : > { %8481 = vmatpush3.bf16.msra.mxu0 %v834_v56  ;;  %8482 = vmatprep.mubr.msk.bf16.mxu0 %vm10196_vm0, %v10195_v0 }
 0x167   : > { %8486 = vmatprep.subr.bf16.mxu0 %v10195_v0 }
 0x171   : > { %8483 = vmatmul.mubr.msk.bf16.vlgmr.msra.gmra.mrb[4].mxu0 %vm840_vm1, %v10835_v51 }
 0x172   : > { %8487 = vmatpush3.bf16.msra.mxu0 %v839_v9  ;;  %8488 = vmatprep.mubr.msk.bf16.mxu0 %vm10196_vm0, %v10195_v0 }
 0x173   : > { %8510 = vmatprep.subr.bf16.mxu0 %v10195_v0 }
 0x17d   : > { %8489 = vmatmul.mubr.msk.bf16.vlgmr.msra.gmra.mrb[4].mxu0 %vm840_vm1, %v10835_v51 }
 0x17e   : > { %8512 = vmatprep.mubr.msk.bf16.mxu0 %vm10196_vm0, %v10195_v0  ;;  %8511 = vmatpush3.bf16.msra.mxu0 %v10880_v16 }
 0x17f   : > { %8516 = vmatprep.subr.bf16.mxu0 %v10195_v0 }
 0x230   : > { %v963_v17 = vpop.f32.mrb[0].mxu0 }
 0x231   : > { %v1094_v23 = vpop.f32.mrb[0].mxu1  ;;  %v8454_v25 = vpop.f32.mrb[1].mxu0 }
 0x232   : > { %v1234_v24 = vsub.f32 %v963_v17, %v1094_v23  ;;  %v8472_v26 = vpop.f32.mrb[1].mxu1  ;;  %v966_v27 = vpop.f32.mrb[2].mxu0 }
 0x233   : > { %v1097_v28 = vpop.f32.mrb[2].mxu1  ;;  %v8455_v30 = vpop.f32.mrb[3].mxu0 }
 0x234   : > { %v1235_v29 = vsub.f32 %v966_v27, %v1097_v28  ;;  %v8473_v31 = vpop.f32.mrb[3].mxu1  ;;  %v784_v30 = vunpack.c.h.bf16 %v10880_v16 }
 0x235   : > { %v791_v31 = vunpack.c.l.bf16 %v10904_v52 }
 0x236   : > { %v1240_v32 = vpack.c.bf16 %v1235_v29, %v1234_v24 }
 0x238   : > { %v1241_v33 = vunpack.c.l.bf16 %v1240_v32  ;;  %v1242_v34 = vunpack.c.h.bf16 %v1240_v32 }
 0x23a   : > { %v1243_v35 = vsub.f32 %v1234_v24, %v1241_v33  ;;  %v1244_v36 = vsub.f32 %v1235_v29, %v1242_v34  ;;  %v786_v34 = vsub.f32 %v10876_v15, %v784_v30 }
 0x23c   : > { %v1245_v39 = vpack.c.bf16 %v1244_v36, %v1243_v35  ;;  %v793_v35 = vsub.f32 %v788_v45, %v791_v31 }
 0x23e   : > { %8495 = vmatmul.mubr.msk.bf16.vlgmr.msra.gmra.mrb[4].mxu1 %vm840_vm1, %v1245_v39 }
 0x23f   : > { %8499 = vmatpush3.bf16.msra.mxu1 %v10870_v12  ;;  %8500 = vmatprep.mubr.msk.bf16.mxu1 %vm10196_vm0, %v10195_v0 }
 0x240   : > { %8504 = vmatprep.subr.bf16.mxu1 %v10195_v0 }
 0x24a   : > { %8501 = vmatmul.mubr.msk.bf16.vlgmr.msra.gmra.mrb[4].mxu1 %vm840_vm1, %v1240_v32 }
 0x24b   : > { %8505 = vmatpush3.bf16.msra.mxu1 %v10893_v44  ;;  %8506 = vmatprep.mubr.msk.bf16.mxu1 %vm10196_vm0, %v10195_v0 }
 0x24c   : > { %8528 = vmatprep.subr.bf16.mxu1 %v10195_v0 }
 0x250   : > { %v1225_v47 = vpop.f32.mrb[4].mxu0 }
 0x251   : > { %v1236_v48 = vsub.f32 %v1225_v47, %v963_v17  ;;  %v8490_v49 = vpop.f32.mrb[5].mxu0 }
 0x252   : > { %v1228_v50 = vpop.f32.mrb[6].mxu0  ;;  %v10954_v49 = vld [vmem:[%s627_s24 + $0x8] sm:$0xff] }
 0x253   : > { %v1238_v53 = vsub.f32 %v1236_v48, %v1094_v23  ;;  %v1237_v54 = vsub.f32 %v1228_v50, %v966_v27  ;;  %v8491_v55 = vpop.f32.mrb[7].mxu0  ;;  %v1659_v48 = vld [vmem:[%s10702_s8] sm:$0xff]  ;;  %vm739_vm3 = vcmp.ne.f32.partialorder %v10954_v49, 0.0 }
 0x254   : > { %v1660_v55 = vld [vmem:[%s10702_s8 + $0x8] sm:$0xff] }
 0x255   : > { %v1252_v56 = vadd.f32 %v1238_v53, %v1234_v24  ;;  %v1239_v57 = vsub.f32 %v1237_v54, %v1097_v28 }
 0x256   : > { %8507 = vmatmul.mubr.msk.bf16.vlgmr.msra.gmra.mrb[4].mxu1 %vm840_vm1, %v1240_v32  ;;  %v792_v32 = vunpack.c.h.bf16 %v10904_v52 }
 0x257   : > { %8529 = vmatpush3.bf16.msra.mxu1 %v10904_v52  ;;  %8530 = vmatprep.mubr.msk.bf16.mxu1 %vm10196_vm0, %v10195_v0  ;;  %v1246_v58 = vpack.c.bf16 %v1239_v57, %v1238_v53  ;;  %v1253_v60 = vadd.f32 %v1239_v57, %v1235_v29  ;;  %v783_v29 = vunpack.c.l.bf16 %v10880_v16 }
 0x258   : > { %8534 = vmatprep.subr.bf16.mxu1 %v10195_v0  ;;  %v794_v36 = vsub.f32 %v789_v46, %v792_v32  ;;  %v10949_v46 = vld [vmem:[%s627_s24] sm:$0xff] }
 0x259   : > { %v1247_v61 = vunpack.c.l.bf16 %v1246_v58  ;;  %v1248_v62 = vunpack.c.h.bf16 %v1246_v58  ;;  %v1254_v63 = vpack.c.bf16 %v1253_v60, %v1252_v56  ;;  %v785_v33 = vsub.f32 %v10874_v14, %v783_v29 }
 0x25a   : > { %v10929_v40 = vpack.c.bf16 %v794_v36, %v793_v35  ;;  %vm738_vm2 = vcmp.ne.f32.partialorder %v10949_v46, 0.0 }
 0x25b   : > { %v1249_v9 = vsub.f32 %v1238_v53, %v1247_v61  ;;  %v1250_v17 = vsub.f32 %v1239_v57, %v1248_v62  ;;  %v1255_v23 = vunpack.c.l.bf16 %v1254_v63  ;;  %v1256_v25 = vunpack.c.h.bf16 %v1254_v63  ;;  %vm10966_vm4 = vmpackc.low %vm739_vm3, %vm738_vm2 }
 0x25c   : > { %v10927_v39 = vpack.c.bf16 %v786_v34, %v785_v33 }
 0x25d   : > { %v1251_v24 = vpack.c.bf16 %v1250_v17, %v1249_v9  ;;  %v1257_v26 = vsub.f32 %v1252_v56, %v1255_v23  ;;  %v1258_v27 = vsub.f32 %v1253_v60, %v1256_v25 }
 0x25f   : > { %v1259_v28 = vpack.c.bf16 %v1258_v27, %v1257_v26  ;;  %8513 = vmatmul.mubr.msk.bf16.vlgmr.msra.gmra.mrb[8].mxu0 %vm840_vm1, %v1251_v24 }
 0x260   : > { %8517 = vmatpush3.bf16.msra.mxu0 %v10880_v16  ;;  %8518 = vmatprep.mubr.msk.bf16.mxu0 %vm10196_vm0, %v10195_v0 }
 0x261   : > { %8531 = vmatmul.mubr.msk.bf16.vlgmr.msra.gmra.mrb[8].mxu1 %vm840_vm1, %v1259_v28  ;;  %8522 = vmatprep.subr.bf16.mxu0 %v10195_v0  ;;  %v1666_v28 = vld [vmem:[%s10704_s26 + $0x8] sm:$0xff] }
 0x262   : > { %8535 = vmatpush3.bf16.msra.mxu1 %v10904_v52  ;;  %8536 = vmatprep.mubr.msk.bf16.mxu1 %vm10196_vm0, %v10195_v0 }
 0x263   : > { %8540 = vmatprep.subr.bf16.mxu1 %v10195_v0 }
 0x26b   : > { %8519 = vmatmul.mubr.msk.bf16.vlgmr.msra.gmra.mrb[8].mxu0 %vm840_vm1, %v1246_v58 }
 0x26c   : > { %8523 = vmatpush3.bf16.msra.mxu0 %v10927_v39  ;;  %8524 = vmatprep.mubr.msk.bf16.mxu0 %vm10196_vm0, %v10195_v0 }
 0x26d   : > { %8537 = vmatmul.mubr.msk.bf16.vlgmr.msra.gmra.mrb[8].mxu1 %vm840_vm1, %v1254_v63  ;;  %8546 = vmatprep.subr.bf16.mxu0 %v10195_v0 }
 0x26e   : > { %8541 = vmatpush3.bf16.msra.mxu1 %v10929_v40  ;;  %8542 = vmatprep.mubr.msk.bf16.mxu1 %vm10196_vm0, %v10195_v0 }
 0x26f   : > { %8564 = vmatprep.subr.bf16.mxu1 %v10195_v0 }
 0x277   : > { %8525 = vmatmul.mubr.msk.bf16.vlgmr.msra.gmra.mrb[8].mxu0 %vm840_vm1, %v1246_v58 }
 0x278   : > { %8548 = vmatprep.mubr.msk.bf16.mxu0 %vm10196_vm0, %v10195_v0 }
 0x279   : > { %8543 = vmatmul.mubr.msk.bf16.vlgmr.msra.gmra.mrb[8].mxu1 %vm840_vm1, %v1254_v63  ;;  %v1665_v63 = vld [vmem:[%s10704_s26] sm:$0xff] }
 0x27a   : > { %8566 = vmatprep.mubr.msk.bf16.mxu1 %vm10196_vm0, %v10195_v0 }
 0x329   : > { %v1382_v41 = vpop.f32.mrb[4].mxu1 }
 0x32a   : > { %v8508_v42 = vpop.f32.mrb[5].mxu1 }
 0x32b   : > { %v1385_v43 = vpop.f32.mrb[6].mxu1 }
 0x32c   : > { %v8509_v45 = vpop.f32.mrb[7].mxu1 }
 0x34a   : > { %v1513_v47 = vpop.f32.mrb[8].mxu0 }
 0x34b   : > { %v1653_v50 = vsub.f32 %v1382_v41, %v1513_v47  ;;  %v8526_v53 = vpop.f32.mrb[9].mxu0 }
 0x34c   : > { %v1516_v54 = vpop.f32.mrb[10].mxu0  ;;  %v1644_v56 = vpop.f32.mrb[8].mxu1 }
 0x34d   : > { %v1661_v57 = vsub.f32 %v1653_v50, %v1659_v48  ;;  %v1654_v58 = vsub.f32 %v1385_v43, %v1516_v54  ;;  %v1655_v60 = vsub.f32 %v1644_v56, %v1382_v41  ;;  %v8527_v61 = vpop.f32.mrb[11].mxu0  ;;  %v8544_v62 = vpop.f32.mrb[9].mxu1 }
 0x34e   : > { %v1647_v9 = vpop.f32.mrb[10].mxu1 }
 0x34f   : > { %v1662_v17 = vsub.f32 %v1654_v58, %v1660_v55  ;;  %v1657_v23 = vsub.f32 %v1655_v60, %v1513_v47  ;;  %v1656_v25 = vsub.f32 %v1647_v9, %v1385_v43  ;;  %v8545_v24 = vpop.f32.mrb[11].mxu1  ;;  %v1663_v26 = vsel %vm738_vm2, %v1661_v57, 0.0 }
 0x350   : > { %v769_v24 = vsub.f32 %v10777_v18, %v10787_v20 }
 0x351   : > { %v1664_v29 = vsel %vm739_vm3, %v1662_v17, 0.0  ;;  %v7936_v30 = vpack.c.bf16 %v1662_v17, %v1661_v57  ;;  %v1667_v31 = vsub.f32 %v1657_v23, %v1665_v63  ;;  %v1658_v32 = vsub.f32 %v1656_v25, %v1516_v54 }
 0x352   : > { %v1671_v33 = vpack.c.bf16 %v1664_v29, %v1663_v26  ;;  %v768_v25 = vsub.f32 %v10764_v13, %v10782_v19 }
 0x353   : > { %v1669_v34 = vsel %vm738_vm2, %v1667_v31, 0.0  ;;  %v1668_v35 = vsub.f32 %v1658_v32, %v1666_v28  ;;  %8547 = vmatpush3.bf16.msk.msra.mxu0 %vm10966_vm4, %v7936_v30 }
 0x354   : > { %v1672_v36 = vunpack.c.l.bf16 %v1671_v33  ;;  %v1673_v41 = vunpack.c.h.bf16 %v1671_v33  ;;  %v1683_v42 = vadd.f32 %v1669_v34, %v1663_v26  ;;  %8552 = vmatprep.subr.bf16.mxu0 %v10195_v0 }
 0x355   : > { %v1670_v43 = vsel %vm739_vm3, %v1668_v35, 0.0  ;;  %v7945_v45 = vpack.c.bf16 %v1668_v35, %v1667_v31 }
 0x356   : > { %v1675_v47 = vsub.f32 %v1664_v29, %v1673_v41  ;;  %v1677_v48 = vpack.c.bf16 %v1670_v43, %v1669_v34  ;;  %v1684_v50 = vadd.f32 %v1670_v43, %v1664_v29  ;;  %8549 = vmatmul.mubr.msk.bf16.vlgmr.msra.gmra.mrb[12].mxu0 %vm840_vm1, %v10805_v37  ;;  %v1674_v53 = vsub.f32 %v1663_v26, %v1672_v36 }
 0x357   : > { %8553 = vmatpush3.bf16.msk.msra.mxu0 %vm10966_vm4, %v7936_v30  ;;  %8565 = vmatpush3.bf16.msk.msra.mxu1 %vm10966_vm4, %v7945_v45  ;;  %v11008_v26 = vpack.c.bf16 %v769_v24, %v768_v25 }
 0x358   : > { %v1678_v54 = vunpack.c.l.bf16 %v1677_v48  ;;  %v1679_v55 = vunpack.c.h.bf16 %v1677_v48  ;;  %8570 = vmatprep.subr.bf16.mxu1 %v10195_v0  ;;  %8554 = vmatprep.mubr.msk.bf16.mxu0 %vm10196_vm0, %v10195_v0  ;;  %v1676_v56 = vpack.c.bf16 %v1675_v47, %v1674_v53  ;;  %v1685_v57 = vpack.c.bf16 %v1684_v50, %v1683_v42 }
 0x359   : > { %8558 = vmatprep.subr.bf16.mxu0 %v10195_v0  ;;  %v771_v13 = vunpack.c.l.bf16 %v11008_v26  ;;  %v772_v18 = vunpack.c.h.bf16 %v11008_v26 }
 0x35a   : > { %v1681_v58 = vsub.f32 %v1670_v43, %v1679_v55  ;;  %8567 = vmatmul.mubr.msk.bf16.vlgmr.msra.gmra.mrb[12].mxu1 %vm840_vm1, %v10807_v38  ;;  %v1680_v60 = vsub.f32 %v1669_v34, %v1678_v54  ;;  %v1686_v61 = vunpack.c.l.bf16 %v1685_v57  ;;  %v1687_v62 = vunpack.c.h.bf16 %v1685_v57 }
 0x35b   : > { %8571 = vmatpush3.bf16.msk.msra.mxu1 %vm10966_vm4, %v7945_v45  ;;  %8572 = vmatprep.mubr.msk.bf16.mxu1 %vm10196_vm0, %v10195_v0  ;;  %v773_v19 = vsub.f32 %v768_v25, %v771_v13  ;;  %v774_v20 = vsub.f32 %v769_v24, %v772_v18 }
 0x35c   : > { %8576 = vmatprep.subr.bf16.mxu1 %v10195_v0  ;;  %v1682_v63 = vpack.c.bf16 %v1681_v58, %v1680_v60  ;;  %v1688_v9 = vsub.f32 %v1683_v42, %v1686_v61  ;;  %v1689_v17 = vsub.f32 %v1684_v50, %v1687_v62  ;;  %v796_v58 = vsub.f32 %v10864_v10, %v10874_v14 }
 0x35d   : > { %v11022_v28 = vpack.c.bf16 %v774_v20, %v773_v19  ;;  %v797_v60 = vsub.f32 %v10866_v11, %v10876_v15 }
 0x35e   : > { %v1690_v23 = vpack.c.bf16 %v1689_v17, %v1688_v9 }
 0x362   : > { %8555 = vmatmul.mubr.msk.bf16.vlgmr.msra.gmra.mrb[12].mxu0 %vm840_vm1, %v10791_v21 }
 0x363   : > { %8559 = vmatpush3.bf16.msra.mxu0 %v1676_v56  ;;  %8560 = vmatprep.mubr.msk.bf16.mxu0 %vm10196_vm0, %v10195_v0 }
 0x364   : > { %8582 = vmatprep.subr.bf16.mxu0 %v10195_v0 }
 0x366   : > { %8573 = vmatmul.mubr.msk.bf16.vlgmr.msra.gmra.mrb[12].mxu1 %vm840_vm1, %v10795_v22 }
 0x367   : > { %8577 = vmatpush3.bf16.msra.mxu1 %v1682_v63  ;;  %8578 = vmatprep.mubr.msk.bf16.mxu1 %vm10196_vm0, %v10195_v0 }
 0x368   : > { %8600 = vmatprep.subr.bf16.mxu1 %v10195_v0 }
 0x36e   : > { %8561 = vmatmul.mubr.msk.bf16.vlgmr.msra.gmra.mrb[12].mxu0 %vm840_vm1, %v10791_v21 }
 0x36f   : > { %8583 = vmatpush3.bf16.msra.mxu0 %v1685_v57  ;;  %8584 = vmatprep.mubr.msk.bf16.mxu0 %vm10196_vm0, %v10195_v0 }
 0x370   : > { %8588 = vmatprep.subr.bf16.mxu0 %v10195_v0 }
 0x372   : > { %8579 = vmatmul.mubr.msk.bf16.vlgmr.msra.gmra.mrb[12].mxu1 %vm840_vm1, %v10795_v22 }
 0x373   : > { %8601 = vmatpush3.bf16.msra.mxu1 %v10870_v12  ;;  %8602 = vmatprep.mubr.msk.bf16.mxu1 %vm10196_vm0, %v10195_v0 }
 0x374   : > { %8606 = vmatprep.subr.bf16.mxu1 %v10195_v0 }
 0x376   : > { %8585 = vmatmul.mubr.msk.bf16.vlgmr.msra.gmra.mrb[16].mxu0 %vm840_vm1, %v11022_v28 }
 0x377   : > { %8589 = vmatpush3.bf16.msra.mxu0 %v1685_v57  ;;  %8590 = vmatprep.mubr.msk.bf16.mxu0 %vm10196_vm0, %v10195_v0 }
 0x378   : > { %8594 = vmatprep.subr.bf16.mxu0 %v10195_v0 }
 0x382   : > { %8591 = vmatmul.mubr.msk.bf16.vlgmr.msra.gmra.mrb[16].mxu0 %vm840_vm1, %v11008_v26 }
 0x383   : > { %8595 = vmatpush3.bf16.msra.mxu0 %v1690_v23  ;;  %8596 = vmatprep.mubr.msk.bf16.mxu0 %vm10196_vm0, %v10195_v0  ;;  %v11058_v23 = vpack.c.bf16 %v797_v60, %v796_v58 }
 0x384   : > { %8618 = vmatprep.subr.bf16.mxu0 %v10195_v0 }
 0x38e   : > { %8597 = vmatmul.mubr.msk.bf16.vlgmr.msra.gmra.mrb[16].mxu0 %vm840_vm1, %v11008_v26 }
 0x38f   : > { %8619 = vmatpush3.bf16.msra.mxu0 %v10880_v16  ;;  %8620 = vmatprep.mubr.msk.bf16.mxu0 %vm10196_vm0, %v10195_v0 }
 0x390   : > { %8624 = vmatprep.subr.bf16.mxu0 %v10195_v0 }
 0x441   : > { %v1807_v29 = vpop.f32.mrb[12].mxu0 }
 0x442   : > { %v8562_v30 = vpop.f32.mrb[13].mxu0 }
 0x443   : > { %v1810_v31 = vpop.f32.mrb[14].mxu0 }
 0x444   : > { %v8563_v32 = vpop.f32.mrb[15].mxu0 }
 0x445   : > { %v1932_v33 = vpop.f32.mrb[12].mxu1  ;;  %v799_v32 = vunpack.c.l.bf16 %v11058_v23 }
 0x446   : > { %v2072_v34 = vadd.f32 %v1932_v33, %v1807_v29  ;;  %v8580_v35 = vpop.f32.mrb[13].mxu1 }
 0x447   : > { %v1935_v36 = vpop.f32.mrb[14].mxu1 }
 0x448   : > { %v2073_v41 = vadd.f32 %v1935_v36, %v1810_v31  ;;  %v8581_v42 = vpop.f32.mrb[15].mxu1 }
 0x449   : > { %v11084_v42 = vld [vmem:[%s10717_s19 + $0x10] sm:$0xff] }
 0x44a   : > { %v2078_v43 = vpack.c.bf16 %v2073_v41, %v2072_v34 }
 0x44c   : > { %v2079_v45 = vunpack.c.l.bf16 %v2078_v43  ;;  %v2080_v47 = vunpack.c.h.bf16 %v2078_v43 }
 0x44e   : > { %v2081_v48 = vsub.f32 %v2072_v34, %v2079_v45  ;;  %v2082_v50 = vsub.f32 %v2073_v41, %v2080_v47 }
 0x450   : > { %v2083_v53 = vpack.c.bf16 %v2082_v50, %v2081_v48  ;;  %v2521_v50 = vmul.f32 %v11084_v42, %v10736_v3 }
 0x452   : > { %8603 = vmatmul.mubr.msk.bf16.vlgmr.msra.gmra.mrb[16].mxu1 %vm840_vm1, %v2083_v53 }
 0x453   : > { %8607 = vmatpush3.bf16.msra.mxu1 %v10870_v12  ;;  %8608 = vmatprep.mubr.msk.bf16.mxu1 %vm10196_vm0, %v10195_v0 }
 0x454   : > { %8612 = vmatprep.subr.bf16.mxu1 %v10195_v0 }
 0x45e   : > { %8609 = vmatmul.mubr.msk.bf16.vlgmr.msra.gmra.mrb[16].mxu1 %vm840_vm1, %v2078_v43 }
 0x45f   : > { %8613 = vmatpush3.bf16.msra.mxu1 %v10893_v44  ;;  %8614 = vmatprep.mubr.msk.bf16.mxu1 %vm10196_vm0, %v10195_v0 }
 0x460   : > { %8636 = vmatprep.subr.bf16.mxu1 %v10195_v0 }
 0x461   : > { %v2063_v54 = vpop.f32.mrb[16].mxu0 }
 0x462   : > { %v2074_v55 = vsub.f32 %v2063_v54, %v1807_v29  ;;  %v8598_v56 = vpop.f32.mrb[17].mxu0 }
 0x463   : > { %v2066_v57 = vpop.f32.mrb[18].mxu0  ;;  %v2527_v56 = vmul.f32 %v11084_v42, %v10730_v1 }
 0x464   : > { %v2076_v61 = vadd.f32 %v2074_v55, %v1932_v33  ;;  %v2075_v62 = vsub.f32 %v2066_v57, %v1810_v31  ;;  %v8599_v63 = vpop.f32.mrb[19].mxu0  ;;  %v800_v33 = vunpack.c.h.bf16 %v11058_v23 }
 0x466   : > { %v2090_v9 = vadd.f32 %v2076_v61, %v2072_v34  ;;  %v2077_v17 = vadd.f32 %v2075_v62, %v1935_v36  ;;  %v801_v34 = vsub.f32 %v796_v58, %v799_v32  ;;  %v802_v35 = vsub.f32 %v797_v60, %v800_v33  ;;  %v11078_v36 = vld [vmem:[%s10711_s20 + $0x10] sm:$0xff] }
 0x467   : > { %v2519_v47 = vmul.f32 %v11078_v36, %v10730_v1  ;;  %v2525_v54 = vmul.f32 %v11078_v36, %v10736_v3 }
 0x468   : > { %v2084_v25 = vpack.c.bf16 %v2077_v17, %v2076_v61  ;;  %v2091_v24 = vadd.f32 %v2077_v17, %v2073_v41  ;;  %v11081_v41 = vld [vmem:[%s10711_s20 + $0x18] sm:$0xff]  ;;  %v11089_v45 = vpack.c.bf16 %v802_v35, %v801_v34 }
 0x469   : > { %v2520_v48 = vmul.f32 %v11081_v41, %v10733_v2  ;;  %v2526_v55 = vmul.f32 %v11081_v41, %v10739_v4  ;;  %v2523_v58 = vsub.f32 %v2519_v47, %v2521_v50 }
 0x46a   : > { %v2085_v13 = vunpack.c.l.bf16 %v2084_v25  ;;  %v2086_v18 = vunpack.c.h.bf16 %v2084_v25  ;;  %v2092_v19 = vpack.c.bf16 %v2091_v24, %v2090_v9  ;;  %8615 = vmatmul.mubr.msk.bf16.vlgmr.msra.gmra.mrb[16].mxu1 %vm840_vm1, %v2078_v43  ;;  %v11087_v43 = vld [vmem:[%s10717_s19 + $0x18] sm:$0xff] }
 0x46b   : > { %8637 = vmatpush3.bf16.msra.mxu1 %v11058_v23  ;;  %8638 = vmatprep.mubr.msk.bf16.mxu1 %vm10196_vm0, %v10195_v0  ;;  %v2522_v53 = vmul.f32 %v11087_v43, %v10739_v4  ;;  %v2528_v57 = vmul.f32 %v11087_v43, %v10733_v2 }
 0x46c   : > { %v2087_v10 = vsub.f32 %v2076_v61, %v2085_v13  ;;  %v2088_v11 = vsub.f32 %v2077_v17, %v2086_v18  ;;  %v2093_v14 = vunpack.c.l.bf16 %v2092_v19  ;;  %v2094_v15 = vunpack.c.h.bf16 %v2092_v19  ;;  %8642 = vmatprep.subr.bf16.mxu1 %v10195_v0 }
 0x46d   : > { %v2524_v60 = vsub.f32 %v2520_v48, %v2522_v53  ;;  %v2529_v61 = vadd.f32 %v2527_v56, %v2525_v54  ;;  %v2530_v3 = vadd.f32 %v2528_v57, %v2526_v55 }
 0x46e   : > { %v2089_v20 = vpack.c.bf16 %v2088_v11, %v2087_v10  ;;  %v2095_v29 = vsub.f32 %v2090_v9, %v2093_v14  ;;  %v2096_v30 = vsub.f32 %v2091_v24, %v2094_v15 }
 0x46f   : > { %v2531_v62 = vpack.c.bf16 %v2524_v60, %v2523_v58  ;;  %v2537_v63 = vpack.c.bf16 %v2530_v3, %v2529_v61  ;;  %v2543_v10 = vadd.f32 %v2529_v61, %v2523_v58  ;;  %v2544_v11 = vadd.f32 %v2530_v3, %v2524_v60 }
 0x470   : > { %v2097_v31 = vpack.c.bf16 %v2096_v30, %v2095_v29  ;;  %8621 = vmatmul.mubr.msk.bf16.vlgmr.msra.gmra.mrb[20].mxu0 %vm840_vm1, %v2089_v20 }
 0x471   : > { %8625 = vmatpush3.bf16.msra.mxu0 %v10880_v16  ;;  %8626 = vmatprep.mubr.msk.bf16.mxu0 %vm10196_vm0, %v10195_v0  ;;  %v2532_v1 = vunpack.c.l.bf16 %v2531_v62  ;;  %v2533_v2 = vunpack.c.h.bf16 %v2531_v62  ;;  %v2538_v4 = vunpack.c.l.bf16 %v2537_v63  ;;  %v2539_v9 = vunpack.c.h.bf16 %v2537_v63 }
 0x472   : > { %8639 = vmatmul.mubr.msk.bf16.vlgmr.msra.gmra.mrb[20].mxu1 %vm840_vm1, %v2097_v31  ;;  %8630 = vmatprep.subr.bf16.mxu0 %v10195_v0  ;;  %v2545_v14 = vpack.c.bf16 %v2544_v11, %v2543_v10 }
 0x473   : > { %8643 = vmatpush3.bf16.msra.mxu1 %v11058_v23  ;;  %8644 = vmatprep.mubr.msk.bf16.mxu1 %vm10196_vm0, %v10195_v0  ;;  %v2534_v17 = vsub.f32 %v2523_v58, %v2532_v1  ;;  %v2540_v24 = vsub.f32 %v2529_v61, %v2538_v4  ;;  %v2541_v13 = vsub.f32 %v2530_v3, %v2539_v9 }
 0x474   : > { %8648 = vmatprep.subr.bf16.mxu1 %v10195_v0  ;;  %v2546_v15 = vunpack.c.l.bf16 %v2545_v14  ;;  %v2547_v20 = vunpack.c.h.bf16 %v2545_v14 }
 0x476   : > { %v2548_v29 = vsub.f32 %v2543_v10, %v2546_v15  ;;  %v2549_v30 = vsub.f32 %v2544_v11, %v2547_v20 }
 0x478   : > { %v2550_v31 = vpack.c.bf16 %v2549_v30, %v2548_v29 }
 0x47c   : > { %8627 = vmatmul.mubr.msk.bf16.vlgmr.msra.gmra.mrb[20].mxu0 %vm840_vm1, %v2084_v25 }
 0x47d   : > { %8631 = vmatpush3.bf16.msra.mxu0 %v10927_v39  ;;  %8632 = vmatprep.mubr.msk.bf16.mxu0 %vm10196_vm0, %v10195_v0 }
 0x47e   : > { %8645 = vmatmul.mubr.msk.bf16.vlgmr.msra.gmra.mrb[20].mxu1 %vm840_vm1, %v2092_v19  ;;  %8654 = vmatprep.subr.bf16.mxu0 %v10195_v0 }
 0x47f   : > { %8649 = vmatpush3.bf16.msra.mxu1 %v11089_v45  ;;  %8650 = vmatprep.mubr.msk.bf16.mxu1 %vm10196_vm0, %v10195_v0 }
 0x480   : > { %8672 = vmatprep.subr.bf16.mxu1 %v10195_v0 }
 0x488   : > { %8633 = vmatmul.mubr.msk.bf16.vlgmr.msra.gmra.mrb[20].mxu0 %vm840_vm1, %v2084_v25  ;;  %v2535_v25 = vsub.f32 %v2524_v60, %v2533_v2 }
 0x489   : > { %8655 = vmatpush3.bf16.msra.mxu0 %v2531_v62  ;;  %8656 = vmatprep.mubr.msk.bf16.mxu0 %vm10196_vm0, %v10195_v0 }
 0x48a   : > { %8651 = vmatmul.mubr.msk.bf16.vlgmr.msra.gmra.mrb[20].mxu1 %vm840_vm1, %v2092_v19  ;;  %8660 = vmatprep.subr.bf16.mxu0 %v10195_v0  ;;  %v2536_v18 = vpack.c.bf16 %v2535_v25, %v2534_v17  ;;  %v2542_v19 = vpack.c.bf16 %v2541_v13, %v2540_v24 }
 0x48b   : > { %8673 = vmatpush3.bf16.msra.mxu1 %v2537_v63  ;;  %8674 = vmatprep.mubr.msk.bf16.mxu1 %vm10196_vm0, %v10195_v0 }
 0x48c   : > { %8678 = vmatprep.subr.bf16.mxu1 %v10195_v0 }
 0x490   : > { %8657 = vmatmul.mubr.msk.bf16.vlgmr.msra.gmra.mrb[24].mxu0 %vm840_vm1, %v10805_v37 }
 0x491   : > { %8661 = vmatpush3.bf16.msra.mxu0 %v2531_v62  ;;  %8662 = vmatprep.mubr.msk.bf16.mxu0 %vm10196_vm0, %v10195_v0 }
 0x492   : > { %8675 = vmatmul.mubr.msk.bf16.vlgmr.msra.gmra.mrb[24].mxu1 %vm840_vm1, %v10807_v38  ;;  %8666 = vmatprep.subr.bf16.mxu0 %v10195_v0 }
 0x493   : > { %8679 = vmatpush3.bf16.msra.mxu1 %v2537_v63  ;;  %8680 = vmatprep.mubr.msk.bf16.mxu1 %vm10196_vm0, %v10195_v0 }
 0x494   : > { %8684 = vmatprep.subr.bf16.mxu1 %v10195_v0 }
 0x49c   : > { %8663 = vmatmul.mubr.msk.bf16.vlgmr.msra.gmra.mrb[24].mxu0 %vm840_vm1, %v10791_v21 }
 0x49d   : > { %8667 = vmatpush3.bf16.msra.mxu0 %v2536_v18  ;;  %8668 = vmatprep.mubr.msk.bf16.mxu0 %vm10196_vm0, %v10195_v0 }
 0x49e   : > { %8681 = vmatmul.mubr.msk.bf16.vlgmr.msra.gmra.mrb[24].mxu1 %vm840_vm1, %v10795_v22  ;;  %8690 = vmatprep.subr.bf16.mxu0 %v10195_v0 }
 0x49f   : > { %8685 = vmatpush3.bf16.msra.mxu1 %v2542_v19  ;;  %8686 = vmatprep.mubr.msk.bf16.mxu1 %vm10196_vm0, %v10195_v0 }
 0x4a0   : > { %8708 = vmatprep.subr.bf16.mxu1 %v10195_v0 }
 0x4a8   : > { %8669 = vmatmul.mubr.msk.bf16.vlgmr.msra.gmra.mrb[24].mxu0 %vm840_vm1, %v10791_v21 }
 0x4a9   : > { %8691 = vmatpush3.bf16.msra.mxu0 %v2545_v14  ;;  %8692 = vmatprep.mubr.msk.bf16.mxu0 %vm10196_vm0, %v10195_v0 }
 0x4aa   : > { %8687 = vmatmul.mubr.msk.bf16.vlgmr.msra.gmra.mrb[24].mxu1 %vm840_vm1, %v10795_v22  ;;  %8696 = vmatprep.subr.bf16.mxu0 %v10195_v0 }
 0x4ab   : > { %8709 = vmatpush3.bf16.msra.mxu1 %v10870_v12  ;;  %8710 = vmatprep.mubr.msk.bf16.mxu1 %vm10196_vm0, %v10195_v0 }
 0x4ac   : > { %8714 = vmatprep.subr.bf16.mxu1 %v10195_v0 }
 0x4b0   : > { %8693 = vmatmul.mubr.msk.bf16.vlgmr.msra.gmra.mrb[28].mxu0 %vm840_vm1, %v10848_v59 }
 0x4b1   : > { %8697 = vmatpush3.bf16.msra.mxu0 %v2545_v14  ;;  %8698 = vmatprep.mubr.msk.bf16.mxu0 %vm10196_vm0, %v10195_v0 }
 0x4b2   : > { %8702 = vmatprep.subr.bf16.mxu0 %v10195_v0 }
 0x4bc   : > { %8699 = vmatmul.mubr.msk.bf16.vlgmr.msra.gmra.mrb[28].mxu0 %vm840_vm1, %v10835_v51 }
 0x4bd   : > { %8703 = vmatpush3.bf16.msra.mxu0 %v2550_v31  ;;  %8704 = vmatprep.mubr.msk.bf16.mxu0 %vm10196_vm0, %v10195_v0 }
 0x4be   : > { %8726 = vmatprep.subr.bf16.mxu0 %v10195_v0 }
 0x4c8   : > { %8705 = vmatmul.mubr.msk.bf16.vlgmr.msra.gmra.mrb[28].mxu0 %vm840_vm1, %v10835_v51 }
 0x4c9   : > { %8727 = vmatpush3.bf16.msra.mxu0 %v10880_v16  ;;  %8728 = vmatprep.mubr.msk.bf16.mxu0 %vm10196_vm0, %v10195_v0 }
 0x4ca   : > { %8732 = vmatprep.subr.bf16.mxu0 %v10195_v0 }
 0x53d   : > { %v2220_v32 = vpop.f32.mrb[16].mxu1 }
 0x53e   : > { %v8616_v33 = vpop.f32.mrb[17].mxu1 }
 0x53f   : > { %v2223_v34 = vpop.f32.mrb[18].mxu1 }
 0x540   : > { %v8617_v35 = vpop.f32.mrb[19].mxu1 }
 0x55b   : > { %v2351_v47 = vpop.f32.mrb[20].mxu0 }
 0x55c   : > { %v2491_v48 = vadd.f32 %v2351_v47, %v2220_v32  ;;  %v8634_v50 = vpop.f32.mrb[21].mxu0 }
 0x55d   : > { %v2354_v53 = vpop.f32.mrb[22].mxu0  ;;  %v2482_v54 = vpop.f32.mrb[20].mxu1 }
 0x55e   : > { %v2492_v55 = vadd.f32 %v2354_v53, %v2223_v34  ;;  %v2493_v56 = vsub.f32 %v2482_v54, %v2220_v32  ;;  %v8635_v57 = vpop.f32.mrb[23].mxu0  ;;  %v8652_v58 = vpop.f32.mrb[21].mxu1  ;;  %v2497_v63 = vmul.f32 %v2491_v48, %v10742_v5  ;;  %v11174_v1 = vmul.f32 %v2491_v48, %v10748_v7 }
 0x55f   : > { %v2485_v60 = vpop.f32.mrb[22].mxu1 }
 0x560   : > { %v2495_v61 = vadd.f32 %v2493_v56, %v2351_v47  ;;  %v2494_v3 = vsub.f32 %v2485_v60, %v2223_v34  ;;  %v8653_v62 = vpop.f32.mrb[23].mxu1  ;;  %v2498_v17 = vmul.f32 %v2492_v55, %v10745_v6  ;;  %v11182_v25 = vmul.f32 %v2492_v55, %v10751_v8 }
 0x562   : > { %v2499_v2 = vmul.f32 %v2495_v61, %v10748_v7  ;;  %v11178_v4 = vmul.f32 %v2495_v61, %v10742_v5  ;;  %v2496_v9 = vadd.f32 %v2494_v3, %v2354_v53 }
 0x564   : > { %v11184_v24 = vadd.f32 %v2499_v2, %v2497_v63  ;;  %v2509_v13 = vsub.f32 %v11178_v4, %v11174_v1  ;;  %v2500_v18 = vmul.f32 %v2496_v9, %v10751_v8  ;;  %v11190_v19 = vmul.f32 %v2496_v9, %v10745_v6 }
 0x566   : > { %v11192_v7 = vadd.f32 %v2500_v18, %v2498_v17  ;;  %v2510_v5 = vsub.f32 %v11190_v19, %v11182_v25 }
 0x57b   : > { %v2667_v10 = vpop.f32.mrb[24].mxu0 }
 0x57c   : > { %v8670_v11 = vpop.f32.mrb[25].mxu0 }
 0x57d   : > { %v2670_v14 = vpop.f32.mrb[26].mxu0  ;;  %v2792_v15 = vpop.f32.mrb[24].mxu1 }
 0x57e   : > { %v2926_v20 = vsub.f32 %v2667_v10, %v2792_v15  ;;  %v8671_v29 = vpop.f32.mrb[27].mxu0  ;;  %v8688_v30 = vpop.f32.mrb[25].mxu1 }
 0x57f   : > { %v2795_v31 = vpop.f32.mrb[26].mxu1 }
 0x580   : > { %v2927_v32 = vsub.f32 %v2670_v14, %v2795_v31  ;;  %v8689_v33 = vpop.f32.mrb[27].mxu1 }
 0x582   : > { %v2932_v34 = vpack.c.bf16 %v2927_v32, %v2926_v20 }
 0x584   : > { %v2933_v8 = vunpack.c.l.bf16 %v2932_v34  ;;  %v2934_v35 = vunpack.c.h.bf16 %v2932_v34 }
 0x586   : > { %v2935_v6 = vsub.f32 %v2926_v20, %v2933_v8  ;;  %v2936_v47 = vsub.f32 %v2927_v32, %v2934_v35  ;;  %v7987_v8 = vld [vmem:[%s10702_s8 + $0x10] sm:$0xff] }
 0x588   : > { %v2937_v48 = vpack.c.bf16 %v2936_v47, %v2935_v6 }
 0x58a   : > { %8711 = vmatmul.mubr.msk.bf16.vlgmr.msra.gmra.mrb[28].mxu1 %vm840_vm1, %v2937_v48  ;;  %v7988_v48 = vld [vmem:[%s10702_s8 + $0x18] sm:$0xff] }
 0x58b   : > { %8715 = vmatpush3.bf16.msra.mxu1 %v10870_v12  ;;  %8716 = vmatprep.mubr.msk.bf16.mxu1 %vm10196_vm0, %v10195_v0 }
 0x58c   : > { %8720 = vmatprep.subr.bf16.mxu1 %v10195_v0 }
 0x596   : > { %8717 = vmatmul.mubr.msk.bf16.vlgmr.msra.gmra.mrb[28].mxu1 %vm840_vm1, %v2932_v34 }
 0x597   : > { %8721 = vmatpush3.bf16.msra.mxu1 %v10893_v44  ;;  %8722 = vmatprep.mubr.msk.bf16.mxu1 %vm10196_vm0, %v10195_v0 }
 0x598   : > { %8744 = vmatprep.subr.bf16.mxu1 %v10195_v0 }
 0x59b   : > { %v2917_v50 = vpop.f32.mrb[28].mxu0 }
 0x59c   : > { %v2928_v53 = vsub.f32 %v2917_v50, %v2667_v10  ;;  %v8706_v54 = vpop.f32.mrb[29].mxu0 }
 0x59d   : > { %v2920_v55 = vpop.f32.mrb[30].mxu0 }
 0x59e   : > { %v2930_v56 = vsub.f32 %v2928_v53, %v2792_v15  ;;  %v2929_v57 = vsub.f32 %v2920_v55, %v2670_v14  ;;  %v8707_v58 = vpop.f32.mrb[31].mxu0 }
 0x59f   : > { %v7989_v58 = vld [vmem:[%s10704_s26 + $0x10] sm:$0xff] }
 0x5a0   : > { %v2944_v60 = vadd.f32 %v2930_v56, %v2926_v20  ;;  %v2931_v61 = vsub.f32 %v2929_v57, %v2795_v31 }
 0x5a2   : > { %v2938_v3 = vpack.c.bf16 %v2931_v61, %v2930_v56  ;;  %v2945_v62 = vadd.f32 %v2931_v61, %v2927_v32  ;;  %8723 = vmatmul.mubr.msk.bf16.vlgmr.msra.gmra.mrb[28].mxu1 %vm840_vm1, %v2932_v34 }
 0x5a3   : > { %8745 = vmatpush3.bf16.msra.mxu1 %v10904_v52  ;;  %8746 = vmatprep.mubr.msk.bf16.mxu1 %vm10196_vm0, %v10195_v0 }
 0x5a4   : > { %v2939_v63 = vunpack.c.l.bf16 %v2938_v3  ;;  %v2940_v2 = vunpack.c.h.bf16 %v2938_v3  ;;  %v2946_v9 = vpack.c.bf16 %v2945_v62, %v2944_v60  ;;  %8750 = vmatprep.subr.bf16.mxu1 %v10195_v0 }
 0x5a6   : > { %v2941_v17 = vsub.f32 %v2930_v56, %v2939_v63  ;;  %v2942_v18 = vsub.f32 %v2931_v61, %v2940_v2  ;;  %v2947_v10 = vunpack.c.l.bf16 %v2946_v9  ;;  %v2948_v11 = vunpack.c.h.bf16 %v2946_v9 }
 0x5a8   : > { %v2943_v14 = vpack.c.bf16 %v2942_v18, %v2941_v17  ;;  %v2949_v15 = vsub.f32 %v2944_v60, %v2947_v10  ;;  %v2950_v20 = vsub.f32 %v2945_v62, %v2948_v11 }
 0x5aa   : > { %v2951_v29 = vpack.c.bf16 %v2950_v20, %v2949_v15  ;;  %8729 = vmatmul.mubr.msk.bf16.vlgmr.msra.gmra.mrb[32].mxu0 %vm840_vm1, %v2943_v14 }
 0x5ab   : > { %8733 = vmatpush3.bf16.msra.mxu0 %v10880_v16  ;;  %8734 = vmatprep.mubr.msk.bf16.mxu0 %vm10196_vm0, %v10195_v0 }
 0x5ac   : > { %8747 = vmatmul.mubr.msk.bf16.vlgmr.msra.gmra.mrb[32].mxu1 %vm840_vm1, %v2951_v29  ;;  %8738 = vmatprep.subr.bf16.mxu0 %v10195_v0 }
 0x5ad   : > { %8751 = vmatpush3.bf16.msra.mxu1 %v10904_v52  ;;  %8752 = vmatprep.mubr.msk.bf16.mxu1 %vm10196_vm0, %v10195_v0 }
 0x5ae   : > { %8756 = vmatprep.subr.bf16.mxu1 %v10195_v0 }
 0x5b6   : > { %8735 = vmatmul.mubr.msk.bf16.vlgmr.msra.gmra.mrb[32].mxu0 %vm840_vm1, %v2938_v3 }
 0x5b7   : > { %8739 = vmatpush3.bf16.msra.mxu0 %v10927_v39  ;;  %8740 = vmatprep.mubr.msk.bf16.mxu0 %vm10196_vm0, %v10195_v0 }
 0x5b8   : > { %8753 = vmatmul.mubr.msk.bf16.vlgmr.msra.gmra.mrb[32].mxu1 %vm840_vm1, %v2946_v9  ;;  %8762 = vmatprep.subr.bf16.mxu0 %v10195_v0 }
 0x5b9   : > { %8757 = vmatpush3.bf16.msra.mxu1 %v10929_v40  ;;  %8758 = vmatprep.mubr.msk.bf16.mxu1 %vm10196_vm0, %v10195_v0 }
 0x5ba   : > { %8780 = vmatprep.subr.bf16.mxu1 %v10195_v0 }
 0x5c2   : > { %8741 = vmatmul.mubr.msk.bf16.vlgmr.msra.gmra.mrb[32].mxu0 %vm840_vm1, %v2938_v3 }
 0x5c3   : > { %8764 = vmatprep.mubr.msk.bf16.mxu0 %vm10196_vm0, %v10195_v0 }
 0x5c4   : > { %8759 = vmatmul.mubr.msk.bf16.vlgmr.msra.gmra.mrb[32].mxu1 %vm840_vm1, %v2946_v9  ;;  %v7990_v9 = vld [vmem:[%s10704_s26 + $0x18] sm:$0xff] }
 0x5c5   : > { %8782 = vmatprep.mubr.msk.bf16.mxu1 %vm10196_vm0, %v10195_v0 }
 0x675   : > { %v3074_v30 = vpop.f32.mrb[28].mxu1 }
 0x676   : > { %v8724_v31 = vpop.f32.mrb[29].mxu1 }
 0x677   : > { %v3077_v32 = vpop.f32.mrb[30].mxu1 }
 0x678   : > { %v8725_v33 = vpop.f32.mrb[31].mxu1 }
 0x695   : > { %v3205_v34 = vpop.f32.mrb[32].mxu0 }
 0x696   : > { %v3345_v35 = vsub.f32 %v3074_v30, %v3205_v34  ;;  %v8742_v6 = vpop.f32.mrb[33].mxu0 }
 0x697   : > { %v3208_v47 = vpop.f32.mrb[34].mxu0  ;;  %v3336_v50 = vpop.f32.mrb[32].mxu1 }
 0x698   : > { %v3354_v53 = vsub.f32 %v3345_v35, %v7987_v8  ;;  %v3346_v54 = vsub.f32 %v3077_v32, %v3208_v47  ;;  %v3347_v55 = vsub.f32 %v3336_v50, %v3074_v30  ;;  %v8743_v56 = vpop.f32.mrb[35].mxu0  ;;  %v8760_v57 = vpop.f32.mrb[33].mxu1 }
 0x699   : > { %v3339_v60 = vpop.f32.mrb[34].mxu1 }
 0x69a   : > { %v3355_v61 = vsub.f32 %v3346_v54, %v7988_v48  ;;  %v3349_v3 = vsub.f32 %v3347_v55, %v3205_v34  ;;  %v3348_v62 = vsub.f32 %v3339_v60, %v3077_v32  ;;  %v8761_v63 = vpop.f32.mrb[35].mxu1  ;;  %v3356_v2 = vsel %vm738_vm2, %v3354_v53, 0.0 }
 0x69c   : > { %v3357_v17 = vsel %vm739_vm3, %v3355_v61, 0.0  ;;  %v7992_v18 = vpack.c.bf16 %v3355_v61, %v3354_v53  ;;  %v3361_v10 = vsub.f32 %v3349_v3, %v7989_v58  ;;  %v3350_v11 = vsub.f32 %v3348_v62, %v3208_v47 }
 0x69d   : > { %v3365_v14 = vpack.c.bf16 %v3357_v17, %v3356_v2 }
 0x69e   : > { %v3363_v15 = vsel %vm738_vm2, %v3361_v10, 0.0  ;;  %v3362_v20 = vsub.f32 %v3350_v11, %v7990_v9  ;;  %8763 = vmatpush3.bf16.msk.msra.mxu0 %vm10966_vm4, %v7992_v18 }
 0x69f   : > { %v3366_v29 = vunpack.c.l.bf16 %v3365_v14  ;;  %v3367_v30 = vunpack.c.h.bf16 %v3365_v14  ;;  %v3377_v31 = vadd.f32 %v3363_v15, %v3356_v2  ;;  %8768 = vmatprep.subr.bf16.mxu0 %v10195_v0 }
 0x6a0   : > { %v3364_v32 = vsel %vm739_vm3, %v3362_v20, 0.0  ;;  %v8001_v33 = vpack.c.bf16 %v3362_v20, %v3361_v10 }
 0x6a1   : > { %v3369_v34 = vsub.f32 %v3357_v17, %v3367_v30  ;;  %v3371_v8 = vpack.c.bf16 %v3364_v32, %v3363_v15  ;;  %v3378_v35 = vadd.f32 %v3364_v32, %v3357_v17  ;;  %8765 = vmatmul.mubr.msk.bf16.vlgmr.msra.gmra.mrb[36].mxu0 %vm840_vm1, %v10805_v37  ;;  %v3368_v6 = vsub.f32 %v3356_v2, %v3366_v29 }
 0x6a2   : > { %8769 = vmatpush3.bf16.msk.msra.mxu0 %vm10966_vm4, %v7992_v18  ;;  %8781 = vmatpush3.bf16.msk.msra.mxu1 %vm10966_vm4, %v8001_v33 }
 0x6a3   : > { %v3372_v47 = vunpack.c.l.bf16 %v3371_v8  ;;  %v3373_v48 = vunpack.c.h.bf16 %v3371_v8  ;;  %8786 = vmatprep.subr.bf16.mxu1 %v10195_v0  ;;  %8770 = vmatprep.mubr.msk.bf16.mxu0 %vm10196_vm0, %v10195_v0  ;;  %v3370_v50 = vpack.c.bf16 %v3369_v34, %v3368_v6  ;;  %v3379_v53 = vpack.c.bf16 %v3378_v35, %v3377_v31 }
 0x6a4   : > { %8774 = vmatprep.subr.bf16.mxu0 %v10195_v0 }
 0x6a5   : > { %v3375_v54 = vsub.f32 %v3364_v32, %v3373_v48  ;;  %8783 = vmatmul.mubr.msk.bf16.vlgmr.msra.gmra.mrb[36].mxu1 %vm840_vm1, %v10807_v38  ;;  %v3374_v55 = vsub.f32 %v3363_v15, %v3372_v47  ;;  %v3380_v56 = vunpack.c.l.bf16 %v3379_v53  ;;  %v3381_v57 = vunpack.c.h.bf16 %v3379_v53 }
 0x6a6   : > { %8787 = vmatpush3.bf16.msk.msra.mxu1 %vm10966_vm4, %v8001_v33  ;;  %8788 = vmatprep.mubr.msk.bf16.mxu1 %vm10196_vm0, %v10195_v0 }
 0x6a7   : > { %8792 = vmatprep.subr.bf16.mxu1 %v10195_v0  ;;  %v3376_v58 = vpack.c.bf16 %v3375_v54, %v3374_v55  ;;  %v3382_v60 = vsub.f32 %v3377_v31, %v3380_v56  ;;  %v3383_v61 = vsub.f32 %v3378_v35, %v3381_v57 }
 0x6a9   : > { %v3384_v3 = vpack.c.bf16 %v3383_v61, %v3382_v60 }
 0x6ad   : > { %8771 = vmatmul.mubr.msk.bf16.vlgmr.msra.gmra.mrb[36].mxu0 %vm840_vm1, %v10791_v21 }
 0x6ae   : > { %8775 = vmatpush3.bf16.msra.mxu0 %v3370_v50  ;;  %8776 = vmatprep.mubr.msk.bf16.mxu0 %vm10196_vm0, %v10195_v0 }
 0x6af   : > { %8798 = vmatprep.subr.bf16.mxu0 %v10195_v0 }
 0x6b1   : > { %8789 = vmatmul.mubr.msk.bf16.vlgmr.msra.gmra.mrb[36].mxu1 %vm840_vm1, %v10795_v22 }
 0x6b2   : > { %8793 = vmatpush3.bf16.msra.mxu1 %v3376_v58  ;;  %8794 = vmatprep.mubr.msk.bf16.mxu1 %vm10196_vm0, %v10195_v0 }
 0x6b3   : > { %8816 = vmatprep.subr.bf16.mxu1 %v10195_v0 }
 0x6b9   : > { %8777 = vmatmul.mubr.msk.bf16.vlgmr.msra.gmra.mrb[36].mxu0 %vm840_vm1, %v10791_v21 }
 0x6ba   : > { %8799 = vmatpush3.bf16.msra.mxu0 %v3379_v53  ;;  %8800 = vmatprep.mubr.msk.bf16.mxu0 %vm10196_vm0, %v10195_v0 }
 0x6bb   : > { %8804 = vmatprep.subr.bf16.mxu0 %v10195_v0 }
 0x6bd   : > { %8795 = vmatmul.mubr.msk.bf16.vlgmr.msra.gmra.mrb[36].mxu1 %vm840_vm1, %v10795_v22 }
 0x6be   : > { %8817 = vmatpush3.bf16.msra.mxu1 %v10870_v12  ;;  %8818 = vmatprep.mubr.msk.bf16.mxu1 %vm10196_vm0, %v10195_v0 }
 0x6bf   : > { %8822 = vmatprep.subr.bf16.mxu1 %v10195_v0 }
 0x6c1   : > { %8801 = vmatmul.mubr.msk.bf16.vlgmr.msra.gmra.mrb[40].mxu0 %vm840_vm1, %v11022_v28 }
 0x6c2   : > { %8805 = vmatpush3.bf16.msra.mxu0 %v3379_v53  ;;  %8806 = vmatprep.mubr.msk.bf16.mxu0 %vm10196_vm0, %v10195_v0 }
 0x6c3   : > { %8810 = vmatprep.subr.bf16.mxu0 %v10195_v0 }
 0x6cd   : > { %8807 = vmatmul.mubr.msk.bf16.vlgmr.msra.gmra.mrb[40].mxu0 %vm840_vm1, %v11008_v26 }
 0x6ce   : > { %8811 = vmatpush3.bf16.msra.mxu0 %v3384_v3  ;;  %8812 = vmatprep.mubr.msk.bf16.mxu0 %vm10196_vm0, %v10195_v0 }
 0x6cf   : > { %8834 = vmatprep.subr.bf16.mxu0 %v10195_v0 }
 0x6d9   : > { %8813 = vmatmul.mubr.msk.bf16.vlgmr.msra.gmra.mrb[40].mxu0 %vm840_vm1, %v11008_v26 }
 0x6da   : > { %8835 = vmatpush3.bf16.msra.mxu0 %v10880_v16  ;;  %8836 = vmatprep.mubr.msk.bf16.mxu0 %vm10196_vm0, %v10195_v0 }
 0x6db   : > { %8840 = vmatprep.subr.bf16.mxu0 %v10195_v0 }
 0x78c   : > { %v3501_v62 = vpop.f32.mrb[36].mxu0 }
 0x78d   : > { %v8778_v63 = vpop.f32.mrb[37].mxu0 }
 0x78e   : > { %v3504_v2 = vpop.f32.mrb[38].mxu0 }
 0x78f   : > { %v8779_v9 = vpop.f32.mrb[39].mxu0 }
 0x790   : > { %v3626_v17 = vpop.f32.mrb[36].mxu1 }
 0x791   : > { %v3760_v18 = vadd.f32 %v3626_v17, %v3501_v62  ;;  %v8796_v10 = vpop.f32.mrb[37].mxu1 }
 0x792   : > { %v3629_v11 = vpop.f32.mrb[38].mxu1  ;;  %v11332_v10 = vld [vmem:[%s10711_s20 + $0x20] sm:$0xff] }
 0x793   : > { %v3761_v14 = vadd.f32 %v3629_v11, %v3504_v2  ;;  %v8797_v15 = vpop.f32.mrb[39].mxu1 }
 0x794   : > { %v11341_v15 = vld [vmem:[%s10717_s19 + $0x28] sm:$0xff] }
 0x795   : > { %v3766_v20 = vpack.c.bf16 %v3761_v14, %v3760_v18 }
 0x797   : > { %v3767_v29 = vunpack.c.l.bf16 %v3766_v20  ;;  %v3768_v30 = vunpack.c.h.bf16 %v3766_v20 }
 0x799   : > { %v3769_v31 = vsub.f32 %v3760_v18, %v3767_v29  ;;  %v3770_v32 = vsub.f32 %v3761_v14, %v3768_v30  ;;  %v11353_v30 = vld [vmem:[%s10687_s12 + $0x8] sm:$0xff] }
 0x79b   : > { %v3771_v33 = vpack.c.bf16 %v3770_v32, %v3769_v31  ;;  %v11358_v32 = vld [vmem:[%s10695_s18] sm:$0xff] }
 0x79d   : > { %8819 = vmatmul.mubr.msk.bf16.vlgmr.msra.gmra.mrb[40].mxu1 %vm840_vm1, %v3771_v33 }
 0x79e   : > { %8823 = vmatpush3.bf16.msra.mxu1 %v10870_v12  ;;  %8824 = vmatprep.mubr.msk.bf16.mxu1 %vm10196_vm0, %v10195_v0 }
 0x79f   : > { %8828 = vmatprep.subr.bf16.mxu1 %v10195_v0 }
 0x7a9   : > { %8825 = vmatmul.mubr.msk.bf16.vlgmr.msra.gmra.mrb[40].mxu1 %vm840_vm1, %v3766_v20 }
 0x7aa   : > { %8829 = vmatpush3.bf16.msra.mxu1 %v10893_v44  ;;  %8830 = vmatprep.mubr.msk.bf16.mxu1 %vm10196_vm0, %v10195_v0 }
 0x7ab   : > { %8852 = vmatprep.subr.bf16.mxu1 %v10195_v0 }
 0x7ac   : > { %v3751_v34 = vpop.f32.mrb[40].mxu0 }
 0x7ad   : > { %v3762_v8 = vsub.f32 %v3751_v34, %v3501_v62  ;;  %v8814_v35 = vpop.f32.mrb[41].mxu0  ;;  %v11363_v34 = vld [vmem:[%s10695_s18 + $0x8] sm:$0xff] }
 0x7ae   : > { %v3754_v6 = vpop.f32.mrb[42].mxu0  ;;  %v4213_v35 = vmul.f32 %v11358_v32, %v11332_v10 }
 0x7af   : > { %v3764_v47 = vadd.f32 %v3762_v8, %v3626_v17  ;;  %v3763_v48 = vsub.f32 %v3754_v6, %v3504_v2  ;;  %v8815_v50 = vpop.f32.mrb[43].mxu0  ;;  %v4210_v8 = vmul.f32 %v11363_v34, %v11341_v15 }
 0x7b1   : > { %v3778_v53 = vadd.f32 %v3764_v47, %v3760_v18  ;;  %v3765_v54 = vadd.f32 %v3763_v48, %v3629_v11  ;;  %v11335_v11 = vld [vmem:[%s10711_s20 + $0x28] sm:$0xff]  ;;  %v4216_v48 = vmul.f32 %v11353_v30, %v11341_v15 }
 0x7b2   : > { %v4208_v31 = vmul.f32 %v11353_v30, %v11335_v11  ;;  %v4214_v6 = vmul.f32 %v11363_v34, %v11335_v11 }
 0x7b3   : > { %v3772_v55 = vpack.c.bf16 %v3765_v54, %v3764_v47  ;;  %v3779_v56 = vadd.f32 %v3765_v54, %v3761_v14  ;;  %v11338_v14 = vld [vmem:[%s10717_s19 + $0x20] sm:$0xff] }
 0x7b4   : > { %v4209_v33 = vmul.f32 %v11358_v32, %v11338_v14 }
 0x7b5   : > { %v3773_v57 = vunpack.c.l.bf16 %v3772_v55  ;;  %v3774_v58 = vunpack.c.h.bf16 %v3772_v55  ;;  %v3780_v60 = vpack.c.bf16 %v3779_v56, %v3778_v53  ;;  %8831 = vmatmul.mubr.msk.bf16.vlgmr.msra.gmra.mrb[40].mxu1 %vm840_vm1, %v3766_v20  ;;  %v11345_v20 = vld [vmem:[%s10687_s12] sm:$0xff] }
 0x7b6   : > { %8853 = vmatpush3.bf16.msra.mxu1 %v11058_v23  ;;  %8854 = vmatprep.mubr.msk.bf16.mxu1 %vm10196_vm0, %v10195_v0  ;;  %v4207_v29 = vmul.f32 %v11345_v20, %v11332_v10 }
 0x7b7   : > { %v3775_v61 = vsub.f32 %v3764_v47, %v3773_v57  ;;  %v3776_v3 = vsub.f32 %v3765_v54, %v3774_v58  ;;  %v3781_v62 = vunpack.c.l.bf16 %v3780_v60  ;;  %v3782_v63 = vunpack.c.h.bf16 %v3780_v60  ;;  %8858 = vmatprep.subr.bf16.mxu1 %v10195_v0 }
 0x7b8   : > { %v4215_v47 = vmul.f32 %v11345_v20, %v11338_v14  ;;  %v4211_v50 = vsub.f32 %v4207_v29, %v4209_v33 }
 0x7b9   : > { %v3777_v2 = vpack.c.bf16 %v3776_v3, %v3775_v61  ;;  %v3783_v9 = vsub.f32 %v3778_v53, %v3781_v62  ;;  %v3784_v17 = vsub.f32 %v3779_v56, %v3782_v63  ;;  %v4212_v53 = vsub.f32 %v4208_v31, %v4210_v8 }
 0x7ba   : > { %v4217_v54 = vadd.f32 %v4215_v47, %v4213_v35  ;;  %v4218_v56 = vadd.f32 %v4216_v48, %v4214_v6 }
 0x7bb   : > { %v3785_v18 = vpack.c.bf16 %v3784_v17, %v3783_v9  ;;  %8837 = vmatmul.mubr.msk.bf16.vlgmr.msra.gmra.mrb[44].mxu0 %vm840_vm1, %v3777_v2  ;;  %v4219_v57 = vpack.c.bf16 %v4212_v53, %v4211_v50 }
 0x7bc   : > { %8841 = vmatpush3.bf16.msra.mxu0 %v10880_v16  ;;  %8842 = vmatprep.mubr.msk.bf16.mxu0 %vm10196_vm0, %v10195_v0  ;;  %v4225_v58 = vpack.c.bf16 %v4218_v56, %v4217_v54  ;;  %v4231_v29 = vadd.f32 %v4217_v54, %v4211_v50  ;;  %v4232_v31 = vadd.f32 %v4218_v56, %v4212_v53 }
 0x7bd   : > { %8855 = vmatmul.mubr.msk.bf16.vlgmr.msra.gmra.mrb[44].mxu1 %vm840_vm1, %v3785_v18  ;;  %8846 = vmatprep.subr.bf16.mxu0 %v10195_v0  ;;  %v4221_v61 = vunpack.c.h.bf16 %v4219_v57 }
 0x7be   : > { %8859 = vmatpush3.bf16.msra.mxu1 %v11058_v23  ;;  %8860 = vmatprep.mubr.msk.bf16.mxu1 %vm10196_vm0, %v10195_v0  ;;  %v4227_v3 = vunpack.c.h.bf16 %v4225_v58  ;;  %v4233_v33 = vpack.c.bf16 %v4232_v31, %v4231_v29 }
 0x7bf   : > { %8864 = vmatprep.subr.bf16.mxu1 %v10195_v0  ;;  %v4223_v63 = vsub.f32 %v4212_v53, %v4221_v61 }
 0x7c0   : > { %v4229_v9 = vsub.f32 %v4218_v56, %v4227_v3  ;;  %v4234_v8 = vunpack.c.l.bf16 %v4233_v33  ;;  %v4235_v35 = vunpack.c.h.bf16 %v4233_v33 }
 0x7c2   : > { %v4236_v6 = vsub.f32 %v4231_v29, %v4234_v8  ;;  %v4237_v47 = vsub.f32 %v4232_v31, %v4235_v35 }
 0x7c4   : > { %v4238_v48 = vpack.c.bf16 %v4237_v47, %v4236_v6 }
 0x7c7   : > { %8843 = vmatmul.mubr.msk.bf16.vlgmr.msra.gmra.mrb[44].mxu0 %vm840_vm1, %v3772_v55 }
 0x7c8   : > { %8847 = vmatpush3.bf16.msra.mxu0 %v10927_v39  ;;  %8848 = vmatprep.mubr.msk.bf16.mxu0 %vm10196_vm0, %v10195_v0 }
 0x7c9   : > { %8861 = vmatmul.mubr.msk.bf16.vlgmr.msra.gmra.mrb[44].mxu1 %vm840_vm1, %v3780_v60  ;;  %8870 = vmatprep.subr.bf16.mxu0 %v10195_v0 }
 0x7ca   : > { %8865 = vmatpush3.bf16.msra.mxu1 %v11089_v45  ;;  %8866 = vmatprep.mubr.msk.bf16.mxu1 %vm10196_vm0, %v10195_v0 }
 0x7cb   : > { %8888 = vmatprep.subr.bf16.mxu1 %v10195_v0 }
 0x7d3   : > { %8849 = vmatmul.mubr.msk.bf16.vlgmr.msra.gmra.mrb[44].mxu0 %vm840_vm1, %v3772_v55  ;;  %v4220_v55 = vunpack.c.l.bf16 %v4219_v57 }
 0x7d4   : > { %8871 = vmatpush3.bf16.msra.mxu0 %v4219_v57  ;;  %8872 = vmatprep.mubr.msk.bf16.mxu0 %vm10196_vm0, %v10195_v0 }
 0x7d5   : > { %8867 = vmatmul.mubr.msk.bf16.vlgmr.msra.gmra.mrb[44].mxu1 %vm840_vm1, %v3780_v60  ;;  %8876 = vmatprep.subr.bf16.mxu0 %v10195_v0  ;;  %v4226_v60 = vunpack.c.l.bf16 %v4225_v58  ;;  %v4222_v62 = vsub.f32 %v4211_v50, %v4220_v55 }
 0x7d6   : > { %8889 = vmatpush3.bf16.msra.mxu1 %v4225_v58  ;;  %8890 = vmatprep.mubr.msk.bf16.mxu1 %vm10196_vm0, %v10195_v0 }
 0x7d7   : > { %8894 = vmatprep.subr.bf16.mxu1 %v10195_v0  ;;  %v4228_v2 = vsub.f32 %v4217_v54, %v4226_v60  ;;  %v4224_v17 = vpack.c.bf16 %v4223_v63, %v4222_v62 }
 0x7d9   : > { %v4230_v18 = vpack.c.bf16 %v4229_v9, %v4228_v2 }
 0x7db   : > { %8873 = vmatmul.mubr.msk.bf16.vlgmr.msra.gmra.mrb[48].mxu0 %vm840_vm1, %v10805_v37 }
 0x7dc   : > { %8877 = vmatpush3.bf16.msra.mxu0 %v4219_v57  ;;  %8878 = vmatprep.mubr.msk.bf16.mxu0 %vm10196_vm0, %v10195_v0 }
 0x7dd   : > { %8891 = vmatmul.mubr.msk.bf16.vlgmr.msra.gmra.mrb[48].mxu1 %vm840_vm1, %v10807_v38  ;;  %8882 = vmatprep.subr.bf16.mxu0 %v10195_v0 }
 0x7de   : > { %8895 = vmatpush3.bf16.msra.mxu1 %v4225_v58  ;;  %8896 = vmatprep.mubr.msk.bf16.mxu1 %vm10196_vm0, %v10195_v0 }
 0x7df   : > { %8900 = vmatprep.subr.bf16.mxu1 %v10195_v0 }
 0x7e7   : > { %8879 = vmatmul.mubr.msk.bf16.vlgmr.msra.gmra.mrb[48].mxu0 %vm840_vm1, %v10791_v21 }
 0x7e8   : > { %8883 = vmatpush3.bf16.msra.mxu0 %v4224_v17  ;;  %8884 = vmatprep.mubr.msk.bf16.mxu0 %vm10196_vm0, %v10195_v0 }
 0x7e9   : > { %8897 = vmatmul.mubr.msk.bf16.vlgmr.msra.gmra.mrb[48].mxu1 %vm840_vm1, %v10795_v22  ;;  %8906 = vmatprep.subr.bf16.mxu0 %v10195_v0 }
 0x7ea   : > { %8901 = vmatpush3.bf16.msra.mxu1 %v4230_v18  ;;  %8902 = vmatprep.mubr.msk.bf16.mxu1 %vm10196_vm0, %v10195_v0 }
 0x7eb   : > { %8924 = vmatprep.subr.bf16.mxu1 %v10195_v0 }
 0x7f3   : > { %8885 = vmatmul.mubr.msk.bf16.vlgmr.msra.gmra.mrb[48].mxu0 %vm840_vm1, %v10791_v21 }
 0x7f4   : > { %8907 = vmatpush3.bf16.msra.mxu0 %v4233_v33  ;;  %8908 = vmatprep.mubr.msk.bf16.mxu0 %vm10196_vm0, %v10195_v0 }
 0x7f5   : > { %8903 = vmatmul.mubr.msk.bf16.vlgmr.msra.gmra.mrb[48].mxu1 %vm840_vm1, %v10795_v22  ;;  %8912 = vmatprep.subr.bf16.mxu0 %v10195_v0 }
 0x7f6   : > { %8925 = vmatpush3.bf16.msra.mxu1 %v10870_v12  ;;  %8926 = vmatprep.mubr.msk.bf16.mxu1 %vm10196_vm0, %v10195_v0 }
 0x7f7   : > { %8930 = vmatprep.subr.bf16.mxu1 %v10195_v0 }
 0x7fb   : > { %8909 = vmatmul.mubr.msk.bf16.vlgmr.msra.gmra.mrb[52].mxu0 %vm840_vm1, %v10848_v59 }
 0x7fc   : > { %8913 = vmatpush3.bf16.msra.mxu0 %v4233_v33  ;;  %8914 = vmatprep.mubr.msk.bf16.mxu0 %vm10196_vm0, %v10195_v0 }
 0x7fd   : > { %8918 = vmatprep.subr.bf16.mxu0 %v10195_v0 }
 0x807   : > { %8915 = vmatmul.mubr.msk.bf16.vlgmr.msra.gmra.mrb[52].mxu0 %vm840_vm1, %v10835_v51 }
 0x808   : > { %8919 = vmatpush3.bf16.msra.mxu0 %v4238_v48  ;;  %8920 = vmatprep.mubr.msk.bf16.mxu0 %vm10196_vm0, %v10195_v0 }
 0x809   : > { %8942 = vmatprep.subr.bf16.mxu0 %v10195_v0 }
 0x813   : > { %8921 = vmatmul.mubr.msk.bf16.vlgmr.msra.gmra.mrb[52].mxu0 %vm840_vm1, %v10835_v51 }
 0x814   : > { %8943 = vmatpush3.bf16.msra.mxu0 %v10880_v16  ;;  %8944 = vmatprep.mubr.msk.bf16.mxu0 %vm10196_vm0, %v10195_v0 }
 0x815   : > { %8948 = vmatprep.subr.bf16.mxu0 %v10195_v0 }
 0x888   : > { %v3908_v50 = vpop.f32.mrb[40].mxu1 }
 0x889   : > { %v8832_v53 = vpop.f32.mrb[41].mxu1 }
 0x88a   : > { %v3911_v54 = vpop.f32.mrb[42].mxu1 }
 0x88b   : > { %v8833_v56 = vpop.f32.mrb[43].mxu1 }
 0x8a6   : > { %v4039_v57 = vpop.f32.mrb[44].mxu0 }
 0x8a7   : > { %v4179_v58 = vadd.f32 %v4039_v57, %v3908_v50  ;;  %v8850_v55 = vpop.f32.mrb[45].mxu0 }
 0x8a8   : > { %v4042_v61 = vpop.f32.mrb[46].mxu0  ;;  %v4170_v60 = vpop.f32.mrb[44].mxu1 }
 0x8a9   : > { %v4180_v3 = vadd.f32 %v4042_v61, %v3911_v54  ;;  %v4181_v62 = vsub.f32 %v4170_v60, %v3908_v50  ;;  %v8851_v63 = vpop.f32.mrb[47].mxu0  ;;  %v8868_v2 = vpop.f32.mrb[45].mxu1  ;;  %v4185_v31 = vmul.f32 %v11078_v36, %v4179_v58  ;;  %v4195_v33 = vmul.f32 %v11084_v42, %v4179_v58 }
 0x8aa   : > { %v4173_v9 = vpop.f32.mrb[46].mxu1 }
 0x8ab   : > { %v4183_v17 = vadd.f32 %v4181_v62, %v4039_v57  ;;  %v4182_v18 = vsub.f32 %v4173_v9, %v3911_v54  ;;  %v8869_v29 = vpop.f32.mrb[47].mxu1  ;;  %v4186_v47 = vmul.f32 %v11081_v41, %v4180_v3  ;;  %v4196_v48 = vmul.f32 %v11087_v43, %v4180_v3 }
 0x8ad   : > { %v4187_v8 = vmul.f32 %v11084_v42, %v4183_v17  ;;  %v4193_v35 = vmul.f32 %v11078_v36, %v4183_v17  ;;  %v4184_v6 = vadd.f32 %v4182_v18, %v4042_v61 }
 0x8af   : > { %v4189_v50 = vadd.f32 %v4187_v8, %v4185_v31  ;;  %v4197_v53 = vsub.f32 %v4193_v35, %v4195_v33  ;;  %v4188_v56 = vmul.f32 %v11087_v43, %v4184_v6  ;;  %v4194_v54 = vmul.f32 %v11081_v41, %v4184_v6 }
 0x8b1   : > { %v11445_v57 = vadd.f32 %v4189_v50, %v11184_v24  ;;  %v11450_v42 = vadd.f32 %v4197_v53, %v2509_v13  ;;  %v4190_v36 = vadd.f32 %v4188_v56, %v4186_v47  ;;  %v4198_v58 = vsub.f32 %v4194_v54, %v4196_v48 }
 0x8b3   : > { %v11453_v55 = vadd.f32 %v4190_v36, %v11192_v7  ;;  %v11458_v61 = vadd.f32 %v4198_v58, %v2510_v5 }
 0x8c6   : > { %v4355_v43 = vpop.f32.mrb[48].mxu0 }
 0x8c7   : > { %v8886_v41 = vpop.f32.mrb[49].mxu0 }
 0x8c8   : > { %v4358_v60 = vpop.f32.mrb[50].mxu0  ;;  %v4480_v24 = vpop.f32.mrb[48].mxu1 }
 0x8c9   : > { %v4614_v3 = vsub.f32 %v4355_v43, %v4480_v24  ;;  %v8887_v62 = vpop.f32.mrb[51].mxu0  ;;  %v8904_v63 = vpop.f32.mrb[49].mxu1 }
 0x8ca   : > { %v4483_v1 = vpop.f32.mrb[50].mxu1 }
 0x8cb   : > { %v4615_v4 = vsub.f32 %v4358_v60, %v4483_v1  ;;  %v8905_v13 = vpop.f32.mrb[51].mxu1 }
 0x8cd   : > { %v4620_v2 = vpack.c.bf16 %v4615_v4, %v4614_v3 }
 0x8cf   : > { %v4621_v9 = vunpack.c.l.bf16 %v4620_v2  ;;  %v4622_v17 = vunpack.c.h.bf16 %v4620_v2 }
 0x8d1   : > { %v4623_v7 = vsub.f32 %v4614_v3, %v4621_v9  ;;  %v4624_v18 = vsub.f32 %v4615_v4, %v4622_v17  ;;  %v8043_v9 = vld [vmem:[%s10702_s8 + $0x20] sm:$0xff] }
 0x8d3   : > { %v4625_v29 = vpack.c.bf16 %v4624_v18, %v4623_v7 }
 0x8d5   : > { %8927 = vmatmul.mubr.msk.bf16.vlgmr.msra.gmra.mrb[52].mxu1 %vm840_vm1, %v4625_v29  ;;  %v8044_v29 = vld [vmem:[%s10702_s8 + $0x28] sm:$0xff] }
 0x8d6   : > { %8931 = vmatpush3.bf16.msra.mxu1 %v10870_v12  ;;  %8932 = vmatprep.mubr.msk.bf16.mxu1 %vm10196_vm0, %v10195_v0 }
 0x8d7   : > { %8936 = vmatprep.subr.bf16.mxu1 %v10195_v0 }
 0x8e1   : > { %8933 = vmatmul.mubr.msk.bf16.vlgmr.msra.gmra.mrb[52].mxu1 %vm840_vm1, %v4620_v2 }
 0x8e2   : > { %8937 = vmatpush3.bf16.msra.mxu1 %v10893_v44  ;;  %8938 = vmatprep.mubr.msk.bf16.mxu1 %vm10196_vm0, %v10195_v0 }
 0x8e3   : > { %8960 = vmatprep.subr.bf16.mxu1 %v10195_v0 }
 0x8e6   : > { %v4605_v25 = vpop.f32.mrb[52].mxu0 }
 0x8e7   : > { %v4616_v19 = vsub.f32 %v4605_v25, %v4355_v43  ;;  %v8922_v5 = vpop.f32.mrb[53].mxu0 }
 0x8e8   : > { %v4608_v31 = vpop.f32.mrb[54].mxu0 }
 0x8e9   : > { %v4618_v33 = vsub.f32 %v4616_v19, %v4480_v24  ;;  %v4617_v8 = vsub.f32 %v4608_v31, %v4358_v60  ;;  %v8923_v35 = vpop.f32.mrb[55].mxu0 }
 0x8ea   : > { %v8045_v35 = vld [vmem:[%s10704_s26 + $0x20] sm:$0xff] }
 0x8eb   : > { %v4632_v6 = vadd.f32 %v4618_v33, %v4614_v3  ;;  %v4619_v47 = vsub.f32 %v4617_v8, %v4483_v1 }
 0x8ed   : > { %v4626_v48 = vpack.c.bf16 %v4619_v47, %v4618_v33  ;;  %v4633_v50 = vadd.f32 %v4619_v47, %v4615_v4  ;;  %8939 = vmatmul.mubr.msk.bf16.vlgmr.msra.gmra.mrb[52].mxu1 %vm840_vm1, %v4620_v2 }
 0x8ee   : > { %8961 = vmatpush3.bf16.msra.mxu1 %v10904_v52  ;;  %8962 = vmatprep.mubr.msk.bf16.mxu1 %vm10196_vm0, %v10195_v0 }
 0x8ef   : > { %v4627_v53 = vunpack.c.l.bf16 %v4626_v48  ;;  %v4628_v56 = vunpack.c.h.bf16 %v4626_v48  ;;  %v4634_v54 = vpack.c.bf16 %v4633_v50, %v4632_v6  ;;  %8966 = vmatprep.subr.bf16.mxu1 %v10195_v0 }
 0x8f1   : > { %v4629_v36 = vsub.f32 %v4618_v33, %v4627_v53  ;;  %v4630_v58 = vsub.f32 %v4619_v47, %v4628_v56  ;;  %v4635_v43 = vunpack.c.l.bf16 %v4634_v54  ;;  %v4636_v41 = vunpack.c.h.bf16 %v4634_v54 }
 0x8f3   : > { %v4631_v60 = vpack.c.bf16 %v4630_v58, %v4629_v36  ;;  %v4637_v24 = vsub.f32 %v4632_v6, %v4635_v43  ;;  %v4638_v3 = vsub.f32 %v4633_v50, %v4636_v41 }
 0x8f5   : > { %v4639_v62 = vpack.c.bf16 %v4638_v3, %v4637_v24  ;;  %8945 = vmatmul.mubr.msk.bf16.vlgmr.msra.gmra.mrb[56].mxu0 %vm840_vm1, %v4631_v60 }
 0x8f6   : > { %8949 = vmatpush3.bf16.msra.mxu0 %v10880_v16  ;;  %8950 = vmatprep.mubr.msk.bf16.mxu0 %vm10196_vm0, %v10195_v0 }
 0x8f7   : > { %8963 = vmatmul.mubr.msk.bf16.vlgmr.msra.gmra.mrb[56].mxu1 %vm840_vm1, %v4639_v62  ;;  %8954 = vmatprep.subr.bf16.mxu0 %v10195_v0 }
 0x8f8   : > { %8967 = vmatpush3.bf16.msra.mxu1 %v10904_v52  ;;  %8968 = vmatprep.mubr.msk.bf16.mxu1 %vm10196_vm0, %v10195_v0 }
 0x8f9   : > { %8972 = vmatprep.subr.bf16.mxu1 %v10195_v0 }
 0x901   : > { %8951 = vmatmul.mubr.msk.bf16.vlgmr.msra.gmra.mrb[56].mxu0 %vm840_vm1, %v4626_v48 }
 0x902   : > { %8955 = vmatpush3.bf16.msra.mxu0 %v10927_v39  ;;  %8956 = vmatprep.mubr.msk.bf16.mxu0 %vm10196_vm0, %v10195_v0 }
 0x903   : > { %8969 = vmatmul.mubr.msk.bf16.vlgmr.msra.gmra.mrb[56].mxu1 %vm840_vm1, %v4634_v54  ;;  %8978 = vmatprep.subr.bf16.mxu0 %v10195_v0 }
 0x904   : > { %8973 = vmatpush3.bf16.msra.mxu1 %v10929_v40  ;;  %8974 = vmatprep.mubr.msk.bf16.mxu1 %vm10196_vm0, %v10195_v0 }
 0x905   : > { %8996 = vmatprep.subr.bf16.mxu1 %v10195_v0 }
 0x90d   : > { %8957 = vmatmul.mubr.msk.bf16.vlgmr.msra.gmra.mrb[56].mxu0 %vm840_vm1, %v4626_v48 }
 0x90e   : > { %8980 = vmatprep.mubr.msk.bf16.mxu0 %vm10196_vm0, %v10195_v0 }
 0x90f   : > { %8975 = vmatmul.mubr.msk.bf16.vlgmr.msra.gmra.mrb[56].mxu1 %vm840_vm1, %v4634_v54  ;;  %v8046_v54 = vld [vmem:[%s10704_s26 + $0x28] sm:$0xff] }
 0x910   : > { %8998 = vmatprep.mubr.msk.bf16.mxu1 %vm10196_vm0, %v10195_v0 }
 0x9c0   : > { %v4762_v63 = vpop.f32.mrb[52].mxu1 }
 0x9c1   : > { %v8940_v1 = vpop.f32.mrb[53].mxu1 }
 0x9c2   : > { %v4765_v4 = vpop.f32.mrb[54].mxu1 }
 0x9c3   : > { %v8941_v13 = vpop.f32.mrb[55].mxu1 }
 0x9e0   : > { %v4893_v2 = vpop.f32.mrb[56].mxu0 }
 0x9e1   : > { %v5033_v17 = vsub.f32 %v4762_v63, %v4893_v2  ;;  %v8958_v7 = vpop.f32.mrb[57].mxu0 }
 0x9e2   : > { %v4896_v18 = vpop.f32.mrb[58].mxu0  ;;  %v5024_v25 = vpop.f32.mrb[56].mxu1 }
 0x9e3   : > { %v5042_v19 = vsub.f32 %v5033_v17, %v8043_v9  ;;  %v5034_v5 = vsub.f32 %v4765_v4, %v4896_v18  ;;  %v5035_v31 = vsub.f32 %v5024_v25, %v4762_v63  ;;  %v8959_v33 = vpop.f32.mrb[59].mxu0  ;;  %v8976_v8 = vpop.f32.mrb[57].mxu1 }
 0x9e4   : > { %v5027_v6 = vpop.f32.mrb[58].mxu1 }
 0x9e5   : > { %v5043_v47 = vsub.f32 %v5034_v5, %v8044_v29  ;;  %v5037_v48 = vsub.f32 %v5035_v31, %v4893_v2  ;;  %v5036_v50 = vsub.f32 %v5027_v6, %v4765_v4  ;;  %v8977_v53 = vpop.f32.mrb[59].mxu1  ;;  %v5044_v56 = vsel %vm738_vm2, %v5042_v19, 0.0 }
 0x9e7   : > { %v5045_v36 = vsel %vm739_vm3, %v5043_v47, 0.0  ;;  %v8048_v58 = vpack.c.bf16 %v5043_v47, %v5042_v19  ;;  %v5049_v43 = vsub.f32 %v5037_v48, %v8045_v35  ;;  %v5038_v41 = vsub.f32 %v5036_v50, %v4896_v18 }
 0x9e8   : > { %v5053_v60 = vpack.c.bf16 %v5045_v36, %v5044_v56 }
 0x9e9   : > { %v5051_v24 = vsel %vm738_vm2, %v5049_v43, 0.0  ;;  %v5050_v3 = vsub.f32 %v5038_v41, %v8046_v54  ;;  %8979 = vmatpush3.bf16.msk.msra.mxu0 %vm10966_vm4, %v8048_v58 }
 0x9ea   : > { %v5054_v62 = vunpack.c.l.bf16 %v5053_v60  ;;  %v5055_v63 = vunpack.c.h.bf16 %v5053_v60  ;;  %v5065_v1 = vadd.f32 %v5051_v24, %v5044_v56  ;;  %8984 = vmatprep.subr.bf16.mxu0 %v10195_v0 }
 0x9eb   : > { %v5052_v4 = vsel %vm739_vm3, %v5050_v3, 0.0  ;;  %v8057_v13 = vpack.c.bf16 %v5050_v3, %v5049_v43 }
 0x9ec   : > { %v5057_v2 = vsub.f32 %v5045_v36, %v5055_v63  ;;  %v5059_v9 = vpack.c.bf16 %v5052_v4, %v5051_v24  ;;  %v5066_v17 = vadd.f32 %v5052_v4, %v5045_v36  ;;  %8981 = vmatmul.mubr.msk.bf16.vlgmr.msra.gmra.mrb[60].mxu0 %vm840_vm1, %v10805_v37  ;;  %v5056_v7 = vsub.f32 %v5044_v56, %v5054_v62 }
 0x9ed   : > { %8985 = vmatpush3.bf16.msk.msra.mxu0 %vm10966_vm4, %v8048_v58  ;;  %8997 = vmatpush3.bf16.msk.msra.mxu1 %vm10966_vm4, %v8057_v13 }
 0x9ee   : > { %v5060_v18 = vunpack.c.l.bf16 %v5059_v9  ;;  %v5061_v29 = vunpack.c.h.bf16 %v5059_v9  ;;  %9002 = vmatprep.subr.bf16.mxu1 %v10195_v0  ;;  %8986 = vmatprep.mubr.msk.bf16.mxu0 %vm10196_vm0, %v10195_v0  ;;  %v5058_v25 = vpack.c.bf16 %v5057_v2, %v5056_v7  ;;  %v5067_v19 = vpack.c.bf16 %v5066_v17, %v5065_v1 }
 0x9ef   : > { %8990 = vmatprep.subr.bf16.mxu0 %v10195_v0 }
 0x9f0   : > { %v5063_v5 = vsub.f32 %v5052_v4, %v5061_v29  ;;  %8999 = vmatmul.mubr.msk.bf16.vlgmr.msra.gmra.mrb[60].mxu1 %vm840_vm1, %v10807_v38  ;;  %v5062_v31 = vsub.f32 %v5051_v24, %v5060_v18  ;;  %v5068_v33 = vunpack.c.l.bf16 %v5067_v19  ;;  %v5069_v8 = vunpack.c.h.bf16 %v5067_v19 }
 0x9f1   : > { %9003 = vmatpush3.bf16.msk.msra.mxu1 %vm10966_vm4, %v8057_v13  ;;  %9004 = vmatprep.mubr.msk.bf16.mxu1 %vm10196_vm0, %v10195_v0 }
 0x9f2   : > { %9008 = vmatprep.subr.bf16.mxu1 %v10195_v0  ;;  %v5064_v35 = vpack.c.bf16 %v5063_v5, %v5062_v31  ;;  %v5070_v6 = vsub.f32 %v5065_v1, %v5068_v33  ;;  %v5071_v47 = vsub.f32 %v5066_v17, %v5069_v8 }
 0x9f4   : > { %v5072_v48 = vpack.c.bf16 %v5071_v47, %v5070_v6 }
 0x9f8   : > { %8987 = vmatmul.mubr.msk.bf16.vlgmr.msra.gmra.mrb[60].mxu0 %vm840_vm1, %v10791_v21 }
 0x9f9   : > { %8991 = vmatpush3.bf16.msra.mxu0 %v5058_v25  ;;  %8992 = vmatprep.mubr.msk.bf16.mxu0 %vm10196_vm0, %v10195_v0 }
 0x9fa   : > { %9014 = vmatprep.subr.bf16.mxu0 %v10195_v0 }
 0x9fc   : > { %9005 = vmatmul.mubr.msk.bf16.vlgmr.msra.gmra.mrb[60].mxu1 %vm840_vm1, %v10795_v22 }
 0x9fd   : > { %9009 = vmatpush3.bf16.msra.mxu1 %v5064_v35  ;;  %9010 = vmatprep.mubr.msk.bf16.mxu1 %vm10196_vm0, %v10195_v0 }
 0x9fe   : > { %9032 = vmatprep.subr.bf16.mxu1 %v10195_v0 }
 0xa04   : > { %8993 = vmatmul.mubr.msk.bf16.vlgmr.msra.gmra.mrb[60].mxu0 %vm840_vm1, %v10791_v21 }
 0xa05   : > { %9015 = vmatpush3.bf16.msra.mxu0 %v5067_v19  ;;  %9016 = vmatprep.mubr.msk.bf16.mxu0 %vm10196_vm0, %v10195_v0 }
 0xa06   : > { %9020 = vmatprep.subr.bf16.mxu0 %v10195_v0 }
 0xa08   : > { %9011 = vmatmul.mubr.msk.bf16.vlgmr.msra.gmra.mrb[60].mxu1 %vm840_vm1, %v10795_v22 }
 0xa09   : > { %9033 = vmatpush3.bf16.msra.mxu1 %v10870_v12  ;;  %9034 = vmatprep.mubr.msk.bf16.mxu1 %vm10196_vm0, %v10195_v0 }
 0xa0a   : > { %9038 = vmatprep.subr.bf16.mxu1 %v10195_v0 }
 0xa0c   : > { %9017 = vmatmul.mubr.msk.bf16.vlgmr.msra.gmra.mrb[64].mxu0 %vm840_vm1, %v11022_v28 }
 0xa0d   : > { %9021 = vmatpush3.bf16.msra.mxu0 %v5067_v19  ;;  %9022 = vmatprep.mubr.msk.bf16.mxu0 %vm10196_vm0, %v10195_v0 }
 0xa0e   : > { %9026 = vmatprep.subr.bf16.mxu0 %v10195_v0 }
 0xa18   : > { %9023 = vmatmul.mubr.msk.bf16.vlgmr.msra.gmra.mrb[64].mxu0 %vm840_vm1, %v11008_v26 }
 0xa19   : > { %9027 = vmatpush3.bf16.msra.mxu0 %v5072_v48  ;;  %9028 = vmatprep.mubr.msk.bf16.mxu0 %vm10196_vm0, %v10195_v0 }
 0xa1a   : > { %9050 = vmatprep.subr.bf16.mxu0 %v10195_v0 }
 0xa24   : > { %9029 = vmatmul.mubr.msk.bf16.vlgmr.msra.gmra.mrb[64].mxu0 %vm840_vm1, %v11008_v26 }
 0xa25   : > { %9051 = vmatpush3.bf16.msra.mxu0 %v10880_v16  ;;  %9052 = vmatprep.mubr.msk.bf16.mxu0 %vm10196_vm0, %v10195_v0 }
 0xa26   : > { %9056 = vmatprep.subr.bf16.mxu0 %v10195_v0 }
 0xad7   : > { %v5189_v50 = vpop.f32.mrb[60].mxu0 }
 0xad8   : > { %v8994_v53 = vpop.f32.mrb[61].mxu0 }
 0xad9   : > { %v5192_v56 = vpop.f32.mrb[62].mxu0 }
 0xada   : > { %v8995_v54 = vpop.f32.mrb[63].mxu0 }
 0xadb   : > { %v5314_v36 = vpop.f32.mrb[60].mxu1 }
 0xadc   : > { %v5448_v58 = vadd.f32 %v5314_v36, %v5189_v50  ;;  %v9012_v43 = vpop.f32.mrb[61].mxu1 }
 0xadd   : > { %v5317_v41 = vpop.f32.mrb[62].mxu1  ;;  %v11596_v43 = vld [vmem:[%s10711_s20 + $0x30] sm:$0xff] }
 0xade   : > { %v5449_v60 = vadd.f32 %v5317_v41, %v5192_v56  ;;  %v9013_v24 = vpop.f32.mrb[63].mxu1 }
 0xadf   : > { %v11605_v24 = vld [vmem:[%s10717_s19 + $0x38] sm:$0xff] }
 0xae0   : > { %v5454_v3 = vpack.c.bf16 %v5449_v60, %v5448_v58 }
 0xae2   : > { %v5455_v62 = vunpack.c.l.bf16 %v5454_v3  ;;  %v5456_v63 = vunpack.c.h.bf16 %v5454_v3 }
 0xae4   : > { %v5457_v1 = vsub.f32 %v5448_v58, %v5455_v62  ;;  %v5458_v4 = vsub.f32 %v5449_v60, %v5456_v63 }
 0xae6   : > { %v5459_v13 = vpack.c.bf16 %v5458_v4, %v5457_v1  ;;  %v5898_v1 = vmul.f32 %v11363_v34, %v11605_v24  ;;  %v5901_v4 = vmul.f32 %v11358_v32, %v11596_v43 }
 0xae8   : > { %9035 = vmatmul.mubr.msk.bf16.vlgmr.msra.gmra.mrb[64].mxu1 %vm840_vm1, %v5459_v13 }
 0xae9   : > { %9039 = vmatpush3.bf16.msra.mxu1 %v10870_v12  ;;  %9040 = vmatprep.mubr.msk.bf16.mxu1 %vm10196_vm0, %v10195_v0 }
 0xaea   : > { %9044 = vmatprep.subr.bf16.mxu1 %v10195_v0 }
 0xaf4   : > { %9041 = vmatmul.mubr.msk.bf16.vlgmr.msra.gmra.mrb[64].mxu1 %vm840_vm1, %v5454_v3 }
 0xaf5   : > { %9045 = vmatpush3.bf16.msra.mxu1 %v10893_v44  ;;  %9046 = vmatprep.mubr.msk.bf16.mxu1 %vm10196_vm0, %v10195_v0 }
 0xaf6   : > { %9068 = vmatprep.subr.bf16.mxu1 %v10195_v0 }
 0xaf7   : > { %v5439_v2 = vpop.f32.mrb[64].mxu0 }
 0xaf8   : > { %v5450_v9 = vsub.f32 %v5439_v2, %v5189_v50  ;;  %v9030_v17 = vpop.f32.mrb[65].mxu0 }
 0xaf9   : > { %v5442_v7 = vpop.f32.mrb[66].mxu0 }
 0xafa   : > { %v5452_v18 = vadd.f32 %v5450_v9, %v5314_v36  ;;  %v5451_v29 = vsub.f32 %v5442_v7, %v5192_v56  ;;  %v9031_v25 = vpop.f32.mrb[67].mxu0  ;;  %v5904_v9 = vmul.f32 %v11353_v30, %v11605_v24 }
 0xafc   : > { %v5466_v19 = vadd.f32 %v5452_v18, %v5448_v58  ;;  %v5453_v5 = vadd.f32 %v5451_v29, %v5317_v41  ;;  %v11599_v41 = vld [vmem:[%s10711_s20 + $0x38] sm:$0xff] }
 0xafd   : > { %v5896_v62 = vmul.f32 %v11353_v30, %v11599_v41  ;;  %v5902_v13 = vmul.f32 %v11363_v34, %v11599_v41 }
 0xafe   : > { %v5460_v31 = vpack.c.bf16 %v5453_v5, %v5452_v18  ;;  %v5467_v33 = vadd.f32 %v5453_v5, %v5449_v60  ;;  %v11602_v60 = vld [vmem:[%s10717_s19 + $0x30] sm:$0xff]  ;;  %s730_s19 = scalar_lea.vmem [#allocation19], %s10683_s14  ;;  %s7592_s14 = scalar_lea.sflag [#allocation5], %s10680_s4 }
 0xaff   : > { %v5897_v63 = vmul.f32 %v11358_v32, %v11602_v60  ;;  %v5903_v2 = vmul.f32 %v11345_v20, %v11602_v60  ;;  %v5900_v7 = vsub.f32 %v5896_v62, %v5898_v1  ;;  %v5906_v32 = vadd.f32 %v5904_v9, %v5902_v13  ;;  %s7626_s22 = sshll.u32 %s730_s19, 4  ;;  %s11886_s22 = int_to_ptr.vmem [resolvable:$true] %s7626_s22 }
 0xb00   : > { %v5461_v8 = vunpack.c.l.bf16 %v5460_v31  ;;  %v5462_v35 = vunpack.c.h.bf16 %v5460_v31  ;;  %v5468_v6 = vpack.c.bf16 %v5467_v33, %v5466_v19  ;;  %9047 = vmatmul.mubr.msk.bf16.vlgmr.msra.gmra.mrb[64].mxu1 %vm840_vm1, %v5454_v3  ;;  %v5895_v3 = vmul.f32 %v11345_v20, %v11596_v43 }
 0xb01   : > { %9069 = vmatpush3.bf16.msra.mxu1 %v11058_v23  ;;  %9070 = vmatprep.mubr.msk.bf16.mxu1 %vm10196_vm0, %v10195_v0 }
 0xb02   : > { %v5463_v47 = vsub.f32 %v5452_v18, %v5461_v8  ;;  %v5464_v48 = vsub.f32 %v5453_v5, %v5462_v35  ;;  %v5469_v50 = vunpack.c.l.bf16 %v5468_v6  ;;  %v5470_v53 = vunpack.c.h.bf16 %v5468_v6  ;;  %9074 = vmatprep.subr.bf16.mxu1 %v10195_v0 }
 0xb03   : > { %v5899_v17 = vsub.f32 %v5895_v3, %v5897_v63  ;;  %v5905_v18 = vadd.f32 %v5903_v2, %v5901_v4 }
 0xb04   : > { %v5465_v56 = vpack.c.bf16 %v5464_v48, %v5463_v47  ;;  %v5471_v54 = vsub.f32 %v5466_v19, %v5469_v50  ;;  %v5472_v36 = vsub.f32 %v5467_v33, %v5470_v53  ;;  %v5920_v48 = vadd.f32 %v5906_v32, %v5900_v7 }
 0xb05   : > { %v5907_v29 = vpack.c.bf16 %v5900_v7, %v5899_v17  ;;  %v5913_v25 = vpack.c.bf16 %v5906_v32, %v5905_v18  ;;  %v5919_v47 = vadd.f32 %v5905_v18, %v5899_v17 }
 0xb06   : > { %v5473_v58 = vpack.c.bf16 %v5472_v36, %v5471_v54  ;;  %9053 = vmatmul.mubr.msk.bf16.vlgmr.msra.gmra.mrb[68].mxu0 %vm840_vm1, %v5465_v56 }
 0xb07   : > { %9057 = vmatpush3.bf16.msra.mxu0 %v10880_v16  ;;  %9058 = vmatprep.mubr.msk.bf16.mxu0 %vm10196_vm0, %v10195_v0  ;;  %v5908_v20 = vunpack.c.l.bf16 %v5907_v29  ;;  %v5909_v30 = vunpack.c.h.bf16 %v5907_v29  ;;  %v5914_v34 = vunpack.c.l.bf16 %v5913_v25  ;;  %v5915_v19 = vunpack.c.h.bf16 %v5913_v25 }
 0xb08   : > { %9071 = vmatmul.mubr.msk.bf16.vlgmr.msra.gmra.mrb[68].mxu1 %vm840_vm1, %v5473_v58  ;;  %9062 = vmatprep.subr.bf16.mxu0 %v10195_v0  ;;  %v5921_v50 = vpack.c.bf16 %v5920_v48, %v5919_v47 }
 0xb09   : > { %9075 = vmatpush3.bf16.msra.mxu1 %v11058_v23  ;;  %9076 = vmatprep.mubr.msk.bf16.mxu1 %vm10196_vm0, %v10195_v0  ;;  %v5910_v5 = vsub.f32 %v5899_v17, %v5908_v20  ;;  %v5916_v33 = vsub.f32 %v5905_v18, %v5914_v34  ;;  %v5917_v8 = vsub.f32 %v5906_v32, %v5915_v19 }
 0xb0a   : > { %9080 = vmatprep.subr.bf16.mxu1 %v10195_v0  ;;  %v5922_v53 = vunpack.c.l.bf16 %v5921_v50  ;;  %v5923_v56 = vunpack.c.h.bf16 %v5921_v50 }
 0xb0c   : > { %v5924_v54 = vsub.f32 %v5919_v47, %v5922_v53  ;;  %v5925_v36 = vsub.f32 %v5920_v48, %v5923_v56 }
 0xb0e   : > { %v5926_v58 = vpack.c.bf16 %v5925_v36, %v5924_v54 }
 0xb12   : > { %9059 = vmatmul.mubr.msk.bf16.vlgmr.msra.gmra.mrb[68].mxu0 %vm840_vm1, %v5460_v31 }
 0xb13   : > { %9063 = vmatpush3.bf16.msra.mxu0 %v10927_v39  ;;  %9064 = vmatprep.mubr.msk.bf16.mxu0 %vm10196_vm0, %v10195_v0 }
 0xb14   : > { %9077 = vmatmul.mubr.msk.bf16.vlgmr.msra.gmra.mrb[68].mxu1 %vm840_vm1, %v5468_v6  ;;  %9086 = vmatprep.subr.bf16.mxu0 %v10195_v0 }
 0xb15   : > { %9081 = vmatpush3.bf16.msra.mxu1 %v11089_v45  ;;  %9082 = vmatprep.mubr.msk.bf16.mxu1 %vm10196_vm0, %v10195_v0 }
 0xb16   : > { %9104 = vmatprep.subr.bf16.mxu1 %v10195_v0 }
 0xb1e   : > { %9065 = vmatmul.mubr.msk.bf16.vlgmr.msra.gmra.mrb[68].mxu0 %vm840_vm1, %v5460_v31  ;;  %v5911_v31 = vsub.f32 %v5900_v7, %v5909_v30 }
 0xb1f   : > { %9087 = vmatpush3.bf16.msra.mxu0 %v5907_v29  ;;  %9088 = vmatprep.mubr.msk.bf16.mxu0 %vm10196_vm0, %v10195_v0 }
 0xb20   : > { %9083 = vmatmul.mubr.msk.bf16.vlgmr.msra.gmra.mrb[68].mxu1 %vm840_vm1, %v5468_v6  ;;  %9092 = vmatprep.subr.bf16.mxu0 %v10195_v0  ;;  %v5912_v35 = vpack.c.bf16 %v5911_v31, %v5910_v5  ;;  %v5918_v6 = vpack.c.bf16 %v5917_v8, %v5916_v33 }
 0xb21   : > { %9105 = vmatpush3.bf16.msra.mxu1 %v5913_v25  ;;  %9106 = vmatprep.mubr.msk.bf16.mxu1 %vm10196_vm0, %v10195_v0 }
 0xb22   : > { %9110 = vmatprep.subr.bf16.mxu1 %v10195_v0 }
 0xb26   : > { %9089 = vmatmul.mubr.msk.bf16.vlgmr.msra.gmra.mrb[72].mxu0 %vm840_vm1, %v10805_v37 }
 0xb27   : > { %9093 = vmatpush3.bf16.msra.mxu0 %v5907_v29  ;;  %9094 = vmatprep.mubr.msk.bf16.mxu0 %vm10196_vm0, %v10195_v0 }
 0xb28   : > { %9107 = vmatmul.mubr.msk.bf16.vlgmr.msra.gmra.mrb[72].mxu1 %vm840_vm1, %v10807_v38  ;;  %9098 = vmatprep.subr.bf16.mxu0 %v10195_v0 }
 0xb29   : > { %9111 = vmatpush3.bf16.msra.mxu1 %v5913_v25  ;;  %9112 = vmatprep.mubr.msk.bf16.mxu1 %vm10196_vm0, %v10195_v0 }
 0xb2a   : > { %9116 = vmatprep.subr.bf16.mxu1 %v10195_v0 }
 0xb32   : > { %9095 = vmatmul.mubr.msk.bf16.vlgmr.msra.gmra.mrb[72].mxu0 %vm840_vm1, %v10791_v21 }
 0xb33   : > { %9099 = vmatpush3.bf16.msra.mxu0 %v5912_v35  ;;  %9100 = vmatprep.mubr.msk.bf16.mxu0 %vm10196_vm0, %v10195_v0 }
 0xb34   : > { %9113 = vmatmul.mubr.msk.bf16.vlgmr.msra.gmra.mrb[72].mxu1 %vm840_vm1, %v10795_v22  ;;  %9122 = vmatprep.subr.bf16.mxu0 %v10195_v0 }
 0xb35   : > { %9117 = vmatpush3.bf16.msra.mxu1 %v5918_v6  ;;  %9118 = vmatprep.mubr.msk.bf16.mxu1 %vm10196_vm0, %v10195_v0 }
 0xb36   : > { %9140 = vmatprep.subr.bf16.mxu1 %v10195_v0 }
 0xb3e   : > { %9101 = vmatmul.mubr.msk.bf16.vlgmr.msra.gmra.mrb[72].mxu0 %vm840_vm1, %v10791_v21 }
 0xb3f   : > { %9123 = vmatpush3.bf16.msra.mxu0 %v5921_v50  ;;  %9124 = vmatprep.mubr.msk.bf16.mxu0 %vm10196_vm0, %v10195_v0 }
 0xb40   : > { %9119 = vmatmul.mubr.msk.bf16.vlgmr.msra.gmra.mrb[72].mxu1 %vm840_vm1, %v10795_v22  ;;  %9128 = vmatprep.subr.bf16.mxu0 %v10195_v0 }
 0xb41   : > { %9141 = vmatpush3.bf16.msra.mxu1 %v10870_v12  ;;  %9142 = vmatprep.mubr.msk.bf16.mxu1 %vm10196_vm0, %v10195_v0 }
 0xb42   : > { %9146 = vmatprep.subr.bf16.mxu1 %v10195_v0 }
 0xb46   : > { %9125 = vmatmul.mubr.msk.bf16.vlgmr.msra.gmra.mrb[76].mxu0 %vm840_vm1, %v10848_v59 }
 0xb47   : > { %9129 = vmatpush3.bf16.msra.mxu0 %v5921_v50  ;;  %9130 = vmatprep.mubr.msk.bf16.mxu0 %vm10196_vm0, %v10195_v0 }
 0xb48   : > { %9134 = vmatprep.subr.bf16.mxu0 %v10195_v0 }
 0xb52   : > { %9131 = vmatmul.mubr.msk.bf16.vlgmr.msra.gmra.mrb[76].mxu0 %vm840_vm1, %v10835_v51 }
 0xb53   : > { %9135 = vmatpush3.bf16.msra.mxu0 %v5926_v58  ;;  %9136 = vmatprep.mubr.msk.bf16.mxu0 %vm10196_vm0, %v10195_v0 }
 0xb54   : > { %9158 = vmatprep.subr.bf16.mxu0 %v10195_v0 }
 0xb5e   : > { %9137 = vmatmul.mubr.msk.bf16.vlgmr.msra.gmra.mrb[76].mxu0 %vm840_vm1, %v10835_v51 }
 0xb5f   : > { %9159 = vmatpush3.bf16.msra.mxu0 %v10880_v16  ;;  %9160 = vmatprep.mubr.msk.bf16.mxu0 %vm10196_vm0, %v10195_v0 }
 0xb60   : > { %9164 = vmatprep.subr.bf16.mxu0 %v10195_v0 }
 0xbd3   : > { %v5596_v59 = vpop.f32.mrb[64].mxu1 }
 0xbd4   : > { %v9048_v3 = vpop.f32.mrb[65].mxu1 }
 0xbd5   : > { %v5599_v62 = vpop.f32.mrb[66].mxu1 }
 0xbd6   : > { %v9049_v63 = vpop.f32.mrb[67].mxu1 }
 0xbf1   : > { %v5727_v1 = vpop.f32.mrb[68].mxu0 }
 0xbf2   : > { %v5867_v4 = vadd.f32 %v5727_v1, %v5596_v59  ;;  %v9066_v13 = vpop.f32.mrb[69].mxu0 }
 0xbf3   : > { %v5730_v2 = vpop.f32.mrb[70].mxu0  ;;  %v5858_v9 = vpop.f32.mrb[68].mxu1 }
 0xbf4   : > { %v5868_v17 = vadd.f32 %v5730_v2, %v5599_v62  ;;  %v5869_v7 = vsub.f32 %v5858_v9, %v5596_v59  ;;  %v9067_v18 = vpop.f32.mrb[71].mxu0  ;;  %v9084_v51 = vpop.f32.mrb[69].mxu1  ;;  %v5873_v30 = vmul.f32 %v11332_v10, %v5867_v4  ;;  %v5883_v34 = vmul.f32 %v11338_v14, %v5867_v4 }
 0xbf5   : > { %v5861_v32 = vpop.f32.mrb[70].mxu1 }
 0xbf6   : > { %v5871_v29 = vadd.f32 %v5869_v7, %v5727_v1  ;;  %v5870_v25 = vsub.f32 %v5861_v32, %v5599_v62  ;;  %v9085_v20 = vpop.f32.mrb[71].mxu1  ;;  %v5874_v33 = vmul.f32 %v11335_v11, %v5868_v17  ;;  %v5884_v8 = vmul.f32 %v11341_v15, %v5868_v17 }
 0xbf8   : > { %v5875_v19 = vmul.f32 %v11338_v14, %v5871_v29  ;;  %v5881_v5 = vmul.f32 %v11332_v10, %v5871_v29  ;;  %v5872_v31 = vadd.f32 %v5870_v25, %v5730_v2 }
 0xbfa   : > { %v5877_v35 = vadd.f32 %v5875_v19, %v5873_v30  ;;  %v5885_v6 = vsub.f32 %v5881_v5, %v5883_v34  ;;  %v5876_v47 = vmul.f32 %v11341_v15, %v5872_v31  ;;  %v5882_v48 = vmul.f32 %v11335_v11, %v5872_v31 }
 0xbfc   : > { %v11697_v50 = vadd.f32 %v5877_v35, %v11445_v57  ;;  %v11700_v53 = vadd.f32 %v5885_v6, %v11450_v42  ;;  %v5878_v14 = vadd.f32 %v5876_v47, %v5874_v33  ;;  %v5886_v56 = vsub.f32 %v5882_v48, %v5884_v8 }
 0xbfe   : > { %v11703_v10 = vadd.f32 %v5878_v14, %v11453_v55  ;;  %v11706_v54 = vadd.f32 %v5886_v56, %v11458_v61 }
 0xc11   : > { %v6043_v36 = vpop.f32.mrb[72].mxu0 }
 0xc12   : > { %v9102_v58 = vpop.f32.mrb[73].mxu0 }
 0xc13   : > { %v6046_v59 = vpop.f32.mrb[74].mxu0  ;;  %v6168_v15 = vpop.f32.mrb[72].mxu1 }
 0xc14   : > { %v6302_v3 = vsub.f32 %v6043_v36, %v6168_v15  ;;  %v9103_v11 = vpop.f32.mrb[75].mxu0  ;;  %v9120_v62 = vpop.f32.mrb[73].mxu1 }
 0xc15   : > { %v6171_v57 = vpop.f32.mrb[74].mxu1 }
 0xc16   : > { %v6303_v63 = vsub.f32 %v6046_v59, %v6171_v57  ;;  %v9121_v1 = vpop.f32.mrb[75].mxu1 }
 0xc18   : > { %v6308_v42 = vpack.c.bf16 %v6303_v63, %v6302_v3 }
 0xc1a   : > { %v6309_v4 = vunpack.c.l.bf16 %v6308_v42  ;;  %v6310_v13 = vunpack.c.h.bf16 %v6308_v42 }
 0xc1c   : > { %v6311_v2 = vsub.f32 %v6302_v3, %v6309_v4  ;;  %v6312_v9 = vsub.f32 %v6303_v63, %v6310_v13 }
 0xc1e   : > { %v6313_v55 = vpack.c.bf16 %v6312_v9, %v6311_v2  ;;  %v8101_v9 = vld [vmem:[%s10704_s26 + $0x30] sm:$0xff] }
 0xc20   : > { %9143 = vmatmul.mubr.msk.bf16.vlgmr.msra.gmra.mrb[76].mxu1 %vm840_vm1, %v6313_v55 }
 0xc21   : > { %9147 = vmatpush3.bf16.msra.mxu1 %v10870_v12  ;;  %9148 = vmatprep.mubr.msk.bf16.mxu1 %vm10196_vm0, %v10195_v0 }
 0xc22   : > { %9152 = vmatprep.subr.bf16.mxu1 %v10195_v0 }
 0xc2c   : > { %9149 = vmatmul.mubr.msk.bf16.vlgmr.msra.gmra.mrb[76].mxu1 %vm840_vm1, %v6308_v42 }
 0xc2d   : > { %9153 = vmatpush3.bf16.msra.mxu1 %v10893_v44  ;;  %9154 = vmatprep.mubr.msk.bf16.mxu1 %vm10196_vm0, %v10195_v0 }
 0xc2e   : > { %9176 = vmatprep.subr.bf16.mxu1 %v10195_v0 }
 0xc31   : > { %v6293_v61 = vpop.f32.mrb[76].mxu0 }
 0xc32   : > { %v6304_v17 = vsub.f32 %v6293_v61, %v6043_v36  ;;  %v9138_v7 = vpop.f32.mrb[77].mxu0 }
 0xc33   : > { %v6296_v18 = vpop.f32.mrb[78].mxu0 }
 0xc34   : > { %v6306_v51 = vsub.f32 %v6304_v17, %v6168_v15  ;;  %v6305_v32 = vsub.f32 %v6296_v18, %v6046_v59  ;;  %v9139_v29 = vpop.f32.mrb[79].mxu0  ;;  %v8099_v15 = vld [vmem:[%s10702_s8 + $0x30] sm:$0xff] }
 0xc36   : > { %v6320_v25 = vadd.f32 %v6306_v51, %v6302_v3  ;;  %v6307_v20 = vsub.f32 %v6305_v32, %v6171_v57  ;;  %v8100_v57 = vld [vmem:[%s10702_s8 + $0x38] sm:$0xff]  ;;  %s8148_s8 = sshll.u32 %s12050_s17, 8  ;;  %s12058_s17 = sld [smem:[#allocation42_spill]] }
 0xc37   : > { %v8102_v32 = vld [vmem:[%s10704_s26 + $0x38] sm:$0xff]  ;;  %s7610_s26 = sshll.u32 %s723_s15, 4  ;;  %s11884_s30 = scalar_lea.hbm %s12060_s9, %s8148_s8  ;;  %s11875_s26 = int_to_ptr.vmem [resolvable:$true] %s7610_s26 }
 0xc38   : > { %v6314_v30 = vpack.c.bf16 %v6307_v20, %v6306_v51  ;;  %v6321_v34 = vadd.f32 %v6307_v20, %v6303_v63  ;;  %9155 = vmatmul.mubr.msk.bf16.vlgmr.msra.gmra.mrb[76].mxu1 %vm840_vm1, %v6308_v42 }
 0xc39   : > { %9177 = vmatpush3.bf16.msra.mxu1 %v10904_v52  ;;  %9178 = vmatprep.mubr.msk.bf16.mxu1 %vm10196_vm0, %v10195_v0 }
 0xc3a   : > { %v6315_v19 = vunpack.c.l.bf16 %v6314_v30  ;;  %v6316_v5 = vunpack.c.h.bf16 %v6314_v30  ;;  %v6322_v31 = vpack.c.bf16 %v6321_v34, %v6320_v25  ;;  %9182 = vmatprep.subr.bf16.mxu1 %v10195_v0 }
 0xc3c   : > { %v6317_v33 = vsub.f32 %v6306_v51, %v6315_v19  ;;  %v6318_v8 = vsub.f32 %v6307_v20, %v6316_v5  ;;  %v6323_v35 = vunpack.c.l.bf16 %v6322_v31  ;;  %v6324_v6 = vunpack.c.h.bf16 %v6322_v31  ;;  %s11872_s20 = scalar_lea.hbm %s12058_s17, %s8148_s8 }
 0xc3e   : > { %v6319_v47 = vpack.c.bf16 %v6318_v8, %v6317_v33  ;;  %v6325_v48 = vsub.f32 %v6320_v25, %v6323_v35  ;;  %v6326_v14 = vsub.f32 %v6321_v34, %v6324_v6 }
 0xc40   : > { %v6327_v56 = vpack.c.bf16 %v6326_v14, %v6325_v48  ;;  %9161 = vmatmul.mubr.msk.bf16.vlgmr.msra.gmra.mrb[80].mxu0 %vm840_vm1, %v6319_v47 }
 0xc41   : > { %9165 = vmatpush3.bf16.msra.mxu0 %v10880_v16  ;;  %9166 = vmatprep.mubr.msk.bf16.mxu0 %vm10196_vm0, %v10195_v0 }
 0xc42   : > { %9179 = vmatmul.mubr.msk.bf16.vlgmr.msra.gmra.mrb[80].mxu1 %vm840_vm1, %v6327_v56  ;;  %9170 = vmatprep.subr.bf16.mxu0 %v10195_v0 }
 0xc43   : > { %9183 = vmatpush3.bf16.msra.mxu1 %v10904_v52  ;;  %9184 = vmatprep.mubr.msk.bf16.mxu1 %vm10196_vm0, %v10195_v0 }
 0xc44   : > { %9188 = vmatprep.subr.bf16.mxu1 %v10195_v0 }
 0xc4c   : > { %9167 = vmatmul.mubr.msk.bf16.vlgmr.msra.gmra.mrb[80].mxu0 %vm840_vm1, %v6314_v30 }
 0xc4d   : > { %9171 = vmatpush3.bf16.msra.mxu0 %v10927_v39  ;;  %9172 = vmatprep.mubr.msk.bf16.mxu0 %vm10196_vm0, %v10195_v0 }
 0xc4e   : > { %9185 = vmatmul.mubr.msk.bf16.vlgmr.msra.gmra.mrb[80].mxu1 %vm840_vm1, %v6322_v31  ;;  %9194 = vmatprep.subr.bf16.mxu0 %v10195_v0 }
 0xc4f   : > { %9189 = vmatpush3.bf16.msra.mxu1 %v10929_v40  ;;  %9190 = vmatprep.mubr.msk.bf16.mxu1 %vm10196_vm0, %v10195_v0 }
 0xc50   : > { %9212 = vmatprep.subr.bf16.mxu1 %v10195_v0 }
 0xc58   : > { %9173 = vmatmul.mubr.msk.bf16.vlgmr.msra.gmra.mrb[80].mxu0 %vm840_vm1, %v6314_v30 }
 0xc59   : > { %9196 = vmatprep.mubr.msk.bf16.mxu0 %vm10196_vm0, %v10195_v0 }
 0xc5a   : > { %9191 = vmatmul.mubr.msk.bf16.vlgmr.msra.gmra.mrb[80].mxu1 %vm840_vm1, %v6322_v31 }
 0xc5b   : > { %9214 = vmatprep.mubr.msk.bf16.mxu1 %vm10196_vm0, %v10195_v0 }
 0xd0b   : > { %v6450_v52 = vpop.f32.mrb[76].mxu1 }
 0xd0c   : > { %v9156_v36 = vpop.f32.mrb[77].mxu1 }
 0xd0d   : > { %v6453_v40 = vpop.f32.mrb[78].mxu1 }
 0xd0e   : > { %v9157_v58 = vpop.f32.mrb[79].mxu1 }
 0xd2b   : > { %v6581_v59 = vpop.f32.mrb[80].mxu0 }
 0xd2c   : > { %v6721_v3 = vsub.f32 %v6450_v52, %v6581_v59  ;;  %v9174_v11 = vpop.f32.mrb[81].mxu0 }
 0xd2d   : > { %v6584_v62 = vpop.f32.mrb[82].mxu0  ;;  %v6712_v63 = vpop.f32.mrb[80].mxu1 }
 0xd2e   : > { %v6730_v1 = vsub.f32 %v6721_v3, %v8099_v15  ;;  %v6722_v42 = vsub.f32 %v6453_v40, %v6584_v62  ;;  %v6723_v4 = vsub.f32 %v6712_v63, %v6450_v52  ;;  %v9175_v13 = vpop.f32.mrb[83].mxu0  ;;  %v9192_v2 = vpop.f32.mrb[81].mxu1 }
 0xd2f   : > { %v6715_v55 = vpop.f32.mrb[82].mxu1 }
 0xd30   : > { %v6731_v61 = vsub.f32 %v6722_v42, %v8100_v57  ;;  %v6725_v17 = vsub.f32 %v6723_v4, %v6581_v59  ;;  %v6724_v7 = vsub.f32 %v6715_v55, %v6453_v40  ;;  %v9193_v18 = vpop.f32.mrb[83].mxu1  ;;  %v6732_v51 = vsel %vm738_vm2, %v6730_v1, 0.0 }
 0xd32   : > { %v6733_v29 = vsel %vm739_vm3, %v6731_v61, 0.0  ;;  %v8104_v25 = vpack.c.bf16 %v6731_v61, %v6730_v1  ;;  %v6737_v20 = vsub.f32 %v6725_v17, %v8101_v9  ;;  %v6726_v30 = vsub.f32 %v6724_v7, %v6584_v62 }
 0xd33   : > { %v6741_v34 = vpack.c.bf16 %v6733_v29, %v6732_v51 }
 0xd34   : > { %v6739_v19 = vsel %vm738_vm2, %v6737_v20, 0.0  ;;  %v6738_v5 = vsub.f32 %v6726_v30, %v8102_v32  ;;  %9195 = vmatpush3.bf16.msk.msra.mxu0 %vm10966_vm4, %v8104_v25 }
 0xd35   : > { %v6742_v31 = vunpack.c.l.bf16 %v6741_v34  ;;  %v6743_v33 = vunpack.c.h.bf16 %v6741_v34  ;;  %v6753_v8 = vadd.f32 %v6739_v19, %v6732_v51  ;;  %9200 = vmatprep.subr.bf16.mxu0 %v10195_v0 }
 0xd36   : > { %v6740_v35 = vsel %vm739_vm3, %v6738_v5, 0.0  ;;  %v8113_v6 = vpack.c.bf16 %v6738_v5, %v6737_v20 }
 0xd37   : > { %v6745_v47 = vsub.f32 %v6733_v29, %v6743_v33  ;;  %v6747_v48 = vpack.c.bf16 %v6740_v35, %v6739_v19  ;;  %v6754_v14 = vadd.f32 %v6740_v35, %v6733_v29  ;;  %9197 = vmatmul.mubr.msk.bf16.vlgmr.msra.gmra.mrb[84].mxu0 %vm840_vm1, %v10805_v37  ;;  %v6744_v46 = vsub.f32 %v6732_v51, %v6742_v31 }
 0xd38   : > { %9201 = vmatpush3.bf16.msk.msra.mxu0 %vm10966_vm4, %v8104_v25  ;;  %9213 = vmatpush3.bf16.msk.msra.mxu1 %vm10966_vm4, %v8113_v6 }
 0xd39   : > { %v6748_v56 = vunpack.c.l.bf16 %v6747_v48  ;;  %v6749_v52 = vunpack.c.h.bf16 %v6747_v48  ;;  %9218 = vmatprep.subr.bf16.mxu1 %v10195_v0  ;;  %9202 = vmatprep.mubr.msk.bf16.mxu0 %vm10196_vm0, %v10195_v0  ;;  %v6746_v49 = vpack.c.bf16 %v6745_v47, %v6744_v46  ;;  %v6755_v36 = vpack.c.bf16 %v6754_v14, %v6753_v8 }
 0xd3a   : > { %9206 = vmatprep.subr.bf16.mxu0 %v10195_v0 }
 0xd3b   : > { %v6751_v40 = vsub.f32 %v6740_v35, %v6749_v52  ;;  %9215 = vmatmul.mubr.msk.bf16.vlgmr.msra.gmra.mrb[84].mxu1 %vm840_vm1, %v10807_v38  ;;  %v6750_v37 = vsub.f32 %v6739_v19, %v6748_v56  ;;  %v6756_v58 = vunpack.c.l.bf16 %v6755_v36  ;;  %v6757_v59 = vunpack.c.h.bf16 %v6755_v36 }
 0xd3c   : > { %9219 = vmatpush3.bf16.msk.msra.mxu1 %vm10966_vm4, %v8113_v6  ;;  %9220 = vmatprep.mubr.msk.bf16.mxu1 %vm10196_vm0, %v10195_v0 }
 0xd3d   : > { %9224 = vmatprep.subr.bf16.mxu1 %v10195_v0  ;;  %v6752_v15 = vpack.c.bf16 %v6751_v40, %v6750_v37  ;;  %v6758_v3 = vsub.f32 %v6753_v8, %v6756_v58  ;;  %v6759_v11 = vsub.f32 %v6754_v14, %v6757_v59 }
 0xd3f   : > { %v6760_v62 = vpack.c.bf16 %v6759_v11, %v6758_v3 }
 0xd43   : > { %9203 = vmatmul.mubr.msk.bf16.vlgmr.msra.gmra.mrb[84].mxu0 %vm840_vm1, %v10791_v21 }
 0xd44   : > { %9207 = vmatpush3.bf16.msra.mxu0 %v6746_v49  ;;  %9208 = vmatprep.mubr.msk.bf16.mxu0 %vm10196_vm0, %v10195_v0 }
 0xd45   : > { %9230 = vmatprep.subr.bf16.mxu0 %v10195_v0 }
 0xd47   : > { %9221 = vmatmul.mubr.msk.bf16.vlgmr.msra.gmra.mrb[84].mxu1 %vm840_vm1, %v10795_v22 }
 0xd48   : > { %9225 = vmatpush3.bf16.msra.mxu1 %v6752_v15  ;;  %9226 = vmatprep.mubr.msk.bf16.mxu1 %vm10196_vm0, %v10195_v0 }
 0xd49   : > { %9248 = vmatprep.subr.bf16.mxu1 %v10195_v0 }
 0xd4f   : > { %9209 = vmatmul.mubr.msk.bf16.vlgmr.msra.gmra.mrb[84].mxu0 %vm840_vm1, %v10791_v21 }
 0xd50   : > { %9231 = vmatpush3.bf16.msra.mxu0 %v6755_v36  ;;  %9232 = vmatprep.mubr.msk.bf16.mxu0 %vm10196_vm0, %v10195_v0 }
 0xd51   : > { %9236 = vmatprep.subr.bf16.mxu0 %v10195_v0 }
 0xd53   : > { %9227 = vmatmul.mubr.msk.bf16.vlgmr.msra.gmra.mrb[84].mxu1 %vm840_vm1, %v10795_v22 }
 0xd54   : > { %9249 = vmatpush3.bf16.msra.mxu1 %v10870_v12  ;;  %9250 = vmatprep.mubr.msk.bf16.mxu1 %vm10196_vm0, %v10195_v0 }
 0xd55   : > { %9254 = vmatprep.subr.bf16.mxu1 %v10195_v0 }
 0xd57   : > { %9233 = vmatmul.mubr.msk.bf16.vlgmr.msra.gmra.mrb[88].mxu0 %vm840_vm1, %v11022_v28 }
 0xd58   : > { %9237 = vmatpush3.bf16.msra.mxu0 %v6755_v36  ;;  %9238 = vmatprep.mubr.msk.bf16.mxu0 %vm10196_vm0, %v10195_v0 }
 0xd59   : > { %9242 = vmatprep.subr.bf16.mxu0 %v10195_v0 }
 0xd63   : > { %9239 = vmatmul.mubr.msk.bf16.vlgmr.msra.gmra.mrb[88].mxu0 %vm840_vm1, %v11008_v26 }
 0xd64   : > { %9243 = vmatpush3.bf16.msra.mxu0 %v6760_v62  ;;  %9244 = vmatprep.mubr.msk.bf16.mxu0 %vm10196_vm0, %v10195_v0 }
 0xd65   : > { %9266 = vmatprep.subr.bf16.mxu0 %v10195_v0 }
 0xd6f   : > { %9245 = vmatmul.mubr.msk.bf16.vlgmr.msra.gmra.mrb[88].mxu0 %vm840_vm1, %v11008_v26 }
 0xd70   : > { %9267 = vmatpush3.bf16.msra.mxu0 %v10880_v16  ;;  %9268 = vmatprep.mubr.msk.bf16.mxu0 %vm10196_vm0, %v10195_v0 }
 0xd71   : > { %9272 = vmatprep.subr.bf16.mxu0 %v10195_v0 }
 0xe22   : > { %v6877_v21 = vpop.f32.mrb[84].mxu0 }
 0xe23   : > { %v9210_v22 = vpop.f32.mrb[85].mxu0 }
 0xe24   : > { %v6880_v38 = vpop.f32.mrb[86].mxu0 }
 0xe25   : > { %v9211_v27 = vpop.f32.mrb[87].mxu0 }
 0xe26   : > { %v7002_v28 = vpop.f32.mrb[84].mxu1 }
 0xe27   : > { %v7136_v57 = vadd.f32 %v7002_v28, %v6877_v21  ;;  %v9228_v63 = vpop.f32.mrb[85].mxu1 }
 0xe28   : > { %v7005_v1 = vpop.f32.mrb[86].mxu1 }
 0xe29   : > { %v7137_v42 = vadd.f32 %v7005_v1, %v6880_v38  ;;  %v9229_v4 = vpop.f32.mrb[87].mxu1 }
 0xe2b   : > { %v7142_v13 = vpack.c.bf16 %v7137_v42, %v7136_v57 }
 0xe2d   : > { %v7143_v2 = vunpack.c.l.bf16 %v7142_v13  ;;  %v7144_v26 = vunpack.c.h.bf16 %v7142_v13 }
 0xe2f   : > { %v7145_v9 = vsub.f32 %v7136_v57, %v7143_v2  ;;  %v7146_v55 = vsub.f32 %v7137_v42, %v7144_v26 }
 0xe31   : > { %v7147_v61 = vpack.c.bf16 %v7146_v55, %v7145_v9 }
 0xe33   : > { %9251 = vmatmul.mubr.msk.bf16.vlgmr.msra.gmra.mrb[88].mxu1 %vm840_vm1, %v7147_v61 }
 0xe34   : > { %9255 = vmatpush3.bf16.msra.mxu1 %v10870_v12  ;;  %9256 = vmatprep.mubr.msk.bf16.mxu1 %vm10196_vm0, %v10195_v0 }
 0xe35   : > { %9260 = vmatprep.subr.bf16.mxu1 %v10195_v0 }
 0xe3f   : > { %9257 = vmatmul.mubr.msk.bf16.vlgmr.msra.gmra.mrb[88].mxu1 %vm840_vm1, %v7142_v13 }
 0xe40   : > { %9261 = vmatpush3.bf16.msra.mxu1 %v10893_v44  ;;  %9262 = vmatprep.mubr.msk.bf16.mxu1 %vm10196_vm0, %v10195_v0 }
 0xe41   : > { %9284 = vmatprep.subr.bf16.mxu1 %v10195_v0 }
 0xe42   : > { %v7127_v17 = vpop.f32.mrb[88].mxu0 }
 0xe43   : > { %v7138_v7 = vsub.f32 %v7127_v17, %v6877_v21  ;;  %v9246_v18 = vpop.f32.mrb[89].mxu0 }
 0xe44   : > { %v7130_v51 = vpop.f32.mrb[90].mxu0 }
 0xe45   : > { %v7140_v32 = vadd.f32 %v7138_v7, %v7002_v28  ;;  %v7139_v12 = vsub.f32 %v7130_v51, %v6880_v38  ;;  %v9247_v29 = vpop.f32.mrb[91].mxu0  ;;  %v9799_v7 = vld [vmem:[%s10695_s18] sm:$0xff]  ;;  %v9801_v51 = vld [vmem:[%s10695_s18 + $0x8] sm:$0xff]  ;;  %s10197_s18 = smov [#allocation18]  }
 0xe46   : > { %s10072_s27 = sshll.u32 %s10197_s18, 4  ;;  %s10073_s27 = int_to_ptr.vmem [resolvable:$false] %s10072_s27 }
 0xe47   : > { %v7154_v25 = vadd.f32 %v7140_v32, %v7136_v57  ;;  %v7141_v20 = vadd.f32 %v7139_v12, %v7005_v1  ;;  %s10074_s23 = scalar_lea.vmem %s10073_s27, 512  ;;  %p10075_p11 = scmp.lt.s32.totalorder %s11875_s26, %s10073_s27 }
 0xe49   : > { %v7148_v30 = vpack.c.bf16 %v7141_v20, %v7140_v32  ;;  %v7155_v34 = vadd.f32 %v7141_v20, %v7137_v42 }
 0xe4b   : > { %v7149_v19 = vunpack.c.l.bf16 %v7148_v30  ;;  %v7150_v5 = vunpack.c.h.bf16 %v7148_v30  ;;  %v7156_v31 = vpack.c.bf16 %v7155_v34, %v7154_v25  ;;  %9263 = vmatmul.mubr.msk.bf16.vlgmr.msra.gmra.mrb[88].mxu1 %vm840_vm1, %v7142_v13  ;;  %v7578_v13 = vstv %s7577_s25 }
 0xe4c   : > { %9285 = vmatpush3.bf16.msra.mxu1 %v11058_v23  ;;  %9286 = vmatprep.mubr.msk.bf16.mxu1 %vm10196_vm0, %v10195_v0 }
 0xe4d   : > { %v7151_v44 = vsub.f32 %v7140_v32, %v7149_v19  ;;  %v7152_v33 = vsub.f32 %v7141_v20, %v7150_v5  ;;  %v7157_v8 = vunpack.c.l.bf16 %v7156_v31  ;;  %v7158_v35 = vunpack.c.h.bf16 %v7156_v31  ;;  %9290 = vmatprep.subr.bf16.mxu1 %v10195_v0 }
 0xe4f   : > { %v7153_v6 = vpack.c.bf16 %v7152_v33, %v7151_v44  ;;  %v7159_v47 = vsub.f32 %v7154_v25, %v7157_v8  ;;  %v7160_v48 = vsub.f32 %v7155_v34, %v7158_v35 }
 0xe51   : > { %v7161_v14 = vpack.c.bf16 %v7160_v48, %v7159_v47  ;;  %9269 = vmatmul.mubr.msk.bf16.vlgmr.msra.gmra.mrb[92].mxu0 %vm840_vm1, %v7153_v6 }
 0xe52   : > { %9273 = vmatpush3.bf16.msra.mxu0 %v10880_v16  ;;  %9274 = vmatprep.mubr.msk.bf16.mxu0 %vm10196_vm0, %v10195_v0 }
 0xe53   : > { %9287 = vmatmul.mubr.msk.bf16.vlgmr.msra.gmra.mrb[92].mxu1 %vm840_vm1, %v7161_v14  ;;  %9278 = vmatprep.subr.bf16.mxu0 %v10195_v0 }
 0xe54   : > { %9291 = vmatpush3.bf16.msra.mxu1 %v11058_v23  ;;  %9292 = vmatprep.mubr.msk.bf16.mxu1 %vm10196_vm0, %v10195_v0 }
 0xe55   : > { %9296 = vmatprep.subr.bf16.mxu1 %v10195_v0 }
 0xe5d   : > { %9275 = vmatmul.mubr.msk.bf16.vlgmr.msra.gmra.mrb[92].mxu0 %vm840_vm1, %v7148_v30 }
 0xe5e   : > { %9279 = vmatpush3.bf16.msra.mxu0 %v10927_v39  ;;  %9280 = vmatprep.mubr.msk.bf16.mxu0 %vm10196_vm0, %v10195_v0 }
 0xe5f   : > { %9293 = vmatmul.mubr.msk.bf16.vlgmr.msra.gmra.mrb[92].mxu1 %vm840_vm1, %v7156_v31 }
 0xe60   : > { %9297 = vmatpush3.bf16.msra.mxu1 %v11089_v45  ;;  %9298 = vmatprep.mubr.msk.bf16.mxu1 %vm10196_vm0, %v10195_v0 }
 0xe69   : > { %9281 = vmatmul.mubr.msk.bf16.vlgmr.msra.gmra.mrb[92].mxu0 %vm840_vm1, %v7148_v30 }
 0xe6b   : > { %9299 = vmatmul.mubr.msk.bf16.vlgmr.msra.gmra.mrb[92].mxu1 %vm840_vm1, %v7156_v31 }
 0xf1e   : > { %v7284_v16 = vpop.f32.mrb[88].mxu1 }
 0xf1f   : > { %v9264_v23 = vpop.f32.mrb[89].mxu1 }
 0xf20   : > { %v7287_v46 = vpop.f32.mrb[90].mxu1 }
 0xf21   : > { %v9265_v56 = vpop.f32.mrb[91].mxu1 }
 0xf3c   : > { %v7415_v52 = vpop.f32.mrb[92].mxu0 }
 0xf3d   : > { %v7555_v39 = vadd.f32 %v7415_v52, %v7284_v16  ;;  %v9282_v49 = vpop.f32.mrb[93].mxu0 }
 0xf3e   : > { %v7418_v36 = vpop.f32.mrb[94].mxu0  ;;  %v7546_v40 = vpop.f32.mrb[92].mxu1 }
 0xf3f   : > { %v7556_v37 = vadd.f32 %v7418_v36, %v7287_v46  ;;  %v7557_v58 = vsub.f32 %v7546_v40, %v7284_v16  ;;  %v9283_v45 = vpop.f32.mrb[95].mxu0  ;;  %v9300_v59 = vpop.f32.mrb[93].mxu1  ;;  %v7561_v62 = vmul.f32 %v11596_v43, %v7555_v39  ;;  %v7571_v21 = vmul.f32 %v11602_v60, %v7555_v39 }
 0xf40   : > { %v7549_v15 = vpop.f32.mrb[94].mxu1 }
 0xf41   : > { %v7559_v0 = vadd.f32 %v7557_v58, %v7415_v52  ;;  %v7558_v3 = vsub.f32 %v7549_v15, %v7287_v46  ;;  %v9301_v11 = vpop.f32.mrb[95].mxu1  ;;  %v7562_v28 = vmul.f32 %v11599_v41, %v7556_v37  ;;  %v7572_v57 = vmul.f32 %v11605_v24, %v7556_v37 }
 0xf43   : > { %v7563_v22 = vmul.f32 %v11602_v60, %v7559_v0  ;;  %v7569_v38 = vmul.f32 %v11596_v43, %v7559_v0  ;;  %v7560_v27 = vadd.f32 %v7558_v3, %v7418_v36 }
 0xf45   : > { %v7565_v63 = vadd.f32 %v7563_v22, %v7561_v62  ;;  %v7573_v1 = vsub.f32 %v7569_v38, %v7571_v21  ;;  %v7564_v42 = vmul.f32 %v11605_v24, %v7560_v27  ;;  %v7570_v4 = vmul.f32 %v11599_v41, %v7560_v27  ;;  %v9798_v41 = vld [vmem:[%s10687_s12] sm:$0xff] }
 0xf47   : > { %v7567_v2 = vadd.f32 %v7565_v63, %v11697_v50  ;;  %v7575_v60 = vadd.f32 %v7573_v1, %v11700_v53  ;;  %v7566_v43 = vadd.f32 %v7564_v42, %v7562_v28  ;;  %v7574_v26 = vsub.f32 %v7570_v4, %v7572_v57 }
 0xf49   : > { %v7579_v9 = vmul.f32 %v7578_v13, %v7567_v2  ;;  %v7585_v55 = vmul.f32 %v7578_v13, %v7575_v60  ;;  %v7568_v61 = vadd.f32 %v7566_v43, %v11703_v10  ;;  %v7576_v24 = vadd.f32 %v7574_v26, %v11706_v54  ;;  %v9800_v10 = vld [vmem:[%s10687_s12 + $0x8] sm:$0xff]  ;;  %s10068_s12 = scalar_lea.vmem %s11875_s26, 256 }
 0xf4a   : > { %p10069_p10 = scmp.ne.s32.totalorder %s11875_s26, %s10068_s12  ;;  %p10076_p3 = scmp.lt.s32.totalorder %s10074_s23, %s10068_s12 }
 0xf4b   : > { %v7581_v17 = vsub.f32 %v9798_v41, %v7579_v9  ;;  %v7587_v50 = vsub.f32 %v9799_v7, %v7585_v55  ;;  %v7580_v18 = vmul.f32 %v7578_v13, %v7568_v61  ;;  %v7586_v53 = vmul.f32 %v7578_v13, %v7576_v24 }
 0xf4c   : > { %p10070_p9 = pnand %p10069_p10, %p12061_p0  ;;  %p10077_p6 = por %p10076_p3, %p10075_p11 }
 0xf4d   : > { %v7582_v54 = vsub.f32 %v9800_v10, %v7580_v18  ;;  %v7588_v32 = vsub.f32 %v9801_v51, %v7586_v53  ;;  %7583 = vst.msk [vmem:[%s723_s15] sm:$0xff] %vm840_vm1, %v7581_v17  ;;  %7589 = vst.msk [vmem:[%s730_s19] sm:$0xff] %vm840_vm1, %v7587_v50 }
 0xf4e   : > { %p10071_p1 = pneg %p10070_p9 }
 0xf4f   : > { %7584 = vst.msk [vmem:[%s723_s15 + $0x8] sm:$0xff] %vm840_vm1, %v7582_v54  ;;  %7590 = vst.msk [vmem:[%s730_s19 + $0x8] sm:$0xff] %vm840_vm1, %v7588_v32 }
 0xf50   : > { %p10078_p5 = pnand %p10077_p6, %p10071_p1 }
 0xf52   : > { %10081 = shalt.err (!%p10078_p5)
}
 0xf53   : > { %s10082_s10 = scalar_lea.hbm %s11872_s20, 256  ;;  %s10086_s15 = scalar_lea.hbm %s12058_s17, 512 }
 0xf54   : > { %p10083_p13 = scmp.ne.s32.totalorder %s11872_s20, %s10082_s10  ;;  %p10087_p4 = scmp.lt.u32.totalorder %s11872_s20, %s12058_s17 }
 0xf55   : > { %p10088_p7 = scmp.lt.u32.totalorder %s10086_s15, %s10082_s10  ;;  %p10090_p10 = scmp.lt.u32.totalorder %s10082_s10, %s11872_s20 }
 0xf56   : > { %p10084_p2 = pnand %p10083_p13, %p12061_p0 }
 0xf57   : > { %p10089_p8 = por %p10088_p7, %p10087_p4 }
 0xf58   : > { %p10085_p12 = pneg %p10084_p2 }
 0xf59   : > { %p10091_p9 = por %p10090_p10, %p10089_p8 }
 0xf5b   : > { %p10092_p1 = pnand %p10091_p9, %p10085_p12 }
 0xf5d   : > { %10095 = shalt.err (!%p10092_p1)
}
 0xf5e   : > { %s10198_s19 = smov 128   ;;  %s10199_s29 = smov 8  }
 0xf5f   : > { %9708 = dma.vmem_to_hbm [thread:$0]  (%p12061_p0), %s11875_s26, 256, %s11872_s20, %s7592_s14, %s10198_s19, %s10198_s19, %s10199_s29  }
 0xf60   : > { %s7597_s16 = scalar_lea.sflag [#allocation20], %s10680_s4  ;;  %s10096_s12 = scalar_lea.vmem %s11886_s22, 256 }
 0xf61   : > { %p10097_p11 = scmp.ne.s32.totalorder %s11886_s22, %s10096_s12  ;;  %s10200_s18 = smov [#allocation19]  }
 0xf62   : > { %s10100_s27 = sshll.u32 %s10200_s18, 4  ;;  %s10101_s27 = int_to_ptr.vmem [resolvable:$false] %s10100_s27 }
 0xf63   : > { %p10098_p3 = pnand %p10097_p11, %p12061_p0  ;;  %s10102_s23 = scalar_lea.vmem %s10101_s27, 512 }
 0xf64   : > { %p10103_p5 = scmp.lt.s32.totalorder %s11886_s22, %s10101_s27  ;;  %p10104_p13 = scmp.lt.s32.totalorder %s10102_s23, %s10096_s12 }
 0xf65   : > { %p10099_p6 = pneg %p10098_p3 }
 0xf66   : > { %p10105_p2 = por %p10104_p13, %p10103_p5 }
 0xf68   : > { %p10106_p12 = pnand %p10105_p2, %p10099_p6 }
 0xf6a   : > { %10109 = shalt.err (!%p10106_p12)
}
 0xf6b   : > { %s10110_s26 = scalar_lea.hbm %s11884_s30, 256  ;;  %s10114_s10 = scalar_lea.hbm %s12060_s9, 512 }
 0xf6c   : > { %p10111_p4 = scmp.ne.s32.totalorder %s11884_s30, %s10110_s26  ;;  %p10115_p10 = scmp.lt.u32.totalorder %s11884_s30, %s12060_s9 }
 0xf6d   : > { %p10116_p9 = scmp.lt.u32.totalorder %s10114_s10, %s10110_s26  ;;  %p10118_p11 = scmp.lt.u32.totalorder %s10110_s26, %s11884_s30 }
 0xf6e   : > { %p10112_p7 = pnand %p10111_p4, %p12061_p0 }
 0xf6f   : > { %p10117_p1 = por %p10116_p9, %p10115_p10 }
 0xf70   : > { %p10113_p8 = pneg %p10112_p7 }
 0xf71   : > { %p10119_p3 = por %p10118_p11, %p10117_p1 }
 0xf73   : > { %p10120_p6 = pnand %p10119_p3, %p10113_p8 }
 0xf75   : > { %10123 = shalt.err (!%p10120_p6)
}
 0xf76   : > { %9709 = dma.vmem_to_hbm [thread:$0]  (%p12061_p0), %s11886_s22, 256, %s11884_s30, %s7597_s16, %s10198_s19, %s10198_s19, %s10199_s29  }
 0xf77 PF: > { %s12062_s15 = sld [smem:[#allocation28_spill]]  ;;  %s12063_s24 = sld [smem:[#allocation35_spill]] }
 0xf78   : > { %p12065_p13 = scmp.ge.s32.totalorder %s10182_s0, 2 }
 0xf7d   : > { %s7641_s6 = sand.u32 1, %s12062_s15   ;;  %p12064_p5 = scmp.ne.s32.totalorder %s12063_s24, 0 }
 0xf7e   : > { %s7642_s12 = scalar_lea.sflag [#allocation5], %s7641_s6 }
 0xf7f   : > { %p9742_p2 = pnand %p12065_p13, %p12064_p5 }
 0xf81   : > { %10161 = dma.done.wait (!%p9742_p2), %s7642_s12, 256  }
 0xf82   : > { %10163 = vsyncadd (!%p9742_p2), %s7642_s12, 4294967040  ;;  %s7651_s2 = scalar_lea.sflag [#allocation20], %s7641_s6 }
 0xf83   : > { %10165 = dma.done.wait (!%p9742_p2), %s7651_s2, 256  }
 0xf84   : > { %10167 = vsyncadd (!%p9742_p2), %s7651_s2, 4294967040  ;;  %s12066_s0 = sld [smem:[#allocation31_spill]]  ;;  %s12067_s4 = sld [smem:[#allocation29_spill]] }
 0xf85   : > { %s12068_s29 = sld [smem:[#allocation32_spill]]  ;;  %s12069_s27 = smov %s10174_s28 }
 0xf8a   : > { %p41_p0 = scmp.ge.s32.totalorder %s12066_s0, 4   ;;  %s12070_s28 = smov %s12067_s4 }
 0xf8c   :  { %43 = sbr.rel (!%p41_p0) target bundleno = 24 (0x18), region = 222 }
 0xf93   :  { %7656 = vsyncpa [#allocation4], 1 }
 0xf94   :  { %7658 = vsyncpa [#allocation4 + $0x1], 1 }
 0xf95   :  { %7659 = vsyncpa [#allocation7], 1 }
 0xf96   :  { %7661 = vsyncpa [#allocation7 + $0x1], 1 }
 0xf97   :  { %7662 = vsyncpa [#allocation10], 1 }
 0xf98   :  { %7664 = vsyncpa [#allocation10 + $0x1], 1 }
 0xf99   :  { %7665 = vsyncpa [#allocation13], 1 }
 0xf9a   :  { %7667 = vsyncpa [#allocation13 + $0x1], 1 }
 0xf9b   :  { %7668 = vsyncpa [#allocation16], 1 }
 0xf9c   :  { %7669 = vsyncpa [#allocation5], 1 }
 0xf9d   :  { %7671 = vsyncpa [#allocation5 + $0x1], 1 }
 0xf9e   :  { %7672 = vsyncpa [#allocation20], 1 }
 0xf9f   :  { %7674 = vsyncpa [#allocation20 + $0x1], 1 }

</bundles_post_ra>
